<compile_context>
chip_gen: v7x
topology: tpu7x:2x2x1
jax: 0.10.0
libtpu: 0.0.40
codegen_flags: <defaults>
</compile_context>

<pallas_src>
import functools

import jax
import jax.numpy as jnp
from jax.experimental import pallas as pl
from jax.experimental.pallas import tpu as pltpu

IN_FEATURES = 784 * 3          # 2352
OUT_FEATURES = 26
K1_PAD = 2432                  # 19 * 128  (fc1 input, zero-padded)
N1 = 784                       # fc1 output (left unpadded; memory-bound regime)
N2_PAD = 128                   # fc2 output 120 -> 128
N3_PAD = 128                   # fc3 output  84 -> 128
N4_PAD = 128                   # fc4 output  26 -> 128


def _round_up(x, m):
    return (x + m - 1) // m * m


def _mlp_kernel(x_ref,
                w1_ref, b1_ref,
                w2_ref, b2_ref,
                w3_ref, b3_ref,
                w4_ref, b4_ref,
                o_ref):
    # Fused 4-layer MLP on one batch tile.
    # bf16 operands -> f32 MXU accumulation; bias add + ReLU in f32 (VPU).
    x = x_ref[...]                                                   # bf16

    h = jnp.dot(x, w1_ref[...], preferred_element_type=jnp.float32)
    h = jnp.maximum(h + b1_ref[...], 0.0)

    h = jnp.dot(h.astype(jnp.bfloat16), w2_ref[...],
                preferred_element_type=jnp.float32)
    h = jnp.maximum(h + b2_ref[...], 0.0)

    h = jnp.dot(h.astype(jnp.bfloat16), w3_ref[...],
                preferred_element_type=jnp.float32)
    h = jnp.maximum(h + b3_ref[...], 0.0)

    h = jnp.dot(h.astype(jnp.bfloat16), w4_ref[...],
                preferred_element_type=jnp.float32)
    h = h + b4_ref[...]

    o_ref[...] = h.astype(o_ref.dtype)


def simple_image_classifier(x, kparams, *, tile_b=128):
    """x: (B, 2352) float32. kparams: padded/bf16 kernel params (see prepare_params)."""
    B, K = x.shape

    # Small batches: shrink the tile so we don't burn a full 128-row tile on 8 rows.
    if B < tile_b:
        tile_b = max(8, _round_up(B, 8))
    B_pad = _round_up(B, tile_b)
    n_tiles = B_pad // tile_b

    w1, b1 = kparams["w1"], kparams["b1"]
    w2, b2 = kparams["w2"], kparams["b2"]
    w3, b3 = kparams["w3"], kparams["b3"]
    w4, b4 = kparams["w4"], kparams["b4"]

    # Zero-pad batch rows (to tile multiple) and K columns (to 2432), cast to bf16.
    x_p = jnp.pad(x.astype(jnp.bfloat16),
                  ((0, B_pad - B), (0, K1_PAD - K)))

    const_map = lambda i: (0, 0)  # weights/biases: resident, DMA'd once

    out = pl.pallas_call(
        _mlp_kernel,
        out_shape=jax.ShapeDtypeStruct((B_pad, N4_PAD), jnp.float32),
        grid=(n_tiles,),
        in_specs=[
            pl.BlockSpec((tile_b, K1_PAD), lambda i: (i, 0)),   # x tile
            pl.BlockSpec(w1.shape, const_map),
            pl.BlockSpec(b1.shape, const_map),
            pl.BlockSpec(w2.shape, const_map),
            pl.BlockSpec(b2.shape, const_map),
            pl.BlockSpec(w3.shape, const_map),
            pl.BlockSpec(b3.shape, const_map),
            pl.BlockSpec(w4.shape, const_map),
            pl.BlockSpec(b4.shape, const_map),
        ],
        out_specs=pl.BlockSpec((tile_b, N4_PAD), lambda i: (i, 0)),
        compiler_params=pltpu.CompilerParams(
            dimension_semantics=("parallel",),      # shard batch across TCs (v7x)
            vmem_limit_bytes=32 << 20,
        ),
    )(x_p, w1, b1, w2, b2, w3, b3, w4, b4)

    return out[:B, :OUT_FEATURES]


def init_params(key):
    """f32, unpadded params matching nn.Linear shapes (stored transposed: (in, out))."""
    dims = [IN_FEATURES, 784, 120, 84, OUT_FEATURES]
    params = {}
    keys = jax.random.split(key, 2 * (len(dims) - 1))
    for i in range(len(dims) - 1):
        fan_in, fan_out = dims[i], dims[i + 1]
        bound = 1.0 / jnp.sqrt(jnp.float32(fan_in))   # PyTorch default Linear init
        w = jax.random.uniform(keys[2 * i], (fan_in, fan_out),
                               jnp.float32, -bound, bound)
        b = jax.random.uniform(keys[2 * i + 1], (1, fan_out),
                               jnp.float32, -bound, bound)
        params[f"w{i + 1}"] = w
        params[f"b{i + 1}"] = b
    return params


def prepare_params(params):
    """Pad to lane-friendly widths and cast weights to bf16 for the kernel.

    Zero padding is exact: padded weight rows/cols and bias entries are 0, so
    padded activation lanes stay 0 through bias+ReLU and never affect the
    unpadded outputs.
    """
    def pad_to(a, shape):
        return jnp.pad(a, [(0, t - s) for s, t in zip(a.shape, shape)])

    kp = {}
    kp["w1"] = pad_to(params["w1"], (K1_PAD, N1)).astype(jnp.bfloat16)
    kp["b1"] = params["b1"].astype(jnp.float32)
    kp["w2"] = pad_to(params["w2"], (N1, N2_PAD)).astype(jnp.bfloat16)
    kp["b2"] = pad_to(params["b2"], (1, N2_PAD)).astype(jnp.float32)
    kp["w3"] = pad_to(params["w3"], (N2_PAD, N3_PAD)).astype(jnp.bfloat16)
    kp["b3"] = pad_to(params["b3"], (1, N3_PAD)).astype(jnp.float32)
    kp["w4"] = pad_to(params["w4"], (N3_PAD, N4_PAD)).astype(jnp.bfloat16)
    kp["b4"] = pad_to(params["b4"], (1, N4_PAD)).astype(jnp.float32)
    return kp


def reference_forward(x, params):
    """Pure-JAX reference of the PyTorch forward pass, precision-matched to the
    kernel (bf16 dot operands, f32 accumulation, f32 bias/ReLU)."""
    def mm(a, w):
        return jnp.dot(a.astype(jnp.bfloat16).astype(jnp.float32),
                       w.astype(jnp.bfloat16).astype(jnp.float32))

    h = jnp.maximum(mm(x, params["w1"]) + params["b1"], 0.0)
    h = jnp.maximum(mm(h, params["w2"]) + params["b2"], 0.0)
    h = jnp.maximum(mm(h, params["w3"]) + params["b3"], 0.0)
    return mm(h, params["w4"]) + params["b4"]


if __name__ == "__main__":
    key = jax.random.PRNGKey(0)
    pkey, xkey = jax.random.split(key)

    params = init_params(pkey)          # f32, PyTorch-shaped (transposed)
    kparams = prepare_params(params)    # padded + bf16 for the kernel

    B = 8  # small batch; feature dim fixed at 784*3 = 2352 by fc1
    x = jax.random.normal(xkey, (B, IN_FEATURES), jnp.float32)

    fwd = jax.jit(functools.partial(simple_image_classifier, tile_b=128))
    out = fwd(x, kparams)
    out = jax.block_until_ready(out)

    ref = reference_forward(x, params)
    assert out.shape == (B, OUT_FEATURES), out.shape
    assert jnp.allclose(out, ref, atol=5e-3, rtol=5e-3), (
        "mismatch vs precision-matched JAX reference: "
        f"max abs err {float(jnp.max(jnp.abs(out - ref)))}")

    print("KERNEL_OK")
</pallas_src>

<mosaic_0001>
module attributes {stable_mosaic.version = 11 : i64} {
  func.func @_mlp_kernel(%arg0: i32, %arg1: memref<8x2432xbf16, #tpu.memory_space<vmem>>, %arg2: memref<2432x784xbf16, #tpu.memory_space<vmem>>, %arg3: memref<1x784xf32, #tpu.memory_space<vmem>>, %arg4: memref<784x128xbf16, #tpu.memory_space<vmem>>, %arg5: memref<1x128xf32, #tpu.memory_space<vmem>>, %arg6: memref<128x128xbf16, #tpu.memory_space<vmem>>, %arg7: memref<1x128xf32, #tpu.memory_space<vmem>>, %arg8: memref<128x128xbf16, #tpu.memory_space<vmem>>, %arg9: memref<1x128xf32, #tpu.memory_space<vmem>>, %arg10: memref<8x128xf32, #tpu.memory_space<vmem>>) attributes {dimension_semantics = [#tpu.dimension_semantics<parallel>], iteration_bounds = array<i64: 1>, scalar_prefetch = 0 : i64, scratch_operands = 0 : i64, tpu.core_type = #tpu.core_type<tc>, window_params = [{transform_indices = @transform_0, window_bounds = array<i64: 8, 2432>}, {pipeline_mode = #tpu.pipeline_mode<synchronous>, transform_indices = @transform_1, window_bounds = array<i64: 2432, 784>}, {pipeline_mode = #tpu.pipeline_mode<synchronous>, transform_indices = @transform_2, window_bounds = array<i64: 1, 784>}, {pipeline_mode = #tpu.pipeline_mode<synchronous>, transform_indices = @transform_3, window_bounds = array<i64: 784, 128>}, {pipeline_mode = #tpu.pipeline_mode<synchronous>, transform_indices = @transform_4, window_bounds = array<i64: 1, 128>}, {pipeline_mode = #tpu.pipeline_mode<synchronous>, transform_indices = @transform_5, window_bounds = array<i64: 128, 128>}, {pipeline_mode = #tpu.pipeline_mode<synchronous>, transform_indices = @transform_6, window_bounds = array<i64: 1, 128>}, {pipeline_mode = #tpu.pipeline_mode<synchronous>, transform_indices = @transform_7, window_bounds = array<i64: 128, 128>}, {pipeline_mode = #tpu.pipeline_mode<synchronous>, transform_indices = @transform_8, window_bounds = array<i64: 1, 128>}, {transform_indices = @transform_9, window_bounds = array<i64: 8, 128>}]} {
    %c0 = arith.constant 0 : index
    %c0_0 = arith.constant 0 : index
    %0 = vector.load %arg1[%c0, %c0_0] : memref<8x2432xbf16, #tpu.memory_space<vmem>>, vector<8x2432xbf16>
    %c0_1 = arith.constant 0 : index
    %c0_2 = arith.constant 0 : index
    %1 = vector.load %arg2[%c0_1, %c0_2] : memref<2432x784xbf16, #tpu.memory_space<vmem>>, vector<2432x784xbf16>
    %cst = arith.constant dense<0.000000e+00> : vector<8x784xf32>
    %2 = tpu.matmul %0, %1, %cst {dimension_numbers = #tpu.dot_dimension_numbers<[1], [0], [0], [1], [0, 0, 1, 1], [], []>} : vector<8x2432xbf16>, vector<2432x784xbf16>, vector<8x784xf32> -> vector<8x784xf32>
    %c0_3 = arith.constant 0 : index
    %c0_4 = arith.constant 0 : index
    %3 = vector.load %arg3[%c0_3, %c0_4] : memref<1x784xf32, #tpu.memory_space<vmem>>, vector<1x784xf32>
    %4 = vector.broadcast %3 : vector<1x784xf32> to vector<8x784xf32>
    %5 = arith.addf %2, %4 : vector<8x784xf32>
    %cst_5 = arith.constant 0.000000e+00 : f32
    %6 = vector.broadcast %cst_5 : f32 to vector<8x784xf32>
    %7 = arith.maximumf %5, %6 : vector<8x784xf32>
    %8 = arith.truncf %7 : vector<8x784xf32> to vector<8x784xbf16>
    %c0_6 = arith.constant 0 : index
    %c0_7 = arith.constant 0 : index
    %9 = vector.load %arg4[%c0_6, %c0_7] : memref<784x128xbf16, #tpu.memory_space<vmem>>, vector<784x128xbf16>
    %cst_8 = arith.constant dense<0.000000e+00> : vector<8x128xf32>
    %10 = tpu.matmul %8, %9, %cst_8 {dimension_numbers = #tpu.dot_dimension_numbers<[1], [0], [0], [1], [0, 0, 1, 1], [], []>} : vector<8x784xbf16>, vector<784x128xbf16>, vector<8x128xf32> -> vector<8x128xf32>
    %c0_9 = arith.constant 0 : index
    %c0_10 = arith.constant 0 : index
    %11 = vector.load %arg5[%c0_9, %c0_10] : memref<1x128xf32, #tpu.memory_space<vmem>>, vector<1x128xf32>
    %12 = vector.broadcast %11 : vector<1x128xf32> to vector<8x128xf32>
    %13 = arith.addf %10, %12 : vector<8x128xf32>
    %cst_11 = arith.constant 0.000000e+00 : f32
    %14 = vector.broadcast %cst_11 : f32 to vector<8x128xf32>
    %15 = arith.maximumf %13, %14 : vector<8x128xf32>
    %16 = arith.truncf %15 : vector<8x128xf32> to vector<8x128xbf16>
    %c0_12 = arith.constant 0 : index
    %c0_13 = arith.constant 0 : index
    %17 = vector.load %arg6[%c0_12, %c0_13] : memref<128x128xbf16, #tpu.memory_space<vmem>>, vector<128x128xbf16>
    %cst_14 = arith.constant dense<0.000000e+00> : vector<8x128xf32>
    %18 = tpu.matmul %16, %17, %cst_14 {dimension_numbers = #tpu.dot_dimension_numbers<[1], [0], [0], [1], [0, 0, 1, 1], [], []>} : vector<8x128xbf16>, vector<128x128xbf16>, vector<8x128xf32> -> vector<8x128xf32>
    %c0_15 = arith.constant 0 : index
    %c0_16 = arith.constant 0 : index
    %19 = vector.load %arg7[%c0_15, %c0_16] : memref<1x128xf32, #tpu.memory_space<vmem>>, vector<1x128xf32>
    %20 = vector.broadcast %19 : vector<1x128xf32> to vector<8x128xf32>
    %21 = arith.addf %18, %20 : vector<8x128xf32>
    %cst_17 = arith.constant 0.000000e+00 : f32
    %22 = vector.broadcast %cst_17 : f32 to vector<8x128xf32>
    %23 = arith.maximumf %21, %22 : vector<8x128xf32>
    %24 = arith.truncf %23 : vector<8x128xf32> to vector<8x128xbf16>
    %c0_18 = arith.constant 0 : index
    %c0_19 = arith.constant 0 : index
    %25 = vector.load %arg8[%c0_18, %c0_19] : memref<128x128xbf16, #tpu.memory_space<vmem>>, vector<128x128xbf16>
    %cst_20 = arith.constant dense<0.000000e+00> : vector<8x128xf32>
    %26 = tpu.matmul %24, %25, %cst_20 {dimension_numbers = #tpu.dot_dimension_numbers<[1], [0], [0], [1], [0, 0, 1, 1], [], []>} : vector<8x128xbf16>, vector<128x128xbf16>, vector<8x128xf32> -> vector<8x128xf32>
    %c0_21 = arith.constant 0 : index
    %c0_22 = arith.constant 0 : index
    %27 = vector.load %arg9[%c0_21, %c0_22] : memref<1x128xf32, #tpu.memory_space<vmem>>, vector<1x128xf32>
    %28 = vector.broadcast %27 : vector<1x128xf32> to vector<8x128xf32>
    %29 = arith.addf %26, %28 : vector<8x128xf32>
    %c0_23 = arith.constant 0 : index
    %c0_24 = arith.constant 0 : index
    %30 = vector.load %arg10[%c0_23, %c0_24] : memref<8x128xf32, #tpu.memory_space<vmem>>, vector<8x128xf32>
    tpu.vector_store %arg10[%c0_23, %c0_24], %29 {strides = array<i32>} : memref<8x128xf32, #tpu.memory_space<vmem>>, vector<8x128xf32>,
    return
  }
  func.func @transform_0(%arg0: i32) -> (i32, i32) {
    %c0_i32 = arith.constant 0 : i32
    %c0_i32_0 = arith.constant 0 : i32
    return %arg0, %c0_i32 : i32, i32
  }
  func.func @transform_1(%arg0: i32) -> (i32, i32) {
    %c0_i32 = arith.constant 0 : i32
    %c0_i32_0 = arith.constant 0 : i32
    %c0_i32_1 = arith.constant 0 : i32
    return %c0_i32, %c0_i32_0 : i32, i32
  }
  func.func @transform_2(%arg0: i32) -> (i32, i32) {
    %c0_i32 = arith.constant 0 : i32
    %c0_i32_0 = arith.constant 0 : i32
    %c0_i32_1 = arith.constant 0 : i32
    return %c0_i32, %c0_i32_0 : i32, i32
  }
  func.func @transform_3(%arg0: i32) -> (i32, i32) {
    %c0_i32 = arith.constant 0 : i32
    %c0_i32_0 = arith.constant 0 : i32
    %c0_i32_1 = arith.constant 0 : i32
    return %c0_i32, %c0_i32_0 : i32, i32
  }
  func.func @transform_4(%arg0: i32) -> (i32, i32) {
    %c0_i32 = arith.constant 0 : i32
    %c0_i32_0 = arith.constant 0 : i32
    %c0_i32_1 = arith.constant 0 : i32
    return %c0_i32, %c0_i32_0 : i32, i32
  }
  func.func @transform_5(%arg0: i32) -> (i32, i32) {
    %c0_i32 = arith.constant 0 : i32
    %c0_i32_0 = arith.constant 0 : i32
    %c0_i32_1 = arith.constant 0 : i32
    return %c0_i32, %c0_i32_0 : i32, i32
  }
  func.func @transform_6(%arg0: i32) -> (i32, i32) {
    %c0_i32 = arith.constant 0 : i32
    %c0_i32_0 = arith.constant 0 : i32
    %c0_i32_1 = arith.constant 0 : i32
    return %c0_i32, %c0_i32_0 : i32, i32
  }
  func.func @transform_7(%arg0: i32) -> (i32, i32) {
    %c0_i32 = arith.constant 0 : i32
    %c0_i32_0 = arith.constant 0 : i32
    %c0_i32_1 = arith.constant 0 : i32
    return %c0_i32, %c0_i32_0 : i32, i32
  }
  func.func @transform_8(%arg0: i32) -> (i32, i32) {
    %c0_i32 = arith.constant 0 : i32
    %c0_i32_0 = arith.constant 0 : i32
    %c0_i32_1 = arith.constant 0 : i32
    return %c0_i32, %c0_i32_0 : i32, i32
  }
  func.func @transform_9(%arg0: i32) -> (i32, i32) {
    %c0_i32 = arith.constant 0 : i32
    %c0_i32_0 = arith.constant 0 : i32
    return %arg0, %c0_i32 : i32, i32
  }
}

</mosaic_0001>

<bundles_post_ra>
// kernel: simple_image_classifier.1
= control target key start
LH: loop header
LB: loop body
LE: loop exit
PB: predicated region body
PF: predicated region fallthrough
CT: control target
= control target key end

     0   :  { %s16280_s0 = inlined_call_operand.vmem [shape: bf16[8,2432], index: 0, kind: input, shape index: {}]   ;;  %s16281_s1 = inlined_call_operand.vmem [shape: bf16[2432,784], index: 1, kind: input, shape index: {}]   ;;  %s16282_s2 = inlined_call_operand.vmem [shape: f32[1,784], index: 2, kind: input, shape index: {}]   ;;  %s16283_s3 = inlined_call_operand.vmem [shape: bf16[784,128], index: 3, kind: input, shape index: {}]   ;;  %s16284_s4 = inlined_call_operand.vmem [shape: f32[1,128], index: 4, kind: input, shape index: {}]   ;;  %s16285_s5 = inlined_call_operand.vmem [shape: bf16[128,128], index: 5, kind: input, shape index: {}]   ;;  %s16286_s6 = inlined_call_operand.vmem [shape: f32[1,128], index: 6, kind: input, shape index: {}]   ;;  %s16287_s7 = inlined_call_operand.vmem [shape: bf16[128,128], index: 7, kind: input, shape index: {}]   ;;  %s16288_s8 = inlined_call_operand.vmem [shape: f32[1,128], index: 8, kind: input, shape index: {}]   ;;  %s16289_s9 = inlined_call_operand.hbm [shape: f32[8,128], index: 9, kind: output, shape index: {}]  }
   0x1   :  { %v10911_v0 = vld [vmem:[%s16281_s1 + $0x4] ss:$28 sps:$4 sm:$0xff]   ;;  %v10917_v4 = vld [vmem:[%s16281_s1 + $0x3c] ss:$28 sps:$4 sm:$0xff]   ;;  %v10923_v8 = vld [vmem:[%s16281_s1 + $0x74] ss:$28 sps:$4 sm:$0xff]  }
   0x2   :  { %v10913_v1 = vld [vmem:[%s16281_s1 + $0x384] ss:$28 sps:$4 sm:$0xff]   ;;  %6836 = vmatprep.subr.bf16.mxu1 %v10911_v0  ;;  %v10919_v5 = vld [vmem:[%s16281_s1 + $0x3bc] ss:$28 sps:$4 sm:$0xff]   ;;  %v10925_v9 = vld [vmem:[%s16281_s1 + $0x3f4] ss:$28 sps:$4 sm:$0xff]  }
   0x3   :  { %v10915_v2 = vld [vmem:[%s16281_s1] ss:$28 sps:$4 sm:$0xff]   ;;  %6877 = vmatprep.subr.bf16.mxu0 %v10913_v1  ;;  %v10921_v6 = vld [vmem:[%s16281_s1 + $0x38] ss:$28 sps:$4 sm:$0xff]   ;;  %v10927_v10 = vld [vmem:[%s16281_s1 + $0x70] ss:$28 sps:$4 sm:$0xff]  }
   0x4   :  { %v10916_v3 = vld [vmem:[%s16281_s1 + $0x380] ss:$28 sps:$4 sm:$0xff]   ;;  %6837 = vmatpush1.bf16.msra.mxu1 %v10915_v2  ;;  %v10922_v7 = vld [vmem:[%s16281_s1 + $0x3b8] ss:$28 sps:$4 sm:$0xff]   ;;  %v10928_v11 = vld [vmem:[%s16281_s1 + $0x3f0] ss:$28 sps:$4 sm:$0xff]  }
   0x5   :  { %6878 = vmatpush1.bf16.msra.mxu0 %v10916_v3  ;;  %6838 = vmatprep.subr.bf16.mxu1 %v10917_v4  ;;  %v10929_v12 = vld [vmem:[%s16281_s1 + $0xac] ss:$28 sps:$4 sm:$0xff]   ;;  %v10935_v16 = vld [vmem:[%s16281_s1 + $0xe4] ss:$28 sps:$4 sm:$0xff]   ;;  %v10941_v20 = vld [vmem:[%s16281_s1 + $0x11c] ss:$28 sps:$4 sm:$0xff]  }
   0x6   :  { %6879 = vmatprep.subr.bf16.mxu0 %v10919_v5  ;;  %v10931_v13 = vld [vmem:[%s16281_s1 + $0x42c] ss:$28 sps:$4 sm:$0xff]   ;;  %v10937_v17 = vld [vmem:[%s16281_s1 + $0x464] ss:$28 sps:$4 sm:$0xff]   ;;  %v10943_v21 = vld [vmem:[%s16281_s1 + $0x49c] ss:$28 sps:$4 sm:$0xff]  }
   0x7   :  { %v10933_v14 = vld [vmem:[%s16281_s1 + $0xa8] ss:$28 sps:$4 sm:$0xff]   ;;  %v10939_v18 = vld [vmem:[%s16281_s1 + $0xe0] ss:$28 sps:$4 sm:$0xff]   ;;  %v10945_v22 = vld [vmem:[%s16281_s1 + $0x118] ss:$28 sps:$4 sm:$0xff]  }
   0x8   :  { %6839 = vmatpush1.bf16.msra.mxu1 %v10921_v6  ;;  %v10934_v15 = vld [vmem:[%s16281_s1 + $0x428] ss:$28 sps:$4 sm:$0xff]   ;;  %v10940_v19 = vld [vmem:[%s16281_s1 + $0x460] ss:$28 sps:$4 sm:$0xff]   ;;  %v10946_v23 = vld [vmem:[%s16281_s1 + $0x498] ss:$28 sps:$4 sm:$0xff]  }
   0x9   :  { %6880 = vmatpush1.bf16.msra.mxu0 %v10922_v7  ;;  %6840 = vmatprep.subr.bf16.mxu1 %v10923_v8  ;;  %v10947_v24 = vld [vmem:[%s16281_s1 + $0x154] ss:$28 sps:$4 sm:$0xff]   ;;  %v10953_v28 = vld [vmem:[%s16281_s1 + $0x18c] ss:$28 sps:$4 sm:$0xff]   ;;  %v10959_v32 = vld [vmem:[%s16281_s1 + $0x1c4] ss:$28 sps:$4 sm:$0xff]  }
   0xa   :  { %6881 = vmatprep.subr.bf16.mxu0 %v10925_v9  ;;  %v10949_v25 = vld [vmem:[%s16281_s1 + $0x4d4] ss:$28 sps:$4 sm:$0xff]   ;;  %v10955_v29 = vld [vmem:[%s16281_s1 + $0x50c] ss:$28 sps:$4 sm:$0xff]   ;;  %v10961_v33 = vld [vmem:[%s16281_s1 + $0x544] ss:$28 sps:$4 sm:$0xff]  }
   0xb   :  { %v10951_v26 = vld [vmem:[%s16281_s1 + $0x150] ss:$28 sps:$4 sm:$0xff]   ;;  %v10957_v30 = vld [vmem:[%s16281_s1 + $0x188] ss:$28 sps:$4 sm:$0xff]   ;;  %v10963_v34 = vld [vmem:[%s16281_s1 + $0x1c0] ss:$28 sps:$4 sm:$0xff]  }
   0xc   :  { %6841 = vmatpush1.bf16.msra.mxu1 %v10927_v10  ;;  %v10952_v27 = vld [vmem:[%s16281_s1 + $0x4d0] ss:$28 sps:$4 sm:$0xff]   ;;  %v10958_v31 = vld [vmem:[%s16281_s1 + $0x508] ss:$28 sps:$4 sm:$0xff]   ;;  %v10964_v35 = vld [vmem:[%s16281_s1 + $0x540] ss:$28 sps:$4 sm:$0xff]  }
   0xd   :  { %6882 = vmatpush1.bf16.msra.mxu0 %v10928_v11  ;;  %6842 = vmatprep.subr.bf16.mxu1 %v10929_v12  ;;  %v10965_v36 = vld [vmem:[%s16281_s1 + $0x1fc] ss:$28 sps:$4 sm:$0xff]   ;;  %v10971_v40 = vld [vmem:[%s16281_s1 + $0x234] ss:$28 sps:$4 sm:$0xff]   ;;  %v10977_v44 = vld [vmem:[%s16281_s1 + $0x26c] ss:$28 sps:$4 sm:$0xff]  }
   0xe   :  { %6883 = vmatprep.subr.bf16.mxu0 %v10931_v13  ;;  %v10967_v37 = vld [vmem:[%s16281_s1 + $0x57c] ss:$28 sps:$4 sm:$0xff]   ;;  %v10973_v41 = vld [vmem:[%s16281_s1 + $0x5b4] ss:$28 sps:$4 sm:$0xff]   ;;  %v10979_v45 = vld [vmem:[%s16281_s1 + $0x5ec] ss:$28 sps:$4 sm:$0xff]  }
   0xf   :  { %v10969_v38 = vld [vmem:[%s16281_s1 + $0x1f8] ss:$28 sps:$4 sm:$0xff]   ;;  %v10975_v42 = vld [vmem:[%s16281_s1 + $0x230] ss:$28 sps:$4 sm:$0xff]   ;;  %v34_v46 = vld [vmem:[%s16280_s0] sm:$0xff] }
  0x10   :  { %6843 = vmatpush1.bf16.msra.mxu1 %v10933_v14  ;;  %v10970_v39 = vld [vmem:[%s16281_s1 + $0x578] ss:$28 sps:$4 sm:$0xff]   ;;  %v10976_v43 = vld [vmem:[%s16281_s1 + $0x5b0] ss:$28 sps:$4 sm:$0xff]   ;;  %v12737_v47 = vcombine.high %v34_v46, %v34_v46  ;;  %v10981_v49 = vld [vmem:[%s16281_s1 + $0x268] ss:$28 sps:$4 sm:$0xff]   ;;  %v12806_v6 = vcombine.low %v34_v46, %v34_v46 }
  0x11   :  { %6884 = vmatpush1.bf16.msra.mxu0 %v10934_v15  ;;  %6844 = vmatprep.subr.bf16.mxu1 %v10935_v16  ;;  %v35_v48 = vld [vmem:[%s16280_s0 + $0x8] sm:$0xff]  ;;  %v10983_v52 = vld [vmem:[%s16281_s1 + $0x2a4] ss:$28 sps:$4 sm:$0xff]   ;;  %v10989_v56 = vld [vmem:[%s16281_s1 + $0x2dc] ss:$28 sps:$4 sm:$0xff]  }
  0x12   :  { %6885 = vmatprep.subr.bf16.mxu0 %v10937_v17  ;;  %v10982_v50 = vld [vmem:[%s16281_s1 + $0x5e8] ss:$28 sps:$4 sm:$0xff]   ;;  %v12748_v51 = vcombine.high %v35_v48, %v35_v48  ;;  %6868 = vmatprep.mubr.bf16.mxu1 %v12737_v47  ;;  %v10987_v54 = vld [vmem:[%s16281_s1 + $0x2a0] ss:$28 sps:$4 sm:$0xff]   ;;  %v10993_v58 = vld [vmem:[%s16281_s1 + $0x2d8] ss:$28 sps:$4 sm:$0xff]   ;;  %v12808_v7 = vcombine.low %v35_v48, %v35_v48 }
  0x13   :  { %v10985_v53 = vld [vmem:[%s16281_s1 + $0x624] ss:$28 sps:$4 sm:$0xff]   ;;  %v10991_v57 = vld [vmem:[%s16281_s1 + $0x65c] ss:$28 sps:$4 sm:$0xff]   ;;  %v10995_v60 = vld [vmem:[%s16281_s1 + $0x314] ss:$28 sps:$4 sm:$0xff]  }
  0x14   :  { %6845 = vmatpush1.bf16.msra.mxu1 %v10939_v18  ;;  %6909 = vmatprep.mubr.bf16.mxu0 %v12748_v51  ;;  %v10988_v55 = vld [vmem:[%s16281_s1 + $0x620] ss:$28 sps:$4 sm:$0xff]   ;;  %v10994_v59 = vld [vmem:[%s16281_s1 + $0x658] ss:$28 sps:$4 sm:$0xff]   ;;  %v10999_v62 = vld [vmem:[%s16281_s1 + $0x310] ss:$28 sps:$4 sm:$0xff]  }
  0x15   :  { %6886 = vmatpush1.bf16.msra.mxu0 %v10940_v19  ;;  %6846 = vmatprep.subr.bf16.mxu1 %v10941_v20  ;;  %v10997_v61 = vld [vmem:[%s16281_s1 + $0x694] ss:$28 sps:$4 sm:$0xff]   ;;  %v11001_v0 = vld [vmem:[%s16281_s1 + $0x34c] ss:$28 sps:$4 sm:$0xff]   ;;  %v11011_v4 = vld [vmem:[%s16281_s1 + $0x704] ss:$28 sps:$4 sm:$0xff]  }
  0x16   :  { %6887 = vmatprep.subr.bf16.mxu0 %v10943_v21  ;;  %v11000_v63 = vld [vmem:[%s16281_s1 + $0x690] ss:$28 sps:$4 sm:$0xff]   ;;  %v11005_v2 = vld [vmem:[%s16281_s1 + $0x348] ss:$28 sps:$4 sm:$0xff]   ;;  %v11009_v8 = vld [vmem:[%s16281_s1 + $0x700] ss:$28 sps:$4 sm:$0xff]  }
  0x17   :  { %v11003_v1 = vld [vmem:[%s16281_s1 + $0x6cc] ss:$28 sps:$4 sm:$0xff]   ;;  %v11019_v10 = vld [vmem:[%s16281_s1 + $0x73c] ss:$28 sps:$4 sm:$0xff]   ;;  %v11022_v11 = vld [vmem:[%s16281_s1 + $0x44] ss:$28 sps:$4 sm:$0xff]  }
  0x18   :  { %6847 = vmatpush1.bf16.msra.mxu1 %v10945_v22  ;;  %v11006_v3 = vld [vmem:[%s16281_s1 + $0x6c8] ss:$28 sps:$4 sm:$0xff]   ;;  %v11017_v12 = vld [vmem:[%s16281_s1 + $0x738] ss:$28 sps:$4 sm:$0xff]   ;;  %v11020_v13 = vld [vmem:[%s16281_s1 + $0x40] ss:$28 sps:$4 sm:$0xff]  }
  0x19   :  { %6888 = vmatpush1.bf16.msra.mxu0 %v10946_v23  ;;  %6848 = vmatprep.subr.bf16.mxu1 %v10947_v24  ;;  %v11014_v5 = vld [vmem:[%s16281_s1 + $0xc] ss:$28 sps:$4 sm:$0xff]   ;;  %v11025_v14 = vld [vmem:[%s16281_s1 + $0x774] ss:$28 sps:$4 sm:$0xff]   ;;  %v11028_v15 = vld [vmem:[%s16281_s1 + $0x7c] ss:$28 sps:$4 sm:$0xff]  }
  0x1a   :  { %6889 = vmatprep.subr.bf16.mxu0 %v10949_v25  ;;  %v11012_v9 = vld [vmem:[%s16281_s1 + $0x8] ss:$28 sps:$4 sm:$0xff]   ;;  %v11023_v16 = vld [vmem:[%s16281_s1 + $0x770] ss:$28 sps:$4 sm:$0xff]   ;;  %v11026_v17 = vld [vmem:[%s16281_s1 + $0x78] ss:$28 sps:$4 sm:$0xff]  }
  0x1b   :  { %v11031_v18 = vld [vmem:[%s16281_s1 + $0x7ac] ss:$28 sps:$4 sm:$0xff]   ;;  %v11034_v19 = vld [vmem:[%s16281_s1 + $0xb4] ss:$28 sps:$4 sm:$0xff]   ;;  %v11037_v22 = vld [vmem:[%s16281_s1 + $0x7e4] ss:$28 sps:$4 sm:$0xff]  }
  0x1c   :  { %6849 = vmatpush1.bf16.msra.mxu1 %v10951_v26  ;;  %v11029_v20 = vld [vmem:[%s16281_s1 + $0x7a8] ss:$28 sps:$4 sm:$0xff]   ;;  %v11032_v21 = vld [vmem:[%s16281_s1 + $0xb0] ss:$28 sps:$4 sm:$0xff]   ;;  %v11035_v24 = vld [vmem:[%s16281_s1 + $0x7e0] ss:$28 sps:$4 sm:$0xff]  }
  0x1d   :  { %6890 = vmatpush1.bf16.msra.mxu0 %v10952_v27  ;;  %6850 = vmatprep.subr.bf16.mxu1 %v10953_v28  ;;  %v11040_v23 = vld [vmem:[%s16281_s1 + $0xec] ss:$28 sps:$4 sm:$0xff]   ;;  %v11043_v26 = vld [vmem:[%s16281_s1 + $0x81c] ss:$28 sps:$4 sm:$0xff]   ;;  %v11046_v27 = vld [vmem:[%s16281_s1 + $0x124] ss:$28 sps:$4 sm:$0xff]  }
  0x1e   :  { %6891 = vmatprep.subr.bf16.mxu0 %v10955_v29  ;;  %v11038_v25 = vld [vmem:[%s16281_s1 + $0xe8] ss:$28 sps:$4 sm:$0xff]   ;;  %v11041_v28 = vld [vmem:[%s16281_s1 + $0x818] ss:$28 sps:$4 sm:$0xff]   ;;  %v11044_v29 = vld [vmem:[%s16281_s1 + $0x120] ss:$28 sps:$4 sm:$0xff]  }
  0x1f   :  { %v11065_v46 = vld [vmem:[%s16281_s1 + $0x8f8] ss:$28 sps:$4 sm:$0xff]   ;;  %v11068_v48 = vld [vmem:[%s16281_s1 + $0x200] ss:$28 sps:$4 sm:$0xff]  }
  0x20   :  { %6851 = vmatpush1.bf16.msra.mxu1 %v10957_v30  ;;  %v11049_v30 = vld [vmem:[%s16281_s1 + $0x854] ss:$28 sps:$4 sm:$0xff]  }
  0x21   :  { %6892 = vmatpush1.bf16.msra.mxu0 %v10958_v31  ;;  %6852 = vmatprep.subr.bf16.mxu1 %v10959_v32  ;;  %v11052_v31 = vld [vmem:[%s16281_s1 + $0x15c] ss:$28 sps:$4 sm:$0xff]   ;;  %v12888_v32 = vld [vmem:[%s16280_s0 + $0x10] sm:$0xff] }
  0x22   :  { %6893 = vmatprep.subr.bf16.mxu0 %v10961_v33  ;;  %v11047_v33 = vld [vmem:[%s16281_s1 + $0x850] ss:$28 sps:$4 sm:$0xff]  }
  0x24   :  { %6853 = vmatpush1.bf16.msra.mxu1 %v10963_v34  ;;  %v12895_v34 = vcombine.high %v12888_v32, %v12888_v32 }
  0x25   :  { %6894 = vmatpush1.bf16.msra.mxu0 %v10964_v35  ;;  %6854 = vmatprep.subr.bf16.mxu1 %v10965_v36  ;;  %v11050_v35 = vld [vmem:[%s16281_s1 + $0x158] ss:$28 sps:$4 sm:$0xff]   ;;  %v11055_v36 = vld [vmem:[%s16281_s1 + $0x88c] ss:$28 sps:$4 sm:$0xff]  }
  0x26   :  { %6895 = vmatprep.subr.bf16.mxu0 %v10967_v37  ;;  %v11058_v37 = vld [vmem:[%s16281_s1 + $0x194] ss:$28 sps:$4 sm:$0xff]  }
  0x28   :  { %6855 = vmatpush1.bf16.msra.mxu1 %v10969_v38  ;;  %v11053_v38 = vld [vmem:[%s16281_s1 + $0x888] ss:$28 sps:$4 sm:$0xff]  }
  0x29   :  { %6896 = vmatpush1.bf16.msra.mxu0 %v10970_v39  ;;  %6856 = vmatprep.subr.bf16.mxu1 %v10971_v40  ;;  %v11056_v39 = vld [vmem:[%s16281_s1 + $0x190] ss:$28 sps:$4 sm:$0xff]   ;;  %v11061_v40 = vld [vmem:[%s16281_s1 + $0x8c4] ss:$28 sps:$4 sm:$0xff]  }
  0x2a   :  { %6897 = vmatprep.subr.bf16.mxu0 %v10973_v41  ;;  %v11064_v41 = vld [vmem:[%s16281_s1 + $0x1cc] ss:$28 sps:$4 sm:$0xff]  }
  0x2c   :  { %6857 = vmatpush1.bf16.msra.mxu1 %v10975_v42  ;;  %v11059_v42 = vld [vmem:[%s16281_s1 + $0x8c0] ss:$28 sps:$4 sm:$0xff]  }
  0x2d   :  { %6898 = vmatpush1.bf16.msra.mxu0 %v10976_v43  ;;  %6858 = vmatprep.subr.bf16.mxu1 %v10977_v44  ;;  %v11062_v43 = vld [vmem:[%s16281_s1 + $0x1c8] ss:$28 sps:$4 sm:$0xff]   ;;  %v11067_v44 = vld [vmem:[%s16281_s1 + $0x8fc] ss:$28 sps:$4 sm:$0xff]  }
  0x2e   :  { %6899 = vmatprep.subr.bf16.mxu0 %v10979_v45  ;;  %v11070_v45 = vld [vmem:[%s16281_s1 + $0x204] ss:$28 sps:$4 sm:$0xff]  }
  0x30   :  { %6859 = vmatpush1.bf16.msra.mxu1 %v10981_v49  ;;  %v11073_v49 = vld [vmem:[%s16281_s1 + $0x934] ss:$28 sps:$4 sm:$0xff]  }
  0x31   :  { %6900 = vmatpush1.bf16.msra.mxu0 %v10982_v50  ;;  %6860 = vmatprep.subr.bf16.mxu1 %v10983_v52  ;;  %v11076_v50 = vld [vmem:[%s16281_s1 + $0x23c] ss:$28 sps:$4 sm:$0xff]   ;;  %v11071_v52 = vld [vmem:[%s16281_s1 + $0x930] ss:$28 sps:$4 sm:$0xff]  }
  0x32   :  { %6901 = vmatprep.subr.bf16.mxu0 %v10985_v53  ;;  %v11074_v53 = vld [vmem:[%s16281_s1 + $0x238] ss:$28 sps:$4 sm:$0xff]  }
  0x34   :  { %6861 = vmatpush1.bf16.msra.mxu1 %v10987_v54  ;;  %v11079_v54 = vld [vmem:[%s16281_s1 + $0x96c] ss:$28 sps:$4 sm:$0xff]  }
  0x35   :  { %6902 = vmatpush1.bf16.msra.mxu0 %v10988_v55  ;;  %6862 = vmatprep.subr.bf16.mxu1 %v10989_v56  ;;  %v11082_v55 = vld [vmem:[%s16281_s1 + $0x274] ss:$28 sps:$4 sm:$0xff]   ;;  %v11077_v56 = vld [vmem:[%s16281_s1 + $0x968] ss:$28 sps:$4 sm:$0xff]  }
  0x36   :  { %6903 = vmatprep.subr.bf16.mxu0 %v10991_v57  ;;  %v11080_v57 = vld [vmem:[%s16281_s1 + $0x270] ss:$28 sps:$4 sm:$0xff]  }
  0x38   :  { %6863 = vmatpush1.bf16.msra.mxu1 %v10993_v58  ;;  %v11085_v58 = vld [vmem:[%s16281_s1 + $0x9a4] ss:$28 sps:$4 sm:$0xff]  }
  0x39   :  { %6904 = vmatpush1.bf16.msra.mxu0 %v10994_v59  ;;  %6864 = vmatprep.subr.bf16.mxu1 %v10995_v60  ;;  %v11088_v59 = vld [vmem:[%s16281_s1 + $0x2ac] ss:$28 sps:$4 sm:$0xff]   ;;  %v11083_v60 = vld [vmem:[%s16281_s1 + $0x9a0] ss:$28 sps:$4 sm:$0xff]  }
  0x3a   :  { %6905 = vmatprep.subr.bf16.mxu0 %v10997_v61  ;;  %v11086_v61 = vld [vmem:[%s16281_s1 + $0x2a8] ss:$28 sps:$4 sm:$0xff]  }
  0x3c   :  { %6865 = vmatpush1.bf16.msra.mxu1 %v10999_v62  ;;  %v11091_v62 = vld [vmem:[%s16281_s1 + $0x9dc] ss:$28 sps:$4 sm:$0xff]  }
  0x3d   :  { %6906 = vmatpush1.bf16.msra.mxu0 %v11000_v63  ;;  %6866 = vmatprep.subr.bf16.mxu1 %v11001_v0  ;;  %v11094_v63 = vld [vmem:[%s16281_s1 + $0x2e4] ss:$28 sps:$4 sm:$0xff]   ;;  %v11089_v0 = vld [vmem:[%s16281_s1 + $0x9d8] ss:$28 sps:$4 sm:$0xff]  }
  0x3e   :  { %6907 = vmatprep.subr.bf16.mxu0 %v11003_v1  ;;  %v11092_v1 = vld [vmem:[%s16281_s1 + $0x2e0] ss:$28 sps:$4 sm:$0xff]  }
  0x40   :  { %6867 = vmatpush1.bf16.msra.mxu1 %v11005_v2  ;;  %v11097_v2 = vld [vmem:[%s16281_s1 + $0xa14] ss:$28 sps:$4 sm:$0xff]  }
  0x41   :  { %6908 = vmatpush1.bf16.msra.mxu0 %v11006_v3  ;;  %7246 = vmatprep.subr.bf16.mxu1 %v11014_v5  ;;  %v11100_v3 = vld [vmem:[%s16281_s1 + $0x31c] ss:$28 sps:$4 sm:$0xff]  }
  0x42   :  { %6918 = vmatprep.subr.bf16.mxu0 %v11011_v4  ;;  %v11095_v4 = vld [vmem:[%s16281_s1 + $0xa10] ss:$28 sps:$4 sm:$0xff]   ;;  %v11098_v5 = vld [vmem:[%s16281_s1 + $0x318] ss:$28 sps:$4 sm:$0xff]  }
  0x43   :  { %6869 = vmatmul.mubr.bf16.vlgmr.msra.gmra.mrb[0].mxu1 %v12806_v6 }
  0x44   :  { %6910 = vmatmul.mubr.bf16.vlgmr.msra.gmra.mrb[0].mxu0 %v12808_v7  ;;  %7247 = vmatpush1.bf16.msra.mxu1 %v11012_v9  ;;  %v11106_v9 = vld [vmem:[%s16281_s1 + $0x354] ss:$28 sps:$4 sm:$0xff]  }
  0x45   :  { %6919 = vmatpush1.bf16.msra.mxu0 %v11009_v8  ;;  %7248 = vmatprep.subr.bf16.mxu1 %v11022_v11  ;;  %v11103_v8 = vld [vmem:[%s16281_s1 + $0xa4c] ss:$28 sps:$4 sm:$0xff]  }
  0x46   :  { %6920 = vmatprep.subr.bf16.mxu0 %v11019_v10  ;;  %7278 = vmatprep.mubr.bf16.mxu1 %v12737_v47  ;;  %v11101_v10 = vld [vmem:[%s16281_s1 + $0xa48] ss:$28 sps:$4 sm:$0xff]   ;;  %v11104_v11 = vld [vmem:[%s16281_s1 + $0x350] ss:$28 sps:$4 sm:$0xff]  }
  0x47   :  { %6950 = vmatprep.mubr.bf16.mxu0 %v12895_v34 }
  0x48   :  { %7249 = vmatpush1.bf16.msra.mxu1 %v11020_v13  ;;  %v11113_v13 = vld [vmem:[%s16281_s1 + $0x38c] ss:$28 sps:$4 sm:$0xff]  }
  0x49   :  { %6921 = vmatpush1.bf16.msra.mxu0 %v11017_v12  ;;  %7250 = vmatprep.subr.bf16.mxu1 %v11028_v15  ;;  %v11110_v12 = vld [vmem:[%s16281_s1 + $0xa84] ss:$28 sps:$4 sm:$0xff]  }
  0x4a   :  { %6922 = vmatprep.subr.bf16.mxu0 %v11025_v14  ;;  %v11108_v14 = vld [vmem:[%s16281_s1 + $0xa80] ss:$28 sps:$4 sm:$0xff]   ;;  %v11111_v15 = vld [vmem:[%s16281_s1 + $0x388] ss:$28 sps:$4 sm:$0xff]  }
  0x4c   :  { %7251 = vmatpush1.bf16.msra.mxu1 %v11026_v17  ;;  %v11117_v17 = vld [vmem:[%s16281_s1 + $0xabc] ss:$28 sps:$4 sm:$0xff]  }
  0x4d   :  { %6923 = vmatpush1.bf16.msra.mxu0 %v11023_v16  ;;  %7252 = vmatprep.subr.bf16.mxu1 %v11034_v19  ;;  %v13023_v16 = vcombine.low %v12888_v32, %v12888_v32  ;;  %v13034_v19 = vld [vmem:[%s16280_s0 + $0x18] sm:$0xff]  ;;  %v11138_v32 = vld [vmem:[%s16281_s1 + $0x46c] ss:$28 sps:$4 sm:$0xff]  }
  0x4e   :  { %6924 = vmatprep.subr.bf16.mxu0 %v11031_v18  ;;  %v11120_v18 = vld [vmem:[%s16281_s1 + $0x3c4] ss:$28 sps:$4 sm:$0xff]  }
  0x50   :  { %7253 = vmatpush1.bf16.msra.mxu1 %v11032_v21  ;;  %v11115_v21 = vld [vmem:[%s16281_s1 + $0xab8] ss:$28 sps:$4 sm:$0xff]  }
  0x51   :  { %6925 = vmatpush1.bf16.msra.mxu0 %v11029_v20  ;;  %7254 = vmatprep.subr.bf16.mxu1 %v11040_v23  ;;  %v13038_v20 = vcombine.high %v13034_v19, %v13034_v19  ;;  %v11123_v23 = vld [vmem:[%s16281_s1 + $0xaf4] ss:$28 sps:$4 sm:$0xff]  }
  0x52   :  { %6926 = vmatprep.subr.bf16.mxu0 %v11037_v22  ;;  %v11118_v22 = vld [vmem:[%s16281_s1 + $0x3c0] ss:$28 sps:$4 sm:$0xff]  }
  0x54   :  { %7255 = vmatpush1.bf16.msra.mxu1 %v11038_v25  ;;  %v11121_v25 = vld [vmem:[%s16281_s1 + $0xaf0] ss:$28 sps:$4 sm:$0xff]  }
  0x55   :  { %6927 = vmatpush1.bf16.msra.mxu0 %v11035_v24  ;;  %7256 = vmatprep.subr.bf16.mxu1 %v11046_v27  ;;  %v11126_v24 = vld [vmem:[%s16281_s1 + $0x3fc] ss:$28 sps:$4 sm:$0xff]   ;;  %v11129_v27 = vld [vmem:[%s16281_s1 + $0xb2c] ss:$28 sps:$4 sm:$0xff]  }
  0x56   :  { %6928 = vmatprep.subr.bf16.mxu0 %v11043_v26  ;;  %v11124_v26 = vld [vmem:[%s16281_s1 + $0x3f8] ss:$28 sps:$4 sm:$0xff]  }
  0x58   :  { %7257 = vmatpush1.bf16.msra.mxu1 %v11044_v29  ;;  %v11127_v29 = vld [vmem:[%s16281_s1 + $0xb28] ss:$28 sps:$4 sm:$0xff]  }
  0x59   :  { %6929 = vmatpush1.bf16.msra.mxu0 %v11041_v28  ;;  %7258 = vmatprep.subr.bf16.mxu1 %v11052_v31  ;;  %v11132_v28 = vld [vmem:[%s16281_s1 + $0x434] ss:$28 sps:$4 sm:$0xff]   ;;  %v11135_v31 = vld [vmem:[%s16281_s1 + $0xb64] ss:$28 sps:$4 sm:$0xff]  }
  0x5a   :  { %6930 = vmatprep.subr.bf16.mxu0 %v11049_v30  ;;  %v11130_v30 = vld [vmem:[%s16281_s1 + $0x430] ss:$28 sps:$4 sm:$0xff]  }
  0x5c   :  { %7259 = vmatpush1.bf16.msra.mxu1 %v11050_v35  ;;  %v11136_v35 = vld [vmem:[%s16281_s1 + $0x468] ss:$28 sps:$4 sm:$0xff]  }
  0x5d   :  { %6931 = vmatpush1.bf16.msra.mxu0 %v11047_v33  ;;  %7260 = vmatprep.subr.bf16.mxu1 %v11058_v37  ;;  %v11133_v33 = vld [vmem:[%s16281_s1 + $0xb60] ss:$28 sps:$4 sm:$0xff]  }
  0x5e   :  { %6932 = vmatprep.subr.bf16.mxu0 %v11055_v36  ;;  %v11141_v36 = vld [vmem:[%s16281_s1 + $0xb9c] ss:$28 sps:$4 sm:$0xff]   ;;  %v11144_v37 = vld [vmem:[%s16281_s1 + $0x4a4] ss:$28 sps:$4 sm:$0xff]  }
  0x60   :  { %7261 = vmatpush1.bf16.msra.mxu1 %v11056_v39  ;;  %v11142_v39 = vld [vmem:[%s16281_s1 + $0x4a0] ss:$28 sps:$4 sm:$0xff]  }
  0x61   :  { %6933 = vmatpush1.bf16.msra.mxu0 %v11053_v38  ;;  %7262 = vmatprep.subr.bf16.mxu1 %v11064_v41  ;;  %v11139_v38 = vld [vmem:[%s16281_s1 + $0xb98] ss:$28 sps:$4 sm:$0xff]  }
  0x62   :  { %6934 = vmatprep.subr.bf16.mxu0 %v11061_v40  ;;  %v11147_v40 = vld [vmem:[%s16281_s1 + $0xbd4] ss:$28 sps:$4 sm:$0xff]   ;;  %v11150_v41 = vld [vmem:[%s16281_s1 + $0x4dc] ss:$28 sps:$4 sm:$0xff]  }
  0x64   :  { %7263 = vmatpush1.bf16.msra.mxu1 %v11062_v43  ;;  %v11148_v43 = vld [vmem:[%s16281_s1 + $0x4d8] ss:$28 sps:$4 sm:$0xff]  }
  0x65   :  { %6935 = vmatpush1.bf16.msra.mxu0 %v11059_v42  ;;  %7264 = vmatprep.subr.bf16.mxu1 %v11070_v45  ;;  %v11145_v42 = vld [vmem:[%s16281_s1 + $0xbd0] ss:$28 sps:$4 sm:$0xff]  }
  0x66   :  { %6936 = vmatprep.subr.bf16.mxu0 %v11067_v44  ;;  %v11153_v44 = vld [vmem:[%s16281_s1 + $0xc0c] ss:$28 sps:$4 sm:$0xff]   ;;  %v11156_v45 = vld [vmem:[%s16281_s1 + $0x514] ss:$28 sps:$4 sm:$0xff]  }
  0x68   :  { %7265 = vmatpush1.bf16.msra.mxu1 %v11068_v48  ;;  %v11154_v48 = vld [vmem:[%s16281_s1 + $0x510] ss:$28 sps:$4 sm:$0xff]  }
  0x69   :  { %6937 = vmatpush1.bf16.msra.mxu0 %v11065_v46  ;;  %7266 = vmatprep.subr.bf16.mxu1 %v11076_v50  ;;  %v11151_v46 = vld [vmem:[%s16281_s1 + $0xc08] ss:$28 sps:$4 sm:$0xff]  }
  0x6a   :  { %6938 = vmatprep.subr.bf16.mxu0 %v11073_v49  ;;  %v11159_v49 = vld [vmem:[%s16281_s1 + $0xc44] ss:$28 sps:$4 sm:$0xff]   ;;  %v11162_v50 = vld [vmem:[%s16281_s1 + $0x54c] ss:$28 sps:$4 sm:$0xff]  }
  0x6c   :  { %7267 = vmatpush1.bf16.msra.mxu1 %v11074_v53  ;;  %v11160_v53 = vld [vmem:[%s16281_s1 + $0x548] ss:$28 sps:$4 sm:$0xff]  }
  0x6d   :  { %6939 = vmatpush1.bf16.msra.mxu0 %v11071_v52  ;;  %7268 = vmatprep.subr.bf16.mxu1 %v11082_v55  ;;  %v11157_v52 = vld [vmem:[%s16281_s1 + $0xc40] ss:$28 sps:$4 sm:$0xff]  }
  0x6e   :  { %6940 = vmatprep.subr.bf16.mxu0 %v11079_v54  ;;  %v11165_v54 = vld [vmem:[%s16281_s1 + $0xc7c] ss:$28 sps:$4 sm:$0xff]   ;;  %v11168_v55 = vld [vmem:[%s16281_s1 + $0x584] ss:$28 sps:$4 sm:$0xff]  }
  0x70   :  { %7269 = vmatpush1.bf16.msra.mxu1 %v11080_v57  ;;  %v11166_v57 = vld [vmem:[%s16281_s1 + $0x580] ss:$28 sps:$4 sm:$0xff]  }
  0x71   :  { %6941 = vmatpush1.bf16.msra.mxu0 %v11077_v56  ;;  %7270 = vmatprep.subr.bf16.mxu1 %v11088_v59  ;;  %v11163_v56 = vld [vmem:[%s16281_s1 + $0xc78] ss:$28 sps:$4 sm:$0xff]  }
  0x72   :  { %6942 = vmatprep.subr.bf16.mxu0 %v11085_v58  ;;  %v11171_v58 = vld [vmem:[%s16281_s1 + $0xcb4] ss:$28 sps:$4 sm:$0xff]   ;;  %v11174_v59 = vld [vmem:[%s16281_s1 + $0x5bc] ss:$28 sps:$4 sm:$0xff]  }
  0x74   :  { %7271 = vmatpush1.bf16.msra.mxu1 %v11086_v61  ;;  %v11172_v61 = vld [vmem:[%s16281_s1 + $0x5b8] ss:$28 sps:$4 sm:$0xff]  }
  0x75   :  { %6943 = vmatpush1.bf16.msra.mxu0 %v11083_v60  ;;  %7272 = vmatprep.subr.bf16.mxu1 %v11094_v63  ;;  %v11169_v60 = vld [vmem:[%s16281_s1 + $0xcb0] ss:$28 sps:$4 sm:$0xff]  }
  0x76   :  { %6944 = vmatprep.subr.bf16.mxu0 %v11091_v62  ;;  %v11177_v62 = vld [vmem:[%s16281_s1 + $0xcec] ss:$28 sps:$4 sm:$0xff]   ;;  %v11180_v63 = vld [vmem:[%s16281_s1 + $0x5f4] ss:$28 sps:$4 sm:$0xff]  }
  0x78   :  { %7273 = vmatpush1.bf16.msra.mxu1 %v11092_v1  ;;  %v11178_v1 = vld [vmem:[%s16281_s1 + $0x5f0] ss:$28 sps:$4 sm:$0xff]  }
  0x79   :  { %6945 = vmatpush1.bf16.msra.mxu0 %v11089_v0  ;;  %7274 = vmatprep.subr.bf16.mxu1 %v11100_v3  ;;  %v11175_v0 = vld [vmem:[%s16281_s1 + $0xce8] ss:$28 sps:$4 sm:$0xff]  }
  0x7a   :  { %6946 = vmatprep.subr.bf16.mxu0 %v11097_v2  ;;  %v11183_v2 = vld [vmem:[%s16281_s1 + $0xd24] ss:$28 sps:$4 sm:$0xff]   ;;  %v11186_v3 = vld [vmem:[%s16281_s1 + $0x62c] ss:$28 sps:$4 sm:$0xff]  }
  0x7c   :  { %7275 = vmatpush1.bf16.msra.mxu1 %v11098_v5  ;;  %v11184_v5 = vld [vmem:[%s16281_s1 + $0x628] ss:$28 sps:$4 sm:$0xff]  }
  0x7d   :  { %6947 = vmatpush1.bf16.msra.mxu0 %v11095_v4  ;;  %7276 = vmatprep.subr.bf16.mxu1 %v11106_v9  ;;  %v11181_v4 = vld [vmem:[%s16281_s1 + $0xd20] ss:$28 sps:$4 sm:$0xff]  }
  0x7e   :  { %6948 = vmatprep.subr.bf16.mxu0 %v11103_v8  ;;  %v11189_v8 = vld [vmem:[%s16281_s1 + $0xd5c] ss:$28 sps:$4 sm:$0xff]   ;;  %v11192_v9 = vld [vmem:[%s16281_s1 + $0x664] ss:$28 sps:$4 sm:$0xff]  }
  0x80   :  { %7277 = vmatpush1.bf16.msra.mxu1 %v11104_v11  ;;  %v11190_v11 = vld [vmem:[%s16281_s1 + $0x660] ss:$28 sps:$4 sm:$0xff]  }
  0x81   :  { %6949 = vmatpush1.bf16.msra.mxu0 %v11101_v10  ;;  %7287 = vmatprep.subr.bf16.mxu1 %v11113_v13  ;;  %v11187_v10 = vld [vmem:[%s16281_s1 + $0xd58] ss:$28 sps:$4 sm:$0xff]  }
  0x82   :  { %6959 = vmatprep.subr.bf16.mxu0 %v11110_v12  ;;  %v11195_v12 = vld [vmem:[%s16281_s1 + $0xd94] ss:$28 sps:$4 sm:$0xff]   ;;  %v11198_v13 = vld [vmem:[%s16281_s1 + $0x69c] ss:$28 sps:$4 sm:$0xff]  }
  0x83   :  { %7279 = vmatmul.mubr.bf16.vlgmr.msra.gmra.mrb[4].mxu1 %v12806_v6 }
  0x84   :  { %6951 = vmatmul.mubr.bf16.vlgmr.msra.gmra.mrb[0].mxu0 %v13023_v16  ;;  %7288 = vmatpush1.bf16.msra.mxu1 %v11111_v15  ;;  %v11196_v15 = vld [vmem:[%s16281_s1 + $0x698] ss:$28 sps:$4 sm:$0xff]  }
  0x85   :  { %6960 = vmatpush1.bf16.msra.mxu0 %v11108_v14  ;;  %7289 = vmatprep.subr.bf16.mxu1 %v11120_v18  ;;  %v11193_v14 = vld [vmem:[%s16281_s1 + $0xd90] ss:$28 sps:$4 sm:$0xff]  }
  0x86   :  { %6961 = vmatprep.subr.bf16.mxu0 %v11117_v17  ;;  %6991 = vmatprep.mubr.bf16.mxu0 %v13038_v20  ;;  %v11201_v17 = vld [vmem:[%s16281_s1 + $0xdcc] ss:$28 sps:$4 sm:$0xff]   ;;  %v11204_v18 = vld [vmem:[%s16281_s1 + $0x6d4] ss:$28 sps:$4 sm:$0xff]  }
  0x87   :  { %7319 = vmatprep.mubr.bf16.mxu1 %v12748_v51 }
  0x88   :  { %7290 = vmatpush1.bf16.msra.mxu1 %v11118_v22  ;;  %v11202_v22 = vld [vmem:[%s16281_s1 + $0x6d0] ss:$28 sps:$4 sm:$0xff]  }
  0x89   :  { %6962 = vmatpush1.bf16.msra.mxu0 %v11115_v21  ;;  %7291 = vmatprep.subr.bf16.mxu1 %v11126_v24  ;;  %v11199_v21 = vld [vmem:[%s16281_s1 + $0xdc8] ss:$28 sps:$4 sm:$0xff]  }
  0x8a   :  { %6963 = vmatprep.subr.bf16.mxu0 %v11123_v23  ;;  %v11208_v23 = vld [vmem:[%s16281_s1 + $0xe04] ss:$28 sps:$4 sm:$0xff]   ;;  %v11211_v24 = vld [vmem:[%s16281_s1 + $0x70c] ss:$28 sps:$4 sm:$0xff]  }
  0x8c   :  { %7292 = vmatpush1.bf16.msra.mxu1 %v11124_v26  ;;  %v13229_v26 = vcombine.low %v13034_v19, %v13034_v19  ;;  %v11218_v19 = vld [vmem:[%s16281_s1 + $0x744] ss:$28 sps:$4 sm:$0xff]  }
  0x8d   :  { %6964 = vmatpush1.bf16.msra.mxu0 %v11121_v25  ;;  %7293 = vmatprep.subr.bf16.mxu1 %v11132_v28  ;;  %v11206_v25 = vld [vmem:[%s16281_s1 + $0xe00] ss:$28 sps:$4 sm:$0xff]   ;;  %v11209_v28 = vld [vmem:[%s16281_s1 + $0x708] ss:$28 sps:$4 sm:$0xff]  }
  0x8e   :  { %6965 = vmatprep.subr.bf16.mxu0 %v11129_v27  ;;  %v13234_v27 = vld [vmem:[%s16280_s0 + $0x20] sm:$0xff] }
  0x90   :  { %7294 = vmatpush1.bf16.msra.mxu1 %v11130_v30  ;;  %v13247_v30 = vcombine.high %v13234_v27, %v13234_v27 }
  0x91   :  { %6966 = vmatpush1.bf16.msra.mxu0 %v11127_v29  ;;  %7295 = vmatprep.subr.bf16.mxu1 %v11138_v32  ;;  %v11215_v29 = vld [vmem:[%s16281_s1 + $0xe3c] ss:$28 sps:$4 sm:$0xff]  }
  0x92   :  { %6967 = vmatprep.subr.bf16.mxu0 %v11135_v31  ;;  %v11213_v31 = vld [vmem:[%s16281_s1 + $0xe38] ss:$28 sps:$4 sm:$0xff]   ;;  %v11216_v32 = vld [vmem:[%s16281_s1 + $0x740] ss:$28 sps:$4 sm:$0xff]  }
  0x94   :  { %7296 = vmatpush1.bf16.msra.mxu1 %v11136_v35  ;;  %v11224_v35 = vld [vmem:[%s16281_s1 + $0x77c] ss:$28 sps:$4 sm:$0xff]  }
  0x95   :  { %6968 = vmatpush1.bf16.msra.mxu0 %v11133_v33  ;;  %7297 = vmatprep.subr.bf16.mxu1 %v11144_v37  ;;  %v11221_v33 = vld [vmem:[%s16281_s1 + $0xe74] ss:$28 sps:$4 sm:$0xff]  }
  0x96   :  { %6969 = vmatprep.subr.bf16.mxu0 %v11141_v36  ;;  %v11219_v36 = vld [vmem:[%s16281_s1 + $0xe70] ss:$28 sps:$4 sm:$0xff]   ;;  %v11222_v37 = vld [vmem:[%s16281_s1 + $0x778] ss:$28 sps:$4 sm:$0xff]  }
  0x98   :  { %7298 = vmatpush1.bf16.msra.mxu1 %v11142_v39  ;;  %v11230_v39 = vld [vmem:[%s16281_s1 + $0x7b4] ss:$28 sps:$4 sm:$0xff]  }
  0x99   :  { %6970 = vmatpush1.bf16.msra.mxu0 %v11139_v38  ;;  %7299 = vmatprep.subr.bf16.mxu1 %v11150_v41  ;;  %v11227_v38 = vld [vmem:[%s16281_s1 + $0xeac] ss:$28 sps:$4 sm:$0xff]  }
  0x9a   :  { %6971 = vmatprep.subr.bf16.mxu0 %v11147_v40  ;;  %v11225_v40 = vld [vmem:[%s16281_s1 + $0xea8] ss:$28 sps:$4 sm:$0xff]   ;;  %v11228_v41 = vld [vmem:[%s16281_s1 + $0x7b0] ss:$28 sps:$4 sm:$0xff]  }
  0x9c   :  { %7300 = vmatpush1.bf16.msra.mxu1 %v11148_v43  ;;  %v11236_v43 = vld [vmem:[%s16281_s1 + $0x7ec] ss:$28 sps:$4 sm:$0xff]  }
  0x9d   :  { %6972 = vmatpush1.bf16.msra.mxu0 %v11145_v42  ;;  %7301 = vmatprep.subr.bf16.mxu1 %v11156_v45  ;;  %v11233_v42 = vld [vmem:[%s16281_s1 + $0xee4] ss:$28 sps:$4 sm:$0xff]  }
  0x9e   :  { %6973 = vmatprep.subr.bf16.mxu0 %v11153_v44  ;;  %v11231_v44 = vld [vmem:[%s16281_s1 + $0xee0] ss:$28 sps:$4 sm:$0xff]   ;;  %v11234_v45 = vld [vmem:[%s16281_s1 + $0x7e8] ss:$28 sps:$4 sm:$0xff]  }
  0xa0   :  { %7302 = vmatpush1.bf16.msra.mxu1 %v11154_v48  ;;  %v11242_v48 = vld [vmem:[%s16281_s1 + $0x824] ss:$28 sps:$4 sm:$0xff]  }
  0xa1   :  { %6974 = vmatpush1.bf16.msra.mxu0 %v11151_v46  ;;  %7303 = vmatprep.subr.bf16.mxu1 %v11162_v50  ;;  %v11239_v46 = vld [vmem:[%s16281_s1 + $0xf1c] ss:$28 sps:$4 sm:$0xff]  }
  0xa2   :  { %6975 = vmatprep.subr.bf16.mxu0 %v11159_v49  ;;  %v11237_v49 = vld [vmem:[%s16281_s1 + $0xf18] ss:$28 sps:$4 sm:$0xff]   ;;  %v11240_v50 = vld [vmem:[%s16281_s1 + $0x820] ss:$28 sps:$4 sm:$0xff]  }
  0xa4   :  { %7304 = vmatpush1.bf16.msra.mxu1 %v11160_v53  ;;  %v11248_v53 = vld [vmem:[%s16281_s1 + $0x85c] ss:$28 sps:$4 sm:$0xff]  }
  0xa5   :  { %6976 = vmatpush1.bf16.msra.mxu0 %v11157_v52  ;;  %7305 = vmatprep.subr.bf16.mxu1 %v11168_v55  ;;  %v11245_v52 = vld [vmem:[%s16281_s1 + $0xf54] ss:$28 sps:$4 sm:$0xff]  }
  0xa6   :  { %6977 = vmatprep.subr.bf16.mxu0 %v11165_v54  ;;  %v11243_v54 = vld [vmem:[%s16281_s1 + $0xf50] ss:$28 sps:$4 sm:$0xff]   ;;  %v11246_v55 = vld [vmem:[%s16281_s1 + $0x858] ss:$28 sps:$4 sm:$0xff]  }
  0xa8   :  { %7306 = vmatpush1.bf16.msra.mxu1 %v11166_v57  ;;  %v11254_v57 = vld [vmem:[%s16281_s1 + $0x894] ss:$28 sps:$4 sm:$0xff]  }
  0xa9   :  { %6978 = vmatpush1.bf16.msra.mxu0 %v11163_v56  ;;  %7307 = vmatprep.subr.bf16.mxu1 %v11174_v59  ;;  %v11251_v56 = vld [vmem:[%s16281_s1 + $0xf8c] ss:$28 sps:$4 sm:$0xff]  }
  0xaa   :  { %6979 = vmatprep.subr.bf16.mxu0 %v11171_v58  ;;  %v11249_v58 = vld [vmem:[%s16281_s1 + $0xf88] ss:$28 sps:$4 sm:$0xff]   ;;  %v11252_v59 = vld [vmem:[%s16281_s1 + $0x890] ss:$28 sps:$4 sm:$0xff]  }
  0xac   :  { %7308 = vmatpush1.bf16.msra.mxu1 %v11172_v61  ;;  %v11260_v61 = vld [vmem:[%s16281_s1 + $0x8cc] ss:$28 sps:$4 sm:$0xff]  }
  0xad   :  { %6980 = vmatpush1.bf16.msra.mxu0 %v11169_v60  ;;  %7309 = vmatprep.subr.bf16.mxu1 %v11180_v63  ;;  %v11257_v60 = vld [vmem:[%s16281_s1 + $0xfc4] ss:$28 sps:$4 sm:$0xff]  }
  0xae   :  { %6981 = vmatprep.subr.bf16.mxu0 %v11177_v62  ;;  %v11255_v62 = vld [vmem:[%s16281_s1 + $0xfc0] ss:$28 sps:$4 sm:$0xff]   ;;  %v11258_v63 = vld [vmem:[%s16281_s1 + $0x8c8] ss:$28 sps:$4 sm:$0xff]  }
  0xb0   :  { %7310 = vmatpush1.bf16.msra.mxu1 %v11178_v1  ;;  %v11266_v1 = vld [vmem:[%s16281_s1 + $0x904] ss:$28 sps:$4 sm:$0xff]  }
  0xb1   :  { %6982 = vmatpush1.bf16.msra.mxu0 %v11175_v0  ;;  %7311 = vmatprep.subr.bf16.mxu1 %v11186_v3  ;;  %v11263_v0 = vld [vmem:[%s16281_s1 + $0xffc] ss:$28 sps:$4 sm:$0xff]  }
  0xb2   :  { %6983 = vmatprep.subr.bf16.mxu0 %v11183_v2  ;;  %v11261_v2 = vld [vmem:[%s16281_s1 + $0xff8] ss:$28 sps:$4 sm:$0xff]   ;;  %v11264_v3 = vld [vmem:[%s16281_s1 + $0x900] ss:$28 sps:$4 sm:$0xff]  }
  0xb4   :  { %7312 = vmatpush1.bf16.msra.mxu1 %v11184_v5  ;;  %v11272_v5 = vld [vmem:[%s16281_s1 + $0x93c] ss:$28 sps:$4 sm:$0xff]  }
  0xb5   :  { %6984 = vmatpush1.bf16.msra.mxu0 %v11181_v4  ;;  %7313 = vmatprep.subr.bf16.mxu1 %v11192_v9  ;;  %v11269_v4 = vld [vmem:[%s16281_s1 + $0x1034] ss:$28 sps:$4 sm:$0xff]  }
  0xb6   :  { %6985 = vmatprep.subr.bf16.mxu0 %v11189_v8  ;;  %v11267_v8 = vld [vmem:[%s16281_s1 + $0x1030] ss:$28 sps:$4 sm:$0xff]   ;;  %v11270_v9 = vld [vmem:[%s16281_s1 + $0x938] ss:$28 sps:$4 sm:$0xff]  }
  0xb8   :  { %7314 = vmatpush1.bf16.msra.mxu1 %v11190_v11  ;;  %v11278_v11 = vld [vmem:[%s16281_s1 + $0x974] ss:$28 sps:$4 sm:$0xff]  }
  0xb9   :  { %6986 = vmatpush1.bf16.msra.mxu0 %v11187_v10  ;;  %7315 = vmatprep.subr.bf16.mxu1 %v11198_v13  ;;  %v11275_v10 = vld [vmem:[%s16281_s1 + $0x106c] ss:$28 sps:$4 sm:$0xff]  }
  0xba   :  { %6987 = vmatprep.subr.bf16.mxu0 %v11195_v12  ;;  %v11273_v12 = vld [vmem:[%s16281_s1 + $0x1068] ss:$28 sps:$4 sm:$0xff]   ;;  %v11276_v13 = vld [vmem:[%s16281_s1 + $0x970] ss:$28 sps:$4 sm:$0xff]  }
  0xbc   :  { %7316 = vmatpush1.bf16.msra.mxu1 %v11196_v15  ;;  %v11284_v15 = vld [vmem:[%s16281_s1 + $0x9ac] ss:$28 sps:$4 sm:$0xff]  }
  0xbd   :  { %6988 = vmatpush1.bf16.msra.mxu0 %v11193_v14  ;;  %7317 = vmatprep.subr.bf16.mxu1 %v11204_v18  ;;  %v11281_v14 = vld [vmem:[%s16281_s1 + $0x10a4] ss:$28 sps:$4 sm:$0xff]  }
  0xbe   :  { %6989 = vmatprep.subr.bf16.mxu0 %v11201_v17  ;;  %v11279_v17 = vld [vmem:[%s16281_s1 + $0x10a0] ss:$28 sps:$4 sm:$0xff]   ;;  %v11282_v18 = vld [vmem:[%s16281_s1 + $0x9a8] ss:$28 sps:$4 sm:$0xff]  }
  0xc0   :  { %7318 = vmatpush1.bf16.msra.mxu1 %v11202_v22  ;;  %v11290_v22 = vld [vmem:[%s16281_s1 + $0x9e4] ss:$28 sps:$4 sm:$0xff]  }
  0xc1   :  { %6990 = vmatpush1.bf16.msra.mxu0 %v11199_v21  ;;  %7328 = vmatprep.subr.bf16.mxu1 %v11211_v24  ;;  %v11287_v21 = vld [vmem:[%s16281_s1 + $0x10dc] ss:$28 sps:$4 sm:$0xff]  }
  0xc2   :  { %7000 = vmatprep.subr.bf16.mxu0 %v11208_v23  ;;  %v11285_v23 = vld [vmem:[%s16281_s1 + $0x10d8] ss:$28 sps:$4 sm:$0xff]   ;;  %v11288_v24 = vld [vmem:[%s16281_s1 + $0x9e0] ss:$28 sps:$4 sm:$0xff]  }
  0xc3   :  { %7320 = vmatmul.mubr.bf16.vlgmr.msra.gmra.mrb[4].mxu1 %v12808_v7 }
  0xc4   :  { %6992 = vmatmul.mubr.bf16.vlgmr.msra.gmra.mrb[0].mxu0 %v13229_v26  ;;  %7329 = vmatpush1.bf16.msra.mxu1 %v11209_v28  ;;  %v11296_v28 = vld [vmem:[%s16281_s1 + $0xa1c] ss:$28 sps:$4 sm:$0xff]  }
  0xc5   :  { %7001 = vmatpush1.bf16.msra.mxu0 %v11206_v25  ;;  %7330 = vmatprep.subr.bf16.mxu1 %v11218_v19  ;;  %v11293_v25 = vld [vmem:[%s16281_s1 + $0x1114] ss:$28 sps:$4 sm:$0xff]  }
  0xc6   :  { %7002 = vmatprep.subr.bf16.mxu0 %v11215_v29  ;;  %7032 = vmatprep.mubr.bf16.mxu0 %v13247_v30  ;;  %v11291_v29 = vld [vmem:[%s16281_s1 + $0x1110] ss:$28 sps:$4 sm:$0xff]   ;;  %v11294_v19 = vld [vmem:[%s16281_s1 + $0xa18] ss:$28 sps:$4 sm:$0xff]  }
  0xc7   :  { %7360 = vmatprep.mubr.bf16.mxu1 %v12895_v34 }
  0xc8   :  { %7331 = vmatpush1.bf16.msra.mxu1 %v11216_v32  ;;  %v11302_v32 = vld [vmem:[%s16281_s1 + $0xa54] ss:$28 sps:$4 sm:$0xff]  }
  0xc9   :  { %7003 = vmatpush1.bf16.msra.mxu0 %v11213_v31  ;;  %7332 = vmatprep.subr.bf16.mxu1 %v11224_v35  ;;  %v11299_v31 = vld [vmem:[%s16281_s1 + $0x114c] ss:$28 sps:$4 sm:$0xff]  }
  0xca   :  { %7004 = vmatprep.subr.bf16.mxu0 %v11221_v33  ;;  %v11297_v33 = vld [vmem:[%s16281_s1 + $0x1148] ss:$28 sps:$4 sm:$0xff]   ;;  %v11300_v35 = vld [vmem:[%s16281_s1 + $0xa50] ss:$28 sps:$4 sm:$0xff]  }
  0xcc   :  { %7333 = vmatpush1.bf16.msra.mxu1 %v11222_v37  ;;  %v11309_v37 = vld [vmem:[%s16281_s1 + $0xa8c] ss:$28 sps:$4 sm:$0xff]  }
  0xcd   :  { %7005 = vmatpush1.bf16.msra.mxu0 %v11219_v36  ;;  %7334 = vmatprep.subr.bf16.mxu1 %v11230_v39  ;;  %v11306_v36 = vld [vmem:[%s16281_s1 + $0x1184] ss:$28 sps:$4 sm:$0xff]   ;;  %v13440_v39 = vld [vmem:[%s16280_s0 + $0x28] sm:$0xff] }
  0xce   :  { %7006 = vmatprep.subr.bf16.mxu0 %v11227_v38  ;;  %v13435_v38 = vcombine.low %v13234_v27, %v13234_v27  ;;  %v11313_v27 = vld [vmem:[%s16281_s1 + $0x11bc] ss:$28 sps:$4 sm:$0xff]  }
  0xd0   :  { %7335 = vmatpush1.bf16.msra.mxu1 %v11228_v41  ;;  %v11307_v41 = vld [vmem:[%s16281_s1 + $0xa88] ss:$28 sps:$4 sm:$0xff]  }
  0xd1   :  { %7007 = vmatpush1.bf16.msra.mxu0 %v11225_v40  ;;  %7336 = vmatprep.subr.bf16.mxu1 %v11236_v43  ;;  %v11304_v40 = vld [vmem:[%s16281_s1 + $0x1180] ss:$28 sps:$4 sm:$0xff]   ;;  %v13456_v43 = vcombine.high %v13440_v39, %v13440_v39 }
  0xd2   :  { %7008 = vmatprep.subr.bf16.mxu0 %v11233_v42  ;;  %v11316_v42 = vld [vmem:[%s16281_s1 + $0xac4] ss:$28 sps:$4 sm:$0xff]  }
  0xd4   :  { %7337 = vmatpush1.bf16.msra.mxu1 %v11234_v45  ;;  %v11314_v45 = vld [vmem:[%s16281_s1 + $0xac0] ss:$28 sps:$4 sm:$0xff]  }
  0xd5   :  { %7009 = vmatpush1.bf16.msra.mxu0 %v11231_v44  ;;  %7338 = vmatprep.subr.bf16.mxu1 %v11242_v48  ;;  %v11311_v44 = vld [vmem:[%s16281_s1 + $0x11b8] ss:$28 sps:$4 sm:$0xff]  }
  0xd6   :  { %7010 = vmatprep.subr.bf16.mxu0 %v11239_v46  ;;  %v11319_v46 = vld [vmem:[%s16281_s1 + $0x11f4] ss:$28 sps:$4 sm:$0xff]   ;;  %v11322_v48 = vld [vmem:[%s16281_s1 + $0xafc] ss:$28 sps:$4 sm:$0xff]  }
  0xd8   :  { %7339 = vmatpush1.bf16.msra.mxu1 %v11240_v50  ;;  %v11320_v50 = vld [vmem:[%s16281_s1 + $0xaf8] ss:$28 sps:$4 sm:$0xff]  }
  0xd9   :  { %7011 = vmatpush1.bf16.msra.mxu0 %v11237_v49  ;;  %7340 = vmatprep.subr.bf16.mxu1 %v11248_v53  ;;  %v11317_v49 = vld [vmem:[%s16281_s1 + $0x11f0] ss:$28 sps:$4 sm:$0xff]  }
  0xda   :  { %7012 = vmatprep.subr.bf16.mxu0 %v11245_v52  ;;  %v11325_v52 = vld [vmem:[%s16281_s1 + $0x122c] ss:$28 sps:$4 sm:$0xff]   ;;  %v11328_v53 = vld [vmem:[%s16281_s1 + $0xb34] ss:$28 sps:$4 sm:$0xff]  }
  0xdc   :  { %7341 = vmatpush1.bf16.msra.mxu1 %v11246_v55  ;;  %v11326_v55 = vld [vmem:[%s16281_s1 + $0xb30] ss:$28 sps:$4 sm:$0xff]  }
  0xdd   :  { %7013 = vmatpush1.bf16.msra.mxu0 %v11243_v54  ;;  %7342 = vmatprep.subr.bf16.mxu1 %v11254_v57  ;;  %v11323_v54 = vld [vmem:[%s16281_s1 + $0x1228] ss:$28 sps:$4 sm:$0xff]  }
  0xde   :  { %7014 = vmatprep.subr.bf16.mxu0 %v11251_v56  ;;  %v11331_v56 = vld [vmem:[%s16281_s1 + $0x1264] ss:$28 sps:$4 sm:$0xff]   ;;  %v11334_v57 = vld [vmem:[%s16281_s1 + $0xb6c] ss:$28 sps:$4 sm:$0xff]  }
  0xe0   :  { %7343 = vmatpush1.bf16.msra.mxu1 %v11252_v59  ;;  %v11332_v59 = vld [vmem:[%s16281_s1 + $0xb68] ss:$28 sps:$4 sm:$0xff]  }
  0xe1   :  { %7015 = vmatpush1.bf16.msra.mxu0 %v11249_v58  ;;  %7344 = vmatprep.subr.bf16.mxu1 %v11260_v61  ;;  %v11329_v58 = vld [vmem:[%s16281_s1 + $0x1260] ss:$28 sps:$4 sm:$0xff]  }
  0xe2   :  { %7016 = vmatprep.subr.bf16.mxu0 %v11257_v60  ;;  %v11337_v60 = vld [vmem:[%s16281_s1 + $0x129c] ss:$28 sps:$4 sm:$0xff]   ;;  %v11340_v61 = vld [vmem:[%s16281_s1 + $0xba4] ss:$28 sps:$4 sm:$0xff]  }
  0xe4   :  { %7345 = vmatpush1.bf16.msra.mxu1 %v11258_v63  ;;  %v11338_v63 = vld [vmem:[%s16281_s1 + $0xba0] ss:$28 sps:$4 sm:$0xff]  }
  0xe5   :  { %7017 = vmatpush1.bf16.msra.mxu0 %v11255_v62  ;;  %7346 = vmatprep.subr.bf16.mxu1 %v11266_v1  ;;  %v11335_v62 = vld [vmem:[%s16281_s1 + $0x1298] ss:$28 sps:$4 sm:$0xff]  }
  0xe6   :  { %7018 = vmatprep.subr.bf16.mxu0 %v11263_v0  ;;  %v11343_v0 = vld [vmem:[%s16281_s1 + $0x12d4] ss:$28 sps:$4 sm:$0xff]   ;;  %v11346_v1 = vld [vmem:[%s16281_s1 + $0xbdc] ss:$28 sps:$4 sm:$0xff]  }
  0xe8   :  { %7347 = vmatpush1.bf16.msra.mxu1 %v11264_v3  ;;  %v11344_v3 = vld [vmem:[%s16281_s1 + $0xbd8] ss:$28 sps:$4 sm:$0xff]  }
  0xe9   :  { %7019 = vmatpush1.bf16.msra.mxu0 %v11261_v2  ;;  %7348 = vmatprep.subr.bf16.mxu1 %v11272_v5  ;;  %v11341_v2 = vld [vmem:[%s16281_s1 + $0x12d0] ss:$28 sps:$4 sm:$0xff]  }
  0xea   :  { %7020 = vmatprep.subr.bf16.mxu0 %v11269_v4  ;;  %v11349_v4 = vld [vmem:[%s16281_s1 + $0x130c] ss:$28 sps:$4 sm:$0xff]   ;;  %v11352_v5 = vld [vmem:[%s16281_s1 + $0xc14] ss:$28 sps:$4 sm:$0xff]  }
  0xec   :  { %7349 = vmatpush1.bf16.msra.mxu1 %v11270_v9  ;;  %v11350_v9 = vld [vmem:[%s16281_s1 + $0xc10] ss:$28 sps:$4 sm:$0xff]  }
  0xed   :  { %7021 = vmatpush1.bf16.msra.mxu0 %v11267_v8  ;;  %7350 = vmatprep.subr.bf16.mxu1 %v11278_v11  ;;  %v11347_v8 = vld [vmem:[%s16281_s1 + $0x1308] ss:$28 sps:$4 sm:$0xff]  }
  0xee   :  { %7022 = vmatprep.subr.bf16.mxu0 %v11275_v10  ;;  %v11355_v10 = vld [vmem:[%s16281_s1 + $0x1344] ss:$28 sps:$4 sm:$0xff]   ;;  %v11358_v11 = vld [vmem:[%s16281_s1 + $0xc4c] ss:$28 sps:$4 sm:$0xff]  }
  0xf0   :  { %7351 = vmatpush1.bf16.msra.mxu1 %v11276_v13  ;;  %v11356_v13 = vld [vmem:[%s16281_s1 + $0xc48] ss:$28 sps:$4 sm:$0xff]  }
  0xf1   :  { %7023 = vmatpush1.bf16.msra.mxu0 %v11273_v12  ;;  %7352 = vmatprep.subr.bf16.mxu1 %v11284_v15  ;;  %v11353_v12 = vld [vmem:[%s16281_s1 + $0x1340] ss:$28 sps:$4 sm:$0xff]  }
  0xf2   :  { %7024 = vmatprep.subr.bf16.mxu0 %v11281_v14  ;;  %v11361_v14 = vld [vmem:[%s16281_s1 + $0x137c] ss:$28 sps:$4 sm:$0xff]   ;;  %v11364_v15 = vld [vmem:[%s16281_s1 + $0xc84] ss:$28 sps:$4 sm:$0xff]  }
  0xf4   :  { %7353 = vmatpush1.bf16.msra.mxu1 %v11282_v18  ;;  %v11362_v18 = vld [vmem:[%s16281_s1 + $0xc80] ss:$28 sps:$4 sm:$0xff]  }
  0xf5   :  { %7025 = vmatpush1.bf16.msra.mxu0 %v11279_v17  ;;  %7354 = vmatprep.subr.bf16.mxu1 %v11290_v22  ;;  %v11359_v17 = vld [vmem:[%s16281_s1 + $0x1378] ss:$28 sps:$4 sm:$0xff]  }
  0xf6   :  { %7026 = vmatprep.subr.bf16.mxu0 %v11287_v21  ;;  %v11367_v21 = vld [vmem:[%s16281_s1 + $0x13b4] ss:$28 sps:$4 sm:$0xff]   ;;  %v11370_v22 = vld [vmem:[%s16281_s1 + $0xcbc] ss:$28 sps:$4 sm:$0xff]  }
  0xf8   :  { %7355 = vmatpush1.bf16.msra.mxu1 %v11288_v24  ;;  %v11368_v24 = vld [vmem:[%s16281_s1 + $0xcb8] ss:$28 sps:$4 sm:$0xff]  }
  0xf9   :  { %7027 = vmatpush1.bf16.msra.mxu0 %v11285_v23  ;;  %7356 = vmatprep.subr.bf16.mxu1 %v11296_v28  ;;  %v11365_v23 = vld [vmem:[%s16281_s1 + $0x13b0] ss:$28 sps:$4 sm:$0xff]  }
  0xfa   :  { %7028 = vmatprep.subr.bf16.mxu0 %v11293_v25  ;;  %v11373_v25 = vld [vmem:[%s16281_s1 + $0x13ec] ss:$28 sps:$4 sm:$0xff]   ;;  %v11376_v28 = vld [vmem:[%s16281_s1 + $0xcf4] ss:$28 sps:$4 sm:$0xff]  }
  0xfc   :  { %7357 = vmatpush1.bf16.msra.mxu1 %v11294_v19  ;;  %v11374_v19 = vld [vmem:[%s16281_s1 + $0xcf0] ss:$28 sps:$4 sm:$0xff]  }
  0xfd   :  { %7029 = vmatpush1.bf16.msra.mxu0 %v11291_v29  ;;  %7358 = vmatprep.subr.bf16.mxu1 %v11302_v32  ;;  %v11371_v29 = vld [vmem:[%s16281_s1 + $0x13e8] ss:$28 sps:$4 sm:$0xff]  }
  0xfe   :  { %7030 = vmatprep.subr.bf16.mxu0 %v11299_v31  ;;  %v11379_v31 = vld [vmem:[%s16281_s1 + $0x1424] ss:$28 sps:$4 sm:$0xff]   ;;  %v11382_v32 = vld [vmem:[%s16281_s1 + $0xd2c] ss:$28 sps:$4 sm:$0xff]  }
 0x100   :  { %7359 = vmatpush1.bf16.msra.mxu1 %v11300_v35  ;;  %v11380_v35 = vld [vmem:[%s16281_s1 + $0xd28] ss:$28 sps:$4 sm:$0xff]  }
 0x101   :  { %7031 = vmatpush1.bf16.msra.mxu0 %v11297_v33  ;;  %7369 = vmatprep.subr.bf16.mxu1 %v11309_v37  ;;  %v11377_v33 = vld [vmem:[%s16281_s1 + $0x1420] ss:$28 sps:$4 sm:$0xff]  }
 0x102   :  { %7041 = vmatprep.subr.bf16.mxu0 %v11306_v36  ;;  %v11385_v36 = vld [vmem:[%s16281_s1 + $0x145c] ss:$28 sps:$4 sm:$0xff]   ;;  %v11388_v37 = vld [vmem:[%s16281_s1 + $0xd64] ss:$28 sps:$4 sm:$0xff]  }
 0x103   :  { %7361 = vmatmul.mubr.bf16.vlgmr.msra.gmra.mrb[4].mxu1 %v13023_v16 }
 0x104   :  { %7033 = vmatmul.mubr.bf16.vlgmr.msra.gmra.mrb[0].mxu0 %v13435_v38  ;;  %7370 = vmatpush1.bf16.msra.mxu1 %v11307_v41  ;;  %v11386_v41 = vld [vmem:[%s16281_s1 + $0xd60] ss:$28 sps:$4 sm:$0xff]  }
 0x105   :  { %7042 = vmatpush1.bf16.msra.mxu0 %v11304_v40  ;;  %7371 = vmatprep.subr.bf16.mxu1 %v11316_v42  ;;  %v11383_v40 = vld [vmem:[%s16281_s1 + $0x1458] ss:$28 sps:$4 sm:$0xff]  }
 0x106   :  { %7043 = vmatprep.subr.bf16.mxu0 %v11313_v27  ;;  %7073 = vmatprep.mubr.bf16.mxu0 %v13456_v43  ;;  %v11391_v27 = vld [vmem:[%s16281_s1 + $0x1494] ss:$28 sps:$4 sm:$0xff]   ;;  %v11394_v42 = vld [vmem:[%s16281_s1 + $0xd9c] ss:$28 sps:$4 sm:$0xff]  }
 0x107   :  { %7401 = vmatprep.mubr.bf16.mxu1 %v13038_v20 }
 0x108   :  { %7372 = vmatpush1.bf16.msra.mxu1 %v11314_v45  ;;  %v11392_v45 = vld [vmem:[%s16281_s1 + $0xd98] ss:$28 sps:$4 sm:$0xff]  }
 0x109   :  { %7044 = vmatpush1.bf16.msra.mxu0 %v11311_v44  ;;  %7373 = vmatprep.subr.bf16.mxu1 %v11322_v48  ;;  %v11389_v44 = vld [vmem:[%s16281_s1 + $0x1490] ss:$28 sps:$4 sm:$0xff]  }
 0x10a   :  { %7045 = vmatprep.subr.bf16.mxu0 %v11319_v46  ;;  %v11397_v46 = vld [vmem:[%s16281_s1 + $0x14cc] ss:$28 sps:$4 sm:$0xff]   ;;  %v11400_v48 = vld [vmem:[%s16281_s1 + $0xdd4] ss:$28 sps:$4 sm:$0xff]  }
 0x10c   :  { %7374 = vmatpush1.bf16.msra.mxu1 %v11320_v50  ;;  %v11398_v50 = vld [vmem:[%s16281_s1 + $0xdd0] ss:$28 sps:$4 sm:$0xff]  }
 0x10d   :  { %7046 = vmatpush1.bf16.msra.mxu0 %v11317_v49  ;;  %7375 = vmatprep.subr.bf16.mxu1 %v11328_v53  ;;  %v11395_v49 = vld [vmem:[%s16281_s1 + $0x14c8] ss:$28 sps:$4 sm:$0xff]  }
 0x10e   :  { %7047 = vmatprep.subr.bf16.mxu0 %v11325_v52  ;;  %v11404_v53 = vld [vmem:[%s16281_s1 + $0x1504] ss:$28 sps:$4 sm:$0xff]  }
 0x110   :  { %7376 = vmatpush1.bf16.msra.mxu1 %v11326_v55 }
 0x111   :  { %7048 = vmatpush1.bf16.msra.mxu0 %v11323_v54  ;;  %7377 = vmatprep.subr.bf16.mxu1 %v11334_v57  ;;  %v11407_v54 = vld [vmem:[%s16281_s1 + $0xe0c] ss:$28 sps:$4 sm:$0xff]  }
 0x112   :  { %7049 = vmatprep.subr.bf16.mxu0 %v11331_v56  ;;  %v13649_v56 = vld [vmem:[%s16280_s0 + $0x30] sm:$0xff] }
 0x114   :  { %7378 = vmatpush1.bf16.msra.mxu1 %v11332_v59 }
 0x115   :  { %7050 = vmatpush1.bf16.msra.mxu0 %v11329_v58  ;;  %7379 = vmatprep.subr.bf16.mxu1 %v11340_v61  ;;  %v13653_v58 = vcombine.low %v13440_v39, %v13440_v39  ;;  %v11405_v61 = vld [vmem:[%s16281_s1 + $0xe08] ss:$28 sps:$4 sm:$0xff]  }
 0x116   :  { %7051 = vmatprep.subr.bf16.mxu0 %v11337_v60  ;;  %v13636_v52 = vpop.f32.mrb[0].mxu1  ;;  %v11402_v60 = vld [vmem:[%s16281_s1 + $0x1500] ss:$28 sps:$4 sm:$0xff]  }
 0x117   :  { %v13644_v55 = vpop.f32.mrb[1].mxu1  ;;  %v11414_v39 = vld [vmem:[%s16281_s1 + $0xe44] ss:$28 sps:$4 sm:$0xff]  }
 0x118   :  { %7380 = vmatpush1.bf16.msra.mxu1 %v11338_v63  ;;  %v6874_v57 = vpop.f32.mrb[2].mxu1  ;;  %v13669_v63 = vcombine.high %v13649_v56, %v13649_v56 }
 0x119   :  { %7052 = vmatpush1.bf16.msra.mxu0 %v11335_v62  ;;  %7381 = vmatprep.subr.bf16.mxu1 %v11346_v1  ;;  %v6875_v59 = vpop.f32.mrb[3].mxu1  ;;  %v11411_v62 = vld [vmem:[%s16281_s1 + $0x153c] ss:$28 sps:$4 sm:$0xff]   ;;  %v11477_v57 = vld [vmem:[%s16281_s1 + $0x17a4] ss:$28 sps:$4 sm:$0xff]  }
 0x11a   :  { %7053 = vmatprep.subr.bf16.mxu0 %v11343_v0  ;;  %v11409_v0 = vld [vmem:[%s16281_s1 + $0x1538] ss:$28 sps:$4 sm:$0xff]   ;;  %v11412_v1 = vld [vmem:[%s16281_s1 + $0xe40] ss:$28 sps:$4 sm:$0xff]   ;;  %v11480_v59 = vld [vmem:[%s16281_s1 + $0x10ac] ss:$28 sps:$4 sm:$0xff]  }
 0x11c   :  { %7382 = vmatpush1.bf16.msra.mxu1 %v11344_v3  ;;  %v11420_v3 = vld [vmem:[%s16281_s1 + $0xe7c] ss:$28 sps:$4 sm:$0xff]  }
 0x11d   :  { %7054 = vmatpush1.bf16.msra.mxu0 %v11341_v2  ;;  %7383 = vmatprep.subr.bf16.mxu1 %v11352_v5  ;;  %v11417_v2 = vld [vmem:[%s16281_s1 + $0x1574] ss:$28 sps:$4 sm:$0xff]  }
 0x11e   :  { %7055 = vmatprep.subr.bf16.mxu0 %v11349_v4  ;;  %v11415_v4 = vld [vmem:[%s16281_s1 + $0x1570] ss:$28 sps:$4 sm:$0xff]   ;;  %v11418_v5 = vld [vmem:[%s16281_s1 + $0xe78] ss:$28 sps:$4 sm:$0xff]  }
 0x120   :  { %7384 = vmatpush1.bf16.msra.mxu1 %v11350_v9  ;;  %v11426_v9 = vld [vmem:[%s16281_s1 + $0xeb4] ss:$28 sps:$4 sm:$0xff]  }
 0x121   :  { %7056 = vmatpush1.bf16.msra.mxu0 %v11347_v8  ;;  %7385 = vmatprep.subr.bf16.mxu1 %v11358_v11  ;;  %v11423_v8 = vld [vmem:[%s16281_s1 + $0x15ac] ss:$28 sps:$4 sm:$0xff]  }
 0x122   :  { %7057 = vmatprep.subr.bf16.mxu0 %v11355_v10  ;;  %v11421_v10 = vld [vmem:[%s16281_s1 + $0x15a8] ss:$28 sps:$4 sm:$0xff]   ;;  %v11424_v11 = vld [vmem:[%s16281_s1 + $0xeb0] ss:$28 sps:$4 sm:$0xff]  }
 0x124   :  { %7386 = vmatpush1.bf16.msra.mxu1 %v11356_v13  ;;  %v11432_v13 = vld [vmem:[%s16281_s1 + $0xeec] ss:$28 sps:$4 sm:$0xff]  }
 0x125   :  { %7058 = vmatpush1.bf16.msra.mxu0 %v11353_v12  ;;  %7387 = vmatprep.subr.bf16.mxu1 %v11364_v15  ;;  %v11429_v12 = vld [vmem:[%s16281_s1 + $0x15e4] ss:$28 sps:$4 sm:$0xff]  }
 0x126   :  { %7059 = vmatprep.subr.bf16.mxu0 %v11361_v14  ;;  %v11427_v14 = vld [vmem:[%s16281_s1 + $0x15e0] ss:$28 sps:$4 sm:$0xff]   ;;  %v11430_v15 = vld [vmem:[%s16281_s1 + $0xee8] ss:$28 sps:$4 sm:$0xff]  }
 0x128   :  { %7388 = vmatpush1.bf16.msra.mxu1 %v11362_v18  ;;  %v11438_v18 = vld [vmem:[%s16281_s1 + $0xf24] ss:$28 sps:$4 sm:$0xff]  }
 0x129   :  { %7060 = vmatpush1.bf16.msra.mxu0 %v11359_v17  ;;  %7389 = vmatprep.subr.bf16.mxu1 %v11370_v22  ;;  %v11435_v17 = vld [vmem:[%s16281_s1 + $0x161c] ss:$28 sps:$4 sm:$0xff]  }
 0x12a   :  { %7061 = vmatprep.subr.bf16.mxu0 %v11367_v21  ;;  %v11433_v21 = vld [vmem:[%s16281_s1 + $0x1618] ss:$28 sps:$4 sm:$0xff]   ;;  %v11436_v22 = vld [vmem:[%s16281_s1 + $0xf20] ss:$28 sps:$4 sm:$0xff]  }
 0x12c   :  { %7390 = vmatpush1.bf16.msra.mxu1 %v11368_v24  ;;  %v11444_v24 = vld [vmem:[%s16281_s1 + $0xf5c] ss:$28 sps:$4 sm:$0xff]  }
 0x12d   :  { %7062 = vmatpush1.bf16.msra.mxu0 %v11365_v23  ;;  %7391 = vmatprep.subr.bf16.mxu1 %v11376_v28  ;;  %v11441_v23 = vld [vmem:[%s16281_s1 + $0x1654] ss:$28 sps:$4 sm:$0xff]  }
 0x12e   :  { %7063 = vmatprep.subr.bf16.mxu0 %v11373_v25  ;;  %v11439_v25 = vld [vmem:[%s16281_s1 + $0x1650] ss:$28 sps:$4 sm:$0xff]   ;;  %v11442_v28 = vld [vmem:[%s16281_s1 + $0xf58] ss:$28 sps:$4 sm:$0xff]  }
 0x130   :  { %7392 = vmatpush1.bf16.msra.mxu1 %v11374_v19  ;;  %v11450_v19 = vld [vmem:[%s16281_s1 + $0xf94] ss:$28 sps:$4 sm:$0xff]  }
 0x131   :  { %7064 = vmatpush1.bf16.msra.mxu0 %v11371_v29  ;;  %7393 = vmatprep.subr.bf16.mxu1 %v11382_v32  ;;  %v11447_v29 = vld [vmem:[%s16281_s1 + $0x168c] ss:$28 sps:$4 sm:$0xff]  }
 0x132   :  { %7065 = vmatprep.subr.bf16.mxu0 %v11379_v31  ;;  %v11445_v31 = vld [vmem:[%s16281_s1 + $0x1688] ss:$28 sps:$4 sm:$0xff]   ;;  %v11448_v32 = vld [vmem:[%s16281_s1 + $0xf90] ss:$28 sps:$4 sm:$0xff]  }
 0x134   :  { %7394 = vmatpush1.bf16.msra.mxu1 %v11380_v35  ;;  %v11456_v35 = vld [vmem:[%s16281_s1 + $0xfcc] ss:$28 sps:$4 sm:$0xff]  }
 0x135   :  { %7066 = vmatpush1.bf16.msra.mxu0 %v11377_v33  ;;  %7395 = vmatprep.subr.bf16.mxu1 %v11388_v37  ;;  %v11453_v33 = vld [vmem:[%s16281_s1 + $0x16c4] ss:$28 sps:$4 sm:$0xff]  }
 0x136   :  { %7067 = vmatprep.subr.bf16.mxu0 %v11385_v36  ;;  %v11451_v36 = vld [vmem:[%s16281_s1 + $0x16c0] ss:$28 sps:$4 sm:$0xff]   ;;  %v11454_v37 = vld [vmem:[%s16281_s1 + $0xfc8] ss:$28 sps:$4 sm:$0xff]  }
 0x138   :  { %7396 = vmatpush1.bf16.msra.mxu1 %v11386_v41  ;;  %v11462_v41 = vld [vmem:[%s16281_s1 + $0x1004] ss:$28 sps:$4 sm:$0xff]  }
 0x139   :  { %7068 = vmatpush1.bf16.msra.mxu0 %v11383_v40  ;;  %7397 = vmatprep.subr.bf16.mxu1 %v11394_v42  ;;  %v11459_v40 = vld [vmem:[%s16281_s1 + $0x16fc] ss:$28 sps:$4 sm:$0xff]  }
 0x13a   :  { %7069 = vmatprep.subr.bf16.mxu0 %v11391_v27  ;;  %v11457_v27 = vld [vmem:[%s16281_s1 + $0x16f8] ss:$28 sps:$4 sm:$0xff]   ;;  %v11460_v42 = vld [vmem:[%s16281_s1 + $0x1000] ss:$28 sps:$4 sm:$0xff]  }
 0x13c   :  { %7398 = vmatpush1.bf16.msra.mxu1 %v11392_v45  ;;  %v11468_v45 = vld [vmem:[%s16281_s1 + $0x103c] ss:$28 sps:$4 sm:$0xff]  }
 0x13d   :  { %7070 = vmatpush1.bf16.msra.mxu0 %v11389_v44  ;;  %7399 = vmatprep.subr.bf16.mxu1 %v11400_v48  ;;  %v11465_v44 = vld [vmem:[%s16281_s1 + $0x1734] ss:$28 sps:$4 sm:$0xff]  }
 0x13e   :  { %7071 = vmatprep.subr.bf16.mxu0 %v11397_v46  ;;  %v11463_v46 = vld [vmem:[%s16281_s1 + $0x1730] ss:$28 sps:$4 sm:$0xff]   ;;  %v11466_v48 = vld [vmem:[%s16281_s1 + $0x1038] ss:$28 sps:$4 sm:$0xff]  }
 0x140   :  { %7400 = vmatpush1.bf16.msra.mxu1 %v11398_v50  ;;  %v11474_v50 = vld [vmem:[%s16281_s1 + $0x1074] ss:$28 sps:$4 sm:$0xff]  }
 0x141   :  { %7072 = vmatpush1.bf16.msra.mxu0 %v11395_v49  ;;  %7410 = vmatprep.subr.bf16.mxu1 %v11407_v54  ;;  %v11471_v49 = vld [vmem:[%s16281_s1 + $0x176c] ss:$28 sps:$4 sm:$0xff]  }
 0x142   :  { %7082 = vmatprep.subr.bf16.mxu0 %v11404_v53  ;;  %v11469_v53 = vld [vmem:[%s16281_s1 + $0x1768] ss:$28 sps:$4 sm:$0xff]   ;;  %v11472_v54 = vld [vmem:[%s16281_s1 + $0x1070] ss:$28 sps:$4 sm:$0xff]  }
 0x143   :  { %7402 = vmatmul.mubr.bf16.vlgmr.msra.gmra.mrb[4].mxu1 %v13229_v26 }
 0x144   :  { %7074 = vmatmul.mubr.bf16.vlgmr.msra.gmra.mrb[0].mxu0 %v13653_v58  ;;  %7411 = vmatpush1.bf16.msra.mxu1 %v11405_v61  ;;  %v11478_v61 = vld [vmem:[%s16281_s1 + $0x10a8] ss:$28 sps:$4 sm:$0xff]  }
 0x145   :  { %7083 = vmatpush1.bf16.msra.mxu0 %v11402_v60  ;;  %7412 = vmatprep.subr.bf16.mxu1 %v11414_v39  ;;  %v11475_v60 = vld [vmem:[%s16281_s1 + $0x17a0] ss:$28 sps:$4 sm:$0xff]  }
 0x146   :  { %7084 = vmatprep.subr.bf16.mxu0 %v11411_v62  ;;  %7114 = vmatprep.mubr.bf16.mxu0 %v13669_v63  ;;  %v11483_v62 = vld [vmem:[%s16281_s1 + $0x17dc] ss:$28 sps:$4 sm:$0xff]   ;;  %v11486_v39 = vld [vmem:[%s16281_s1 + $0x10e4] ss:$28 sps:$4 sm:$0xff]  }
 0x147   :  { %7442 = vmatprep.mubr.bf16.mxu1 %v13247_v30 }
 0x148   :  { %7413 = vmatpush1.bf16.msra.mxu1 %v11412_v1  ;;  %v11484_v1 = vld [vmem:[%s16281_s1 + $0x10e0] ss:$28 sps:$4 sm:$0xff]  }
 0x149   :  { %7085 = vmatpush1.bf16.msra.mxu0 %v11409_v0  ;;  %7414 = vmatprep.subr.bf16.mxu1 %v11420_v3  ;;  %v11481_v0 = vld [vmem:[%s16281_s1 + $0x17d8] ss:$28 sps:$4 sm:$0xff]  }
 0x14a   :  { %7086 = vmatprep.subr.bf16.mxu0 %v11417_v2  ;;  %v11489_v2 = vld [vmem:[%s16281_s1 + $0x1814] ss:$28 sps:$4 sm:$0xff]   ;;  %v11492_v3 = vld [vmem:[%s16281_s1 + $0x111c] ss:$28 sps:$4 sm:$0xff]  }
 0x14c   :  { %7415 = vmatpush1.bf16.msra.mxu1 %v11418_v5  ;;  %v11490_v5 = vld [vmem:[%s16281_s1 + $0x1118] ss:$28 sps:$4 sm:$0xff]  }
 0x14d   :  { %7087 = vmatpush1.bf16.msra.mxu0 %v11415_v4  ;;  %7416 = vmatprep.subr.bf16.mxu1 %v11426_v9  ;;  %v11487_v4 = vld [vmem:[%s16281_s1 + $0x1810] ss:$28 sps:$4 sm:$0xff]  }
 0x14e   :  { %7088 = vmatprep.subr.bf16.mxu0 %v11423_v8  ;;  %v11495_v8 = vld [vmem:[%s16281_s1 + $0x184c] ss:$28 sps:$4 sm:$0xff]   ;;  %v11498_v9 = vld [vmem:[%s16281_s1 + $0x1154] ss:$28 sps:$4 sm:$0xff]  }
 0x150   :  { %7417 = vmatpush1.bf16.msra.mxu1 %v11424_v11  ;;  %v11496_v11 = vld [vmem:[%s16281_s1 + $0x1150] ss:$28 sps:$4 sm:$0xff]  }
 0x151   :  { %7089 = vmatpush1.bf16.msra.mxu0 %v11421_v10  ;;  %7418 = vmatprep.subr.bf16.mxu1 %v11432_v13  ;;  %v11493_v10 = vld [vmem:[%s16281_s1 + $0x1848] ss:$28 sps:$4 sm:$0xff]  }
 0x152   :  { %7090 = vmatprep.subr.bf16.mxu0 %v11429_v12  ;;  %v11502_v12 = vld [vmem:[%s16281_s1 + $0x1884] ss:$28 sps:$4 sm:$0xff]   ;;  %v11505_v13 = vld [vmem:[%s16281_s1 + $0x118c] ss:$28 sps:$4 sm:$0xff]  }
 0x154   :  { %7419 = vmatpush1.bf16.msra.mxu1 %v11430_v15  ;;  %v13862_v15 = vcombine.low %v13649_v56, %v13649_v56  ;;  %v11512_v56 = vld [vmem:[%s16281_s1 + $0x11c4] ss:$28 sps:$4 sm:$0xff]  }
 0x155   :  { %7091 = vmatpush1.bf16.msra.mxu0 %v11427_v14  ;;  %7420 = vmatprep.subr.bf16.mxu1 %v11438_v18  ;;  %v13858_v14 = vld [vmem:[%s16280_s0 + $0x38] sm:$0xff]  ;;  %v11503_v18 = vld [vmem:[%s16281_s1 + $0x1188] ss:$28 sps:$4 sm:$0xff]  }
 0x156   :  { %7092 = vmatprep.subr.bf16.mxu0 %v11435_v17  ;;  %v11500_v17 = vld [vmem:[%s16281_s1 + $0x1880] ss:$28 sps:$4 sm:$0xff]  }
 0x158   :  { %7421 = vmatpush1.bf16.msra.mxu1 %v11436_v22  ;;  %v13878_v22 = vcombine.high %v13858_v14, %v13858_v14 }
 0x159   :  { %7093 = vmatpush1.bf16.msra.mxu0 %v11433_v21  ;;  %7422 = vmatprep.subr.bf16.mxu1 %v11444_v24  ;;  %v11509_v21 = vld [vmem:[%s16281_s1 + $0x18bc] ss:$28 sps:$4 sm:$0xff]  }
 0x15a   :  { %7094 = vmatprep.subr.bf16.mxu0 %v11441_v23  ;;  %v11507_v23 = vld [vmem:[%s16281_s1 + $0x18b8] ss:$28 sps:$4 sm:$0xff]   ;;  %v11510_v24 = vld [vmem:[%s16281_s1 + $0x11c0] ss:$28 sps:$4 sm:$0xff]  }
 0x15c   :  { %7423 = vmatpush1.bf16.msra.mxu1 %v11442_v28  ;;  %v11518_v28 = vld [vmem:[%s16281_s1 + $0x11fc] ss:$28 sps:$4 sm:$0xff]  }
 0x15d   :  { %7095 = vmatpush1.bf16.msra.mxu0 %v11439_v25  ;;  %7424 = vmatprep.subr.bf16.mxu1 %v11450_v19  ;;  %v11515_v25 = vld [vmem:[%s16281_s1 + $0x18f4] ss:$28 sps:$4 sm:$0xff]  }
 0x15e   :  { %7096 = vmatprep.subr.bf16.mxu0 %v11447_v29  ;;  %v11513_v29 = vld [vmem:[%s16281_s1 + $0x18f0] ss:$28 sps:$4 sm:$0xff]   ;;  %v11516_v19 = vld [vmem:[%s16281_s1 + $0x11f8] ss:$28 sps:$4 sm:$0xff]  }
 0x160   :  { %7425 = vmatpush1.bf16.msra.mxu1 %v11448_v32  ;;  %v11524_v32 = vld [vmem:[%s16281_s1 + $0x1234] ss:$28 sps:$4 sm:$0xff]  }
 0x161   :  { %7097 = vmatpush1.bf16.msra.mxu0 %v11445_v31  ;;  %7426 = vmatprep.subr.bf16.mxu1 %v11456_v35  ;;  %v11521_v31 = vld [vmem:[%s16281_s1 + $0x192c] ss:$28 sps:$4 sm:$0xff]  }
 0x162   :  { %7098 = vmatprep.subr.bf16.mxu0 %v11453_v33  ;;  %v11519_v33 = vld [vmem:[%s16281_s1 + $0x1928] ss:$28 sps:$4 sm:$0xff]   ;;  %v11522_v35 = vld [vmem:[%s16281_s1 + $0x1230] ss:$28 sps:$4 sm:$0xff]  }
 0x164   :  { %7427 = vmatpush1.bf16.msra.mxu1 %v11454_v37  ;;  %v11530_v37 = vld [vmem:[%s16281_s1 + $0x126c] ss:$28 sps:$4 sm:$0xff]  }
 0x165   :  { %7099 = vmatpush1.bf16.msra.mxu0 %v11451_v36  ;;  %7428 = vmatprep.subr.bf16.mxu1 %v11462_v41  ;;  %v11527_v36 = vld [vmem:[%s16281_s1 + $0x1964] ss:$28 sps:$4 sm:$0xff]  }
 0x166   :  { %7100 = vmatprep.subr.bf16.mxu0 %v11459_v40  ;;  %v11525_v40 = vld [vmem:[%s16281_s1 + $0x1960] ss:$28 sps:$4 sm:$0xff]   ;;  %v11528_v41 = vld [vmem:[%s16281_s1 + $0x1268] ss:$28 sps:$4 sm:$0xff]  }
 0x168   :  { %7429 = vmatpush1.bf16.msra.mxu1 %v11460_v42  ;;  %v11536_v42 = vld [vmem:[%s16281_s1 + $0x12a4] ss:$28 sps:$4 sm:$0xff]  }
 0x169   :  { %7101 = vmatpush1.bf16.msra.mxu0 %v11457_v27  ;;  %7430 = vmatprep.subr.bf16.mxu1 %v11468_v45  ;;  %v11533_v27 = vld [vmem:[%s16281_s1 + $0x199c] ss:$28 sps:$4 sm:$0xff]  }
 0x16a   :  { %7102 = vmatprep.subr.bf16.mxu0 %v11465_v44  ;;  %v11531_v44 = vld [vmem:[%s16281_s1 + $0x1998] ss:$28 sps:$4 sm:$0xff]   ;;  %v11534_v45 = vld [vmem:[%s16281_s1 + $0x12a0] ss:$28 sps:$4 sm:$0xff]  }
 0x16c   :  { %7431 = vmatpush1.bf16.msra.mxu1 %v11466_v48  ;;  %v11542_v48 = vld [vmem:[%s16281_s1 + $0x12dc] ss:$28 sps:$4 sm:$0xff]  }
 0x16d   :  { %7103 = vmatpush1.bf16.msra.mxu0 %v11463_v46  ;;  %7432 = vmatprep.subr.bf16.mxu1 %v11474_v50  ;;  %v11539_v46 = vld [vmem:[%s16281_s1 + $0x19d4] ss:$28 sps:$4 sm:$0xff]  }
 0x16e   :  { %7104 = vmatprep.subr.bf16.mxu0 %v11471_v49  ;;  %v11537_v49 = vld [vmem:[%s16281_s1 + $0x19d0] ss:$28 sps:$4 sm:$0xff]   ;;  %v11540_v50 = vld [vmem:[%s16281_s1 + $0x12d8] ss:$28 sps:$4 sm:$0xff]  }
 0x170   :  { %7433 = vmatpush1.bf16.msra.mxu1 %v11472_v54  ;;  %v11548_v54 = vld [vmem:[%s16281_s1 + $0x1314] ss:$28 sps:$4 sm:$0xff]  }
 0x171   :  { %7105 = vmatpush1.bf16.msra.mxu0 %v11469_v53  ;;  %7434 = vmatprep.subr.bf16.mxu1 %v11480_v59  ;;  %v11545_v53 = vld [vmem:[%s16281_s1 + $0x1a0c] ss:$28 sps:$4 sm:$0xff]  }
 0x172   :  { %7106 = vmatprep.subr.bf16.mxu0 %v11477_v57  ;;  %v11543_v57 = vld [vmem:[%s16281_s1 + $0x1a08] ss:$28 sps:$4 sm:$0xff]   ;;  %v11546_v59 = vld [vmem:[%s16281_s1 + $0x1310] ss:$28 sps:$4 sm:$0xff]  }
 0x174   :  { %7435 = vmatpush1.bf16.msra.mxu1 %v11478_v61  ;;  %v11554_v61 = vld [vmem:[%s16281_s1 + $0x134c] ss:$28 sps:$4 sm:$0xff]  }
 0x175   :  { %7107 = vmatpush1.bf16.msra.mxu0 %v11475_v60  ;;  %7436 = vmatprep.subr.bf16.mxu1 %v11486_v39  ;;  %v11551_v60 = vld [vmem:[%s16281_s1 + $0x1a44] ss:$28 sps:$4 sm:$0xff]  }
 0x176   :  { %7108 = vmatprep.subr.bf16.mxu0 %v11483_v62  ;;  %v11549_v62 = vld [vmem:[%s16281_s1 + $0x1a40] ss:$28 sps:$4 sm:$0xff]   ;;  %v11552_v39 = vld [vmem:[%s16281_s1 + $0x1348] ss:$28 sps:$4 sm:$0xff]  }
 0x178   :  { %7437 = vmatpush1.bf16.msra.mxu1 %v11484_v1  ;;  %v11560_v1 = vld [vmem:[%s16281_s1 + $0x1384] ss:$28 sps:$4 sm:$0xff]  }
 0x179   :  { %7109 = vmatpush1.bf16.msra.mxu0 %v11481_v0  ;;  %7438 = vmatprep.subr.bf16.mxu1 %v11492_v3  ;;  %v11557_v0 = vld [vmem:[%s16281_s1 + $0x1a7c] ss:$28 sps:$4 sm:$0xff]  }
 0x17a   :  { %7110 = vmatprep.subr.bf16.mxu0 %v11489_v2  ;;  %v11555_v2 = vld [vmem:[%s16281_s1 + $0x1a78] ss:$28 sps:$4 sm:$0xff]   ;;  %v11558_v3 = vld [vmem:[%s16281_s1 + $0x1380] ss:$28 sps:$4 sm:$0xff]  }
 0x17c   :  { %7439 = vmatpush1.bf16.msra.mxu1 %v11490_v5  ;;  %v11566_v5 = vld [vmem:[%s16281_s1 + $0x13bc] ss:$28 sps:$4 sm:$0xff]  }
 0x17d   :  { %7111 = vmatpush1.bf16.msra.mxu0 %v11487_v4  ;;  %7440 = vmatprep.subr.bf16.mxu1 %v11498_v9  ;;  %v11563_v4 = vld [vmem:[%s16281_s1 + $0x1ab4] ss:$28 sps:$4 sm:$0xff]  }
 0x17e   :  { %7112 = vmatprep.subr.bf16.mxu0 %v11495_v8  ;;  %v11561_v8 = vld [vmem:[%s16281_s1 + $0x1ab0] ss:$28 sps:$4 sm:$0xff]   ;;  %v11564_v9 = vld [vmem:[%s16281_s1 + $0x13b8] ss:$28 sps:$4 sm:$0xff]  }
 0x180   :  { %7441 = vmatpush1.bf16.msra.mxu1 %v11496_v11  ;;  %v11572_v11 = vld [vmem:[%s16281_s1 + $0x13f4] ss:$28 sps:$4 sm:$0xff]  }
 0x181   :  { %7113 = vmatpush1.bf16.msra.mxu0 %v11493_v10  ;;  %7451 = vmatprep.subr.bf16.mxu1 %v11505_v13  ;;  %v11569_v10 = vld [vmem:[%s16281_s1 + $0x1aec] ss:$28 sps:$4 sm:$0xff]  }
 0x182   :  { %7123 = vmatprep.subr.bf16.mxu0 %v11502_v12  ;;  %v11567_v12 = vld [vmem:[%s16281_s1 + $0x1ae8] ss:$28 sps:$4 sm:$0xff]   ;;  %v11570_v13 = vld [vmem:[%s16281_s1 + $0x13f0] ss:$28 sps:$4 sm:$0xff]  }
 0x183   :  { %7443 = vmatmul.mubr.bf16.vlgmr.msra.gmra.mrb[4].mxu1 %v13435_v38 }
 0x184   :  { %7115 = vmatmul.mubr.bf16.vlgmr.msra.gmra.mrb[0].mxu0 %v13862_v15  ;;  %7452 = vmatpush1.bf16.msra.mxu1 %v11503_v18  ;;  %v11578_v18 = vld [vmem:[%s16281_s1 + $0x142c] ss:$28 sps:$4 sm:$0xff]  }
 0x185   :  { %7124 = vmatpush1.bf16.msra.mxu0 %v11500_v17  ;;  %7453 = vmatprep.subr.bf16.mxu1 %v11512_v56  ;;  %v11575_v17 = vld [vmem:[%s16281_s1 + $0x1b24] ss:$28 sps:$4 sm:$0xff]  }
 0x186   :  { %7125 = vmatprep.subr.bf16.mxu0 %v11509_v21  ;;  %7155 = vmatprep.mubr.bf16.mxu0 %v13878_v22  ;;  %v11573_v21 = vld [vmem:[%s16281_s1 + $0x1b20] ss:$28 sps:$4 sm:$0xff]   ;;  %v11576_v56 = vld [vmem:[%s16281_s1 + $0x1428] ss:$28 sps:$4 sm:$0xff]  }
 0x187   :  { %7483 = vmatprep.mubr.bf16.mxu1 %v13456_v43 }
 0x188   :  { %7454 = vmatpush1.bf16.msra.mxu1 %v11510_v24  ;;  %v11584_v24 = vld [vmem:[%s16281_s1 + $0x1464] ss:$28 sps:$4 sm:$0xff]  }
 0x189   :  { %7126 = vmatpush1.bf16.msra.mxu0 %v11507_v23  ;;  %7455 = vmatprep.subr.bf16.mxu1 %v11518_v28  ;;  %v11581_v23 = vld [vmem:[%s16281_s1 + $0x1b5c] ss:$28 sps:$4 sm:$0xff]  }
 0x18a   :  { %7127 = vmatprep.subr.bf16.mxu0 %v11515_v25  ;;  %v11579_v25 = vld [vmem:[%s16281_s1 + $0x1b58] ss:$28 sps:$4 sm:$0xff]   ;;  %v11582_v28 = vld [vmem:[%s16281_s1 + $0x1460] ss:$28 sps:$4 sm:$0xff]  }
 0x18c   :  { %7456 = vmatpush1.bf16.msra.mxu1 %v11516_v19  ;;  %v11590_v19 = vld [vmem:[%s16281_s1 + $0x149c] ss:$28 sps:$4 sm:$0xff]  }
 0x18d   :  { %7128 = vmatpush1.bf16.msra.mxu0 %v11513_v29  ;;  %7457 = vmatprep.subr.bf16.mxu1 %v11524_v32  ;;  %v11587_v29 = vld [vmem:[%s16281_s1 + $0x1b94] ss:$28 sps:$4 sm:$0xff]  }
 0x18e   :  { %7129 = vmatprep.subr.bf16.mxu0 %v11521_v31  ;;  %v11585_v31 = vld [vmem:[%s16281_s1 + $0x1b90] ss:$28 sps:$4 sm:$0xff]   ;;  %v11588_v32 = vld [vmem:[%s16281_s1 + $0x1498] ss:$28 sps:$4 sm:$0xff]  }
 0x190   :  { %7458 = vmatpush1.bf16.msra.mxu1 %v11522_v35  ;;  %v11596_v35 = vld [vmem:[%s16281_s1 + $0x14d4] ss:$28 sps:$4 sm:$0xff]  }
 0x191   :  { %7130 = vmatpush1.bf16.msra.mxu0 %v11519_v33  ;;  %7459 = vmatprep.subr.bf16.mxu1 %v11530_v37  ;;  %v11593_v33 = vld [vmem:[%s16281_s1 + $0x1bcc] ss:$28 sps:$4 sm:$0xff]  }
 0x192   :  { %7131 = vmatprep.subr.bf16.mxu0 %v11527_v36  ;;  %v11591_v36 = vld [vmem:[%s16281_s1 + $0x1bc8] ss:$28 sps:$4 sm:$0xff]   ;;  %v11594_v37 = vld [vmem:[%s16281_s1 + $0x14d0] ss:$28 sps:$4 sm:$0xff]  }
 0x194   :  { %7460 = vmatpush1.bf16.msra.mxu1 %v11528_v41  ;;  %v11603_v41 = vld [vmem:[%s16281_s1 + $0x150c] ss:$28 sps:$4 sm:$0xff]  }
 0x195   :  { %7132 = vmatpush1.bf16.msra.mxu0 %v11525_v40  ;;  %7461 = vmatprep.subr.bf16.mxu1 %v11536_v42  ;;  %v11600_v40 = vld [vmem:[%s16281_s1 + $0x1c04] ss:$28 sps:$4 sm:$0xff]   ;;  %v14071_v42 = vcombine.low %v13858_v14, %v13858_v14 }
 0x196   :  { %7133 = vmatprep.subr.bf16.mxu0 %v11533_v27  ;;  %v14067_v27 = vld [vmem:[%s16280_s0 + $0x40] sm:$0xff] }
 0x197   :  { %v11610_v14 = vld [vmem:[%s16281_s1 + $0x1544] ss:$28 sps:$4 sm:$0xff]  }
 0x198   :  { %7462 = vmatpush1.bf16.msra.mxu1 %v11534_v45  ;;  %v11601_v45 = vld [vmem:[%s16281_s1 + $0x1508] ss:$28 sps:$4 sm:$0xff]  }
 0x199   :  { %7134 = vmatpush1.bf16.msra.mxu0 %v11531_v44  ;;  %7463 = vmatprep.subr.bf16.mxu1 %v11542_v48  ;;  %v11598_v44 = vld [vmem:[%s16281_s1 + $0x1c00] ss:$28 sps:$4 sm:$0xff]   ;;  %v14087_v48 = vcombine.high %v14067_v27, %v14067_v27 }
 0x19a   :  { %7135 = vmatprep.subr.bf16.mxu0 %v11539_v46  ;;  %v11607_v46 = vld [vmem:[%s16281_s1 + $0x1c3c] ss:$28 sps:$4 sm:$0xff]  }
 0x19c   :  { %7464 = vmatpush1.bf16.msra.mxu1 %v11540_v50  ;;  %v11608_v50 = vld [vmem:[%s16281_s1 + $0x1540] ss:$28 sps:$4 sm:$0xff]  }
 0x19d   :  { %7136 = vmatpush1.bf16.msra.mxu0 %v11537_v49  ;;  %7465 = vmatprep.subr.bf16.mxu1 %v11548_v54  ;;  %v11605_v49 = vld [vmem:[%s16281_s1 + $0x1c38] ss:$28 sps:$4 sm:$0xff]  }
 0x19e   :  { %7137 = vmatprep.subr.bf16.mxu0 %v11545_v53  ;;  %v11613_v53 = vld [vmem:[%s16281_s1 + $0x1c74] ss:$28 sps:$4 sm:$0xff]   ;;  %v11616_v54 = vld [vmem:[%s16281_s1 + $0x157c] ss:$28 sps:$4 sm:$0xff]  }
 0x1a0   :  { %7466 = vmatpush1.bf16.msra.mxu1 %v11546_v59  ;;  %v11614_v59 = vld [vmem:[%s16281_s1 + $0x1578] ss:$28 sps:$4 sm:$0xff]  }
 0x1a1   :  { %7138 = vmatpush1.bf16.msra.mxu0 %v11543_v57  ;;  %7467 = vmatprep.subr.bf16.mxu1 %v11554_v61  ;;  %v11611_v57 = vld [vmem:[%s16281_s1 + $0x1c70] ss:$28 sps:$4 sm:$0xff]  }
 0x1a2   :  { %7139 = vmatprep.subr.bf16.mxu0 %v11551_v60  ;;  %v11619_v60 = vld [vmem:[%s16281_s1 + $0x1cac] ss:$28 sps:$4 sm:$0xff]   ;;  %v11622_v61 = vld [vmem:[%s16281_s1 + $0x15b4] ss:$28 sps:$4 sm:$0xff]  }
 0x1a4   :  { %7468 = vmatpush1.bf16.msra.mxu1 %v11552_v39  ;;  %v11620_v39 = vld [vmem:[%s16281_s1 + $0x15b0] ss:$28 sps:$4 sm:$0xff]  }
 0x1a5   :  { %7140 = vmatpush1.bf16.msra.mxu0 %v11549_v62  ;;  %7469 = vmatprep.subr.bf16.mxu1 %v11560_v1  ;;  %v11617_v62 = vld [vmem:[%s16281_s1 + $0x1ca8] ss:$28 sps:$4 sm:$0xff]  }
 0x1a6   :  { %7141 = vmatprep.subr.bf16.mxu0 %v11557_v0  ;;  %v11625_v0 = vld [vmem:[%s16281_s1 + $0x1ce4] ss:$28 sps:$4 sm:$0xff]   ;;  %v11628_v1 = vld [vmem:[%s16281_s1 + $0x15ec] ss:$28 sps:$4 sm:$0xff]  }
 0x1a8   :  { %7470 = vmatpush1.bf16.msra.mxu1 %v11558_v3  ;;  %v11626_v3 = vld [vmem:[%s16281_s1 + $0x15e8] ss:$28 sps:$4 sm:$0xff]  }
 0x1a9   :  { %7142 = vmatpush1.bf16.msra.mxu0 %v11555_v2  ;;  %7471 = vmatprep.subr.bf16.mxu1 %v11566_v5  ;;  %v11623_v2 = vld [vmem:[%s16281_s1 + $0x1ce0] ss:$28 sps:$4 sm:$0xff]  }
 0x1aa   :  { %7143 = vmatprep.subr.bf16.mxu0 %v11563_v4  ;;  %v11631_v4 = vld [vmem:[%s16281_s1 + $0x1d1c] ss:$28 sps:$4 sm:$0xff]   ;;  %v11634_v5 = vld [vmem:[%s16281_s1 + $0x1624] ss:$28 sps:$4 sm:$0xff]  }
 0x1ac   :  { %7472 = vmatpush1.bf16.msra.mxu1 %v11564_v9  ;;  %v11632_v9 = vld [vmem:[%s16281_s1 + $0x1620] ss:$28 sps:$4 sm:$0xff]  }
 0x1ad   :  { %7144 = vmatpush1.bf16.msra.mxu0 %v11561_v8  ;;  %7473 = vmatprep.subr.bf16.mxu1 %v11572_v11  ;;  %v11629_v8 = vld [vmem:[%s16281_s1 + $0x1d18] ss:$28 sps:$4 sm:$0xff]  }
 0x1ae   :  { %7145 = vmatprep.subr.bf16.mxu0 %v11569_v10  ;;  %v11637_v10 = vld [vmem:[%s16281_s1 + $0x1d54] ss:$28 sps:$4 sm:$0xff]   ;;  %v11640_v11 = vld [vmem:[%s16281_s1 + $0x165c] ss:$28 sps:$4 sm:$0xff]  }
 0x1b0   :  { %7474 = vmatpush1.bf16.msra.mxu1 %v11570_v13  ;;  %v11638_v13 = vld [vmem:[%s16281_s1 + $0x1658] ss:$28 sps:$4 sm:$0xff]  }
 0x1b1   :  { %7146 = vmatpush1.bf16.msra.mxu0 %v11567_v12  ;;  %7475 = vmatprep.subr.bf16.mxu1 %v11578_v18  ;;  %v11635_v12 = vld [vmem:[%s16281_s1 + $0x1d50] ss:$28 sps:$4 sm:$0xff]  }
 0x1b2   :  { %7147 = vmatprep.subr.bf16.mxu0 %v11575_v17  ;;  %v11643_v17 = vld [vmem:[%s16281_s1 + $0x1d8c] ss:$28 sps:$4 sm:$0xff]   ;;  %v11646_v18 = vld [vmem:[%s16281_s1 + $0x1694] ss:$28 sps:$4 sm:$0xff]  }
 0x1b4   :  { %7476 = vmatpush1.bf16.msra.mxu1 %v11576_v56  ;;  %v11644_v56 = vld [vmem:[%s16281_s1 + $0x1690] ss:$28 sps:$4 sm:$0xff]  }
 0x1b5   :  { %7148 = vmatpush1.bf16.msra.mxu0 %v11573_v21  ;;  %7477 = vmatprep.subr.bf16.mxu1 %v11584_v24  ;;  %v11641_v21 = vld [vmem:[%s16281_s1 + $0x1d88] ss:$28 sps:$4 sm:$0xff]  }
 0x1b6   :  { %7149 = vmatprep.subr.bf16.mxu0 %v11581_v23  ;;  %v11649_v23 = vld [vmem:[%s16281_s1 + $0x1dc4] ss:$28 sps:$4 sm:$0xff]   ;;  %v11652_v24 = vld [vmem:[%s16281_s1 + $0x16cc] ss:$28 sps:$4 sm:$0xff]  }
 0x1b8   :  { %7478 = vmatpush1.bf16.msra.mxu1 %v11582_v28  ;;  %v11650_v28 = vld [vmem:[%s16281_s1 + $0x16c8] ss:$28 sps:$4 sm:$0xff]  }
 0x1b9   :  { %7150 = vmatpush1.bf16.msra.mxu0 %v11579_v25  ;;  %7479 = vmatprep.subr.bf16.mxu1 %v11590_v19  ;;  %v11647_v25 = vld [vmem:[%s16281_s1 + $0x1dc0] ss:$28 sps:$4 sm:$0xff]  }
 0x1ba   :  { %7151 = vmatprep.subr.bf16.mxu0 %v11587_v29  ;;  %v11655_v29 = vld [vmem:[%s16281_s1 + $0x1dfc] ss:$28 sps:$4 sm:$0xff]   ;;  %v11658_v19 = vld [vmem:[%s16281_s1 + $0x1704] ss:$28 sps:$4 sm:$0xff]  }
 0x1bc   :  { %7480 = vmatpush1.bf16.msra.mxu1 %v11588_v32  ;;  %v11656_v32 = vld [vmem:[%s16281_s1 + $0x1700] ss:$28 sps:$4 sm:$0xff]  }
 0x1bd   :  { %7152 = vmatpush1.bf16.msra.mxu0 %v11585_v31  ;;  %7481 = vmatprep.subr.bf16.mxu1 %v11596_v35  ;;  %v11653_v31 = vld [vmem:[%s16281_s1 + $0x1df8] ss:$28 sps:$4 sm:$0xff]  }
 0x1be   :  { %7153 = vmatprep.subr.bf16.mxu0 %v11593_v33  ;;  %v11661_v33 = vld [vmem:[%s16281_s1 + $0x1e34] ss:$28 sps:$4 sm:$0xff]   ;;  %v11664_v35 = vld [vmem:[%s16281_s1 + $0x173c] ss:$28 sps:$4 sm:$0xff]  }
 0x1c0   :  { %7482 = vmatpush1.bf16.msra.mxu1 %v11594_v37  ;;  %v11662_v37 = vld [vmem:[%s16281_s1 + $0x1738] ss:$28 sps:$4 sm:$0xff]  }
 0x1c1   :  { %7154 = vmatpush1.bf16.msra.mxu0 %v11591_v36  ;;  %7492 = vmatprep.subr.bf16.mxu1 %v11603_v41  ;;  %v11659_v36 = vld [vmem:[%s16281_s1 + $0x1e30] ss:$28 sps:$4 sm:$0xff]  }
 0x1c2   :  { %7164 = vmatprep.subr.bf16.mxu0 %v11600_v40  ;;  %v11667_v40 = vld [vmem:[%s16281_s1 + $0x1e6c] ss:$28 sps:$4 sm:$0xff]   ;;  %v11670_v41 = vld [vmem:[%s16281_s1 + $0x1774] ss:$28 sps:$4 sm:$0xff]  }
 0x1c3   :  { %7484 = vmatmul.mubr.bf16.vlgmr.msra.gmra.mrb[4].mxu1 %v13653_v58 }
 0x1c4   :  { %7156 = vmatmul.mubr.bf16.vlgmr.msra.gmra.mrb[0].mxu0 %v14071_v42  ;;  %7493 = vmatpush1.bf16.msra.mxu1 %v11601_v45  ;;  %v11668_v45 = vld [vmem:[%s16281_s1 + $0x1770] ss:$28 sps:$4 sm:$0xff]  }
 0x1c5   :  { %7165 = vmatpush1.bf16.msra.mxu0 %v11598_v44  ;;  %7494 = vmatprep.subr.bf16.mxu1 %v11610_v14  ;;  %v11665_v44 = vld [vmem:[%s16281_s1 + $0x1e68] ss:$28 sps:$4 sm:$0xff]  }
 0x1c6   :  { %7166 = vmatprep.subr.bf16.mxu0 %v11607_v46  ;;  %7196 = vmatprep.mubr.bf16.mxu0 %v14087_v48  ;;  %v11673_v46 = vld [vmem:[%s16281_s1 + $0x1ea4] ss:$28 sps:$4 sm:$0xff]   ;;  %v11676_v14 = vld [vmem:[%s16281_s1 + $0x17ac] ss:$28 sps:$4 sm:$0xff]  }
 0x1c7   :  { %7524 = vmatprep.mubr.bf16.mxu1 %v13669_v63 }
 0x1c8   :  { %7495 = vmatpush1.bf16.msra.mxu1 %v11608_v50  ;;  %v11674_v50 = vld [vmem:[%s16281_s1 + $0x17a8] ss:$28 sps:$4 sm:$0xff]  }
 0x1c9   :  { %7167 = vmatpush1.bf16.msra.mxu0 %v11605_v49  ;;  %7496 = vmatprep.subr.bf16.mxu1 %v11616_v54  ;;  %v11671_v49 = vld [vmem:[%s16281_s1 + $0x1ea0] ss:$28 sps:$4 sm:$0xff]  }
 0x1ca   :  { %7168 = vmatprep.subr.bf16.mxu0 %v11613_v53  ;;  %v11679_v53 = vld [vmem:[%s16281_s1 + $0x1edc] ss:$28 sps:$4 sm:$0xff]   ;;  %v11682_v54 = vld [vmem:[%s16281_s1 + $0x17e4] ss:$28 sps:$4 sm:$0xff]  }
 0x1cc   :  { %7497 = vmatpush1.bf16.msra.mxu1 %v11614_v59  ;;  %v11680_v59 = vld [vmem:[%s16281_s1 + $0x17e0] ss:$28 sps:$4 sm:$0xff]  }
 0x1cd   :  { %7169 = vmatpush1.bf16.msra.mxu0 %v11611_v57  ;;  %7498 = vmatprep.subr.bf16.mxu1 %v11622_v61  ;;  %v11677_v57 = vld [vmem:[%s16281_s1 + $0x1ed8] ss:$28 sps:$4 sm:$0xff]  }
 0x1ce   :  { %7170 = vmatprep.subr.bf16.mxu0 %v11619_v60  ;;  %v11685_v60 = vld [vmem:[%s16281_s1 + $0x1f14] ss:$28 sps:$4 sm:$0xff]   ;;  %v11688_v61 = vld [vmem:[%s16281_s1 + $0x181c] ss:$28 sps:$4 sm:$0xff]  }
 0x1d0   :  { %7499 = vmatpush1.bf16.msra.mxu1 %v11620_v39  ;;  %v11686_v39 = vld [vmem:[%s16281_s1 + $0x1818] ss:$28 sps:$4 sm:$0xff]  }
 0x1d1   :  { %7171 = vmatpush1.bf16.msra.mxu0 %v11617_v62  ;;  %7500 = vmatprep.subr.bf16.mxu1 %v11628_v1  ;;  %v11683_v62 = vld [vmem:[%s16281_s1 + $0x1f10] ss:$28 sps:$4 sm:$0xff]  }
 0x1d2   :  { %7172 = vmatprep.subr.bf16.mxu0 %v11625_v0  ;;  %v11691_v0 = vld [vmem:[%s16281_s1 + $0x1f4c] ss:$28 sps:$4 sm:$0xff]   ;;  %v11694_v1 = vld [vmem:[%s16281_s1 + $0x1854] ss:$28 sps:$4 sm:$0xff]  }
 0x1d4   :  { %7501 = vmatpush1.bf16.msra.mxu1 %v11626_v3  ;;  %v11692_v3 = vld [vmem:[%s16281_s1 + $0x1850] ss:$28 sps:$4 sm:$0xff]  }
 0x1d5   :  { %7173 = vmatpush1.bf16.msra.mxu0 %v11623_v2  ;;  %7502 = vmatprep.subr.bf16.mxu1 %v11634_v5  ;;  %v11689_v2 = vld [vmem:[%s16281_s1 + $0x1f48] ss:$28 sps:$4 sm:$0xff]  }
 0x1d6   :  { %7174 = vmatprep.subr.bf16.mxu0 %v11631_v4  ;;  %v11698_v4 = vld [vmem:[%s16281_s1 + $0x1f84] ss:$28 sps:$4 sm:$0xff]   ;;  %v11701_v5 = vld [vmem:[%s16281_s1 + $0x188c] ss:$28 sps:$4 sm:$0xff]  }
 0x1d8   :  { %7503 = vmatpush1.bf16.msra.mxu1 %v11632_v9  ;;  %v11696_v9 = vld [vmem:[%s16281_s1 + $0x1f80] ss:$28 sps:$4 sm:$0xff]  }
 0x1d9   :  { %7175 = vmatpush1.bf16.msra.mxu0 %v11629_v8  ;;  %7504 = vmatprep.subr.bf16.mxu1 %v11640_v11  ;;  %v14275_v8 = vcombine.low %v14067_v27, %v14067_v27  ;;  %v11705_v11 = vld [vmem:[%s16281_s1 + $0x1fbc] ss:$28 sps:$4 sm:$0xff]   ;;  %v11708_v27 = vld [vmem:[%s16281_s1 + $0x18c4] ss:$28 sps:$4 sm:$0xff]  }
 0x1da   :  { %7176 = vmatprep.subr.bf16.mxu0 %v11637_v10  ;;  %v11699_v10 = vld [vmem:[%s16281_s1 + $0x1888] ss:$28 sps:$4 sm:$0xff]  }
 0x1dc   :  { %7505 = vmatpush1.bf16.msra.mxu1 %v11638_v13  ;;  %v11706_v13 = vld [vmem:[%s16281_s1 + $0x18c0] ss:$28 sps:$4 sm:$0xff]  }
 0x1dd   :  { %7177 = vmatpush1.bf16.msra.mxu0 %v11635_v12  ;;  %7506 = vmatprep.subr.bf16.mxu1 %v11646_v18  ;;  %v11703_v12 = vld [vmem:[%s16281_s1 + $0x1fb8] ss:$28 sps:$4 sm:$0xff]  }
 0x1de   :  { %7178 = vmatprep.subr.bf16.mxu0 %v11643_v17  ;;  %v11711_v17 = vld [vmem:[%s16281_s1 + $0x1ff4] ss:$28 sps:$4 sm:$0xff]   ;;  %v11714_v18 = vld [vmem:[%s16281_s1 + $0x18fc] ss:$28 sps:$4 sm:$0xff]  }
 0x1e0   :  { %7507 = vmatpush1.bf16.msra.mxu1 %v11644_v56  ;;  %v11709_v56 = vld [vmem:[%s16281_s1 + $0x1ff0] ss:$28 sps:$4 sm:$0xff]  }
 0x1e1   :  { %7179 = vmatpush1.bf16.msra.mxu0 %v11641_v21  ;;  %7508 = vmatprep.subr.bf16.mxu1 %v11652_v24  ;;  %v12542_v21 = vmov 0   ;;  %v11717_v24 = vld [vmem:[%s16281_s1 + $0x202c] ss:$28 sps:$4 sm:$0xff]  }
 0x1e2   :  { %7180 = vmatprep.subr.bf16.mxu0 %v11649_v23  ;;  %v11712_v23 = vld [vmem:[%s16281_s1 + $0x18f8] ss:$28 sps:$4 sm:$0xff]  }
 0x1e4   :  { %7509 = vmatpush1.bf16.msra.mxu1 %v11650_v28  ;;  %v11715_v28 = vld [vmem:[%s16281_s1 + $0x2028] ss:$28 sps:$4 sm:$0xff]  }
 0x1e5   :  { %7181 = vmatpush1.bf16.msra.mxu0 %v11647_v25  ;;  %7510 = vmatprep.subr.bf16.mxu1 %v11658_v19  ;;  %v11720_v25 = vld [vmem:[%s16281_s1 + $0x1934] ss:$28 sps:$4 sm:$0xff]   ;;  %v11723_v19 = vld [vmem:[%s16281_s1 + $0x2064] ss:$28 sps:$4 sm:$0xff]  }
 0x1e6   :  { %7182 = vmatprep.subr.bf16.mxu0 %v11655_v29  ;;  %v11718_v29 = vld [vmem:[%s16281_s1 + $0x1930] ss:$28 sps:$4 sm:$0xff]  }
 0x1e8   :  { %7511 = vmatpush1.bf16.msra.mxu1 %v11656_v32  ;;  %v11721_v32 = vld [vmem:[%s16281_s1 + $0x2060] ss:$28 sps:$4 sm:$0xff]  }
 0x1e9   :  { %7183 = vmatpush1.bf16.msra.mxu0 %v11653_v31  ;;  %7512 = vmatprep.subr.bf16.mxu1 %v11664_v35  ;;  %v11726_v31 = vld [vmem:[%s16281_s1 + $0x196c] ss:$28 sps:$4 sm:$0xff]   ;;  %v11729_v35 = vld [vmem:[%s16281_s1 + $0x209c] ss:$28 sps:$4 sm:$0xff]  }
 0x1ea   :  { %7184 = vmatprep.subr.bf16.mxu0 %v11661_v33  ;;  %v11724_v33 = vld [vmem:[%s16281_s1 + $0x1968] ss:$28 sps:$4 sm:$0xff]  }
 0x1ec   :  { %7513 = vmatpush1.bf16.msra.mxu1 %v11662_v37  ;;  %v11727_v37 = vld [vmem:[%s16281_s1 + $0x2098] ss:$28 sps:$4 sm:$0xff]  }
 0x1ed   :  { %7185 = vmatpush1.bf16.msra.mxu0 %v11659_v36  ;;  %7514 = vmatprep.subr.bf16.mxu1 %v11670_v41  ;;  %v11732_v36 = vld [vmem:[%s16281_s1 + $0x19a4] ss:$28 sps:$4 sm:$0xff]   ;;  %v11735_v41 = vld [vmem:[%s16281_s1 + $0x20d4] ss:$28 sps:$4 sm:$0xff]  }
 0x1ee   :  { %7186 = vmatprep.subr.bf16.mxu0 %v11667_v40  ;;  %v11730_v40 = vld [vmem:[%s16281_s1 + $0x19a0] ss:$28 sps:$4 sm:$0xff]  }
 0x1f0   :  { %7515 = vmatpush1.bf16.msra.mxu1 %v11668_v45  ;;  %v11733_v45 = vld [vmem:[%s16281_s1 + $0x20d0] ss:$28 sps:$4 sm:$0xff]  }
 0x1f1   :  { %7187 = vmatpush1.bf16.msra.mxu0 %v11665_v44  ;;  %7516 = vmatprep.subr.bf16.mxu1 %v11676_v14  ;;  %v11738_v44 = vld [vmem:[%s16281_s1 + $0x19dc] ss:$28 sps:$4 sm:$0xff]   ;;  %v11741_v14 = vld [vmem:[%s16281_s1 + $0x210c] ss:$28 sps:$4 sm:$0xff]  }
 0x1f2   :  { %7188 = vmatprep.subr.bf16.mxu0 %v11673_v46  ;;  %v11736_v46 = vld [vmem:[%s16281_s1 + $0x19d8] ss:$28 sps:$4 sm:$0xff]  }
 0x1f4   :  { %7517 = vmatpush1.bf16.msra.mxu1 %v11674_v50  ;;  %v11739_v50 = vld [vmem:[%s16281_s1 + $0x2108] ss:$28 sps:$4 sm:$0xff]  }
 0x1f5   :  { %7189 = vmatpush1.bf16.msra.mxu0 %v11671_v49  ;;  %7518 = vmatprep.subr.bf16.mxu1 %v11682_v54  ;;  %v11744_v49 = vld [vmem:[%s16281_s1 + $0x1a14] ss:$28 sps:$4 sm:$0xff]   ;;  %v11745_v54 = vld [vmem:[%s16280_s0 + $0x48] ss:$0 sps:$4 sm:$0xff]  }
 0x1f6   :  { %7190 = vmatprep.subr.bf16.mxu0 %v11679_v53  ;;  %v11742_v53 = vld [vmem:[%s16281_s1 + $0x1a10] ss:$28 sps:$4 sm:$0xff]  }
 0x1f8   :  { %7519 = vmatpush1.bf16.msra.mxu1 %v11680_v59  ;;  %v11751_v59 = vld [vmem:[%s16281_s1 + $0x14] ss:$28 sps:$4 sm:$0xff]  }
 0x1f9   :  { %7191 = vmatpush1.bf16.msra.mxu0 %v11677_v57  ;;  %7520 = vmatprep.subr.bf16.mxu1 %v11688_v61  ;;  %v11748_v57 = vld [vmem:[%s16281_s1 + $0x1a4c] ss:$28 sps:$4 sm:$0xff]  }
 0x1fa   :  { %7192 = vmatprep.subr.bf16.mxu0 %v11685_v60  ;;  %v11746_v60 = vld [vmem:[%s16281_s1 + $0x1a48] ss:$28 sps:$4 sm:$0xff]   ;;  %v11749_v61 = vld [vmem:[%s16281_s1 + $0x10] ss:$28 sps:$4 sm:$0xff]  }
 0x1fc   :  { %7521 = vmatpush1.bf16.msra.mxu1 %v11686_v39  ;;  %v11757_v39 = vld [vmem:[%s16281_s1 + $0x4c] ss:$28 sps:$4 sm:$0xff]  }
 0x1fd   :  { %7193 = vmatpush1.bf16.msra.mxu0 %v11683_v62  ;;  %7522 = vmatprep.subr.bf16.mxu1 %v11694_v1  ;;  %v11754_v62 = vld [vmem:[%s16281_s1 + $0x1a84] ss:$28 sps:$4 sm:$0xff]  }
 0x1fe   :  { %7194 = vmatprep.subr.bf16.mxu0 %v11691_v0  ;;  %v11752_v0 = vld [vmem:[%s16281_s1 + $0x1a80] ss:$28 sps:$4 sm:$0xff]   ;;  %v11755_v1 = vld [vmem:[%s16281_s1 + $0x48] ss:$28 sps:$4 sm:$0xff]  }
 0x200   :  { %7523 = vmatpush1.bf16.msra.mxu1 %v11692_v3  ;;  %v11763_v3 = vld [vmem:[%s16281_s1 + $0x84] ss:$28 sps:$4 sm:$0xff]  }
 0x201   :  { %7195 = vmatpush1.bf16.msra.mxu0 %v11689_v2  ;;  %7533 = vmatprep.subr.bf16.mxu1 %v11701_v5  ;;  %v11760_v2 = vld [vmem:[%s16281_s1 + $0x1abc] ss:$28 sps:$4 sm:$0xff]  }
 0x202   :  { %7205 = vmatprep.subr.bf16.mxu0 %v11698_v4  ;;  %v11758_v4 = vld [vmem:[%s16281_s1 + $0x1ab8] ss:$28 sps:$4 sm:$0xff]   ;;  %v11761_v5 = vld [vmem:[%s16281_s1 + $0x80] ss:$28 sps:$4 sm:$0xff]  }
 0x203   :  { %7525 = vmatmul.mubr.bf16.vlgmr.msra.gmra.mrb[4].mxu1 %v13862_v15 }
 0x204   :  { %7197 = vmatmul.mubr.bf16.vlgmr.msra.gmra.mrb[0].mxu0 %v14275_v8  ;;  %7534 = vmatpush1.bf16.msra.mxu1 %v11699_v10  ;;  %v11769_v10 = vld [vmem:[%s16281_s1 + $0xbc] ss:$28 sps:$4 sm:$0xff]  }
 0x205   :  { %7206 = vmatpush1.bf16.msra.mxu0 %v11696_v9  ;;  %7535 = vmatprep.subr.bf16.mxu1 %v11708_v27  ;;  %v11766_v9 = vld [vmem:[%s16281_s1 + $0x1af4] ss:$28 sps:$4 sm:$0xff]  }
 0x206   :  { %7207 = vmatprep.subr.bf16.mxu0 %v11705_v11  ;;  %7237 = vmatprep.mubr.bf16.mxu0 %v12542_v21  ;;  %v11764_v11 = vld [vmem:[%s16281_s1 + $0x1af0] ss:$28 sps:$4 sm:$0xff]   ;;  %v11767_v27 = vld [vmem:[%s16281_s1 + $0xb8] ss:$28 sps:$4 sm:$0xff]  }
 0x207   :  { %7565 = vmatprep.mubr.bf16.mxu1 %v13878_v22 }
 0x208   :  { %7536 = vmatpush1.bf16.msra.mxu1 %v11706_v13  ;;  %v11775_v13 = vld [vmem:[%s16281_s1 + $0xf4] ss:$28 sps:$4 sm:$0xff]  }
 0x209   :  { %7208 = vmatpush1.bf16.msra.mxu0 %v11703_v12  ;;  %7537 = vmatprep.subr.bf16.mxu1 %v11714_v18  ;;  %v11772_v12 = vld [vmem:[%s16281_s1 + $0x1b2c] ss:$28 sps:$4 sm:$0xff]  }
 0x20a   :  { %7209 = vmatprep.subr.bf16.mxu0 %v11711_v17  ;;  %v11770_v17 = vld [vmem:[%s16281_s1 + $0x1b28] ss:$28 sps:$4 sm:$0xff]   ;;  %v11773_v18 = vld [vmem:[%s16281_s1 + $0xf0] ss:$28 sps:$4 sm:$0xff]  }
 0x20c   :  { %7538 = vmatpush1.bf16.msra.mxu1 %v11712_v23  ;;  %v11781_v23 = vld [vmem:[%s16281_s1 + $0x12c] ss:$28 sps:$4 sm:$0xff]  }
 0x20d   :  { %7210 = vmatpush1.bf16.msra.mxu0 %v11709_v56  ;;  %7539 = vmatprep.subr.bf16.mxu1 %v11720_v25  ;;  %v11778_v56 = vld [vmem:[%s16281_s1 + $0x1b64] ss:$28 sps:$4 sm:$0xff]  }
 0x20e   :  { %7211 = vmatprep.subr.bf16.mxu0 %v11717_v24  ;;  %v11776_v24 = vld [vmem:[%s16281_s1 + $0x1b60] ss:$28 sps:$4 sm:$0xff]   ;;  %v11779_v25 = vld [vmem:[%s16281_s1 + $0x128] ss:$28 sps:$4 sm:$0xff]  }
 0x210   :  { %7540 = vmatpush1.bf16.msra.mxu1 %v11718_v29  ;;  %v11787_v29 = vld [vmem:[%s16281_s1 + $0x164] ss:$28 sps:$4 sm:$0xff]  }
 0x211   :  { %7212 = vmatpush1.bf16.msra.mxu0 %v11715_v28  ;;  %7541 = vmatprep.subr.bf16.mxu1 %v11726_v31  ;;  %v11784_v28 = vld [vmem:[%s16281_s1 + $0x1b9c] ss:$28 sps:$4 sm:$0xff]  }
 0x212   :  { %7213 = vmatprep.subr.bf16.mxu0 %v11723_v19  ;;  %v11782_v19 = vld [vmem:[%s16281_s1 + $0x1b98] ss:$28 sps:$4 sm:$0xff]   ;;  %v11785_v31 = vld [vmem:[%s16281_s1 + $0x160] ss:$28 sps:$4 sm:$0xff]  }
 0x214   :  { %7542 = vmatpush1.bf16.msra.mxu1 %v11724_v33  ;;  %v11793_v33 = vld [vmem:[%s16281_s1 + $0x19c] ss:$28 sps:$4 sm:$0xff]  }
 0x215   :  { %7214 = vmatpush1.bf16.msra.mxu0 %v11721_v32  ;;  %7543 = vmatprep.subr.bf16.mxu1 %v11732_v36  ;;  %v11790_v32 = vld [vmem:[%s16281_s1 + $0x1bd4] ss:$28 sps:$4 sm:$0xff]  }
 0x216   :  { %7215 = vmatprep.subr.bf16.mxu0 %v11729_v35  ;;  %v11788_v35 = vld [vmem:[%s16281_s1 + $0x1bd0] ss:$28 sps:$4 sm:$0xff]   ;;  %v11791_v36 = vld [vmem:[%s16281_s1 + $0x198] ss:$28 sps:$4 sm:$0xff]  }
 0x218   :  { %7544 = vmatpush1.bf16.msra.mxu1 %v11730_v40  ;;  %v11799_v40 = vld [vmem:[%s16281_s1 + $0x1d4] ss:$28 sps:$4 sm:$0xff]  }
 0x219   :  { %7216 = vmatpush1.bf16.msra.mxu0 %v11727_v37  ;;  %7545 = vmatprep.subr.bf16.mxu1 %v11738_v44  ;;  %v11796_v37 = vld [vmem:[%s16281_s1 + $0x1c0c] ss:$28 sps:$4 sm:$0xff]  }
 0x21a   :  { %7217 = vmatprep.subr.bf16.mxu0 %v11735_v41  ;;  %v11794_v41 = vld [vmem:[%s16281_s1 + $0x1c08] ss:$28 sps:$4 sm:$0xff]   ;;  %v11797_v44 = vld [vmem:[%s16281_s1 + $0x1d0] ss:$28 sps:$4 sm:$0xff]  }
 0x21c   :  { %7546 = vmatpush1.bf16.msra.mxu1 %v11736_v46  ;;  %v11805_v46 = vld [vmem:[%s16281_s1 + $0x20c] ss:$28 sps:$4 sm:$0xff]  }
 0x21d   :  { %7218 = vmatpush1.bf16.msra.mxu0 %v11733_v45  ;;  %7547 = vmatprep.subr.bf16.mxu1 %v11744_v49  ;;  %v11802_v45 = vld [vmem:[%s16281_s1 + $0x1c44] ss:$28 sps:$4 sm:$0xff]  }
 0x21e   :  { %7219 = vmatprep.subr.bf16.mxu0 %v11741_v14  ;;  %v11800_v14 = vld [vmem:[%s16281_s1 + $0x1c40] ss:$28 sps:$4 sm:$0xff]   ;;  %v11803_v49 = vld [vmem:[%s16281_s1 + $0x208] ss:$28 sps:$4 sm:$0xff]  }
 0x220   :  { %7548 = vmatpush1.bf16.msra.mxu1 %v11742_v53  ;;  %v11811_v53 = vld [vmem:[%s16281_s1 + $0x244] ss:$28 sps:$4 sm:$0xff]  }
 0x221   :  { %7220 = vmatpush1.bf16.msra.mxu0 %v11739_v50  ;;  %7549 = vmatprep.subr.bf16.mxu1 %v11748_v57  ;;  %v11808_v50 = vld [vmem:[%s16281_s1 + $0x1c7c] ss:$28 sps:$4 sm:$0xff]  }
 0x222   :  { %7656 = vmatprep.subr.bf16.mxu0 %v11751_v59  ;;  %v11809_v57 = vld [vmem:[%s16281_s1 + $0x240] ss:$28 sps:$4 sm:$0xff]   ;;  %v11814_v59 = vld [vmem:[%s16281_s1 + $0x1cb4] ss:$28 sps:$4 sm:$0xff]  }
 0x224   :  { %7238 = vmatmul.mubr.bf16.vlgmr.msra.gmra.mrb[0].mxu0 %v11745_v54  ;;  %7550 = vmatpush1.bf16.msra.mxu1 %v11746_v60  ;;  %v11806_v54 = vld [vmem:[%s16281_s1 + $0x1c78] ss:$28 sps:$4 sm:$0xff]  }
 0x225   :  { %7657 = vmatpush1.bf16.msra.mxu0 %v11749_v61  ;;  %7551 = vmatprep.subr.bf16.mxu1 %v11754_v62  ;;  %v11817_v60 = vld [vmem:[%s16281_s1 + $0x27c] ss:$28 sps:$4 sm:$0xff]   ;;  %v11812_v61 = vld [vmem:[%s16281_s1 + $0x1cb0] ss:$28 sps:$4 sm:$0xff]  }
 0x226   :  { %7658 = vmatprep.subr.bf16.mxu0 %v11757_v39  ;;  %7688 = vmatprep.mubr.bf16.mxu0 %v12737_v47  ;;  %v11815_v62 = vld [vmem:[%s16281_s1 + $0x278] ss:$28 sps:$4 sm:$0xff]   ;;  %v11820_v39 = vld [vmem:[%s16281_s1 + $0x1cec] ss:$28 sps:$4 sm:$0xff]  }
 0x228   :  { %7552 = vmatpush1.bf16.msra.mxu1 %v11752_v0  ;;  %v11823_v0 = vld [vmem:[%s16281_s1 + $0x2b4] ss:$28 sps:$4 sm:$0xff]  }
 0x229   :  { %7659 = vmatpush1.bf16.msra.mxu0 %v11755_v1  ;;  %7553 = vmatprep.subr.bf16.mxu1 %v11760_v2  ;;  %v11818_v1 = vld [vmem:[%s16281_s1 + $0x1ce8] ss:$28 sps:$4 sm:$0xff]   ;;  %v11821_v2 = vld [vmem:[%s16281_s1 + $0x2b0] ss:$28 sps:$4 sm:$0xff]  }
 0x22a   :  { %7660 = vmatprep.subr.bf16.mxu0 %v11763_v3  ;;  %v11826_v3 = vld [vmem:[%s16281_s1 + $0x1d24] ss:$28 sps:$4 sm:$0xff]  }
 0x22c   :  { %7554 = vmatpush1.bf16.msra.mxu1 %v11758_v4  ;;  %v11829_v4 = vld [vmem:[%s16281_s1 + $0x2ec] ss:$28 sps:$4 sm:$0xff]  }
 0x22d   :  { %7661 = vmatpush1.bf16.msra.mxu0 %v11761_v5  ;;  %7555 = vmatprep.subr.bf16.mxu1 %v11766_v9  ;;  %v11824_v5 = vld [vmem:[%s16281_s1 + $0x1d20] ss:$28 sps:$4 sm:$0xff]   ;;  %v11827_v9 = vld [vmem:[%s16281_s1 + $0x2e8] ss:$28 sps:$4 sm:$0xff]  }
 0x22e   :  { %7662 = vmatprep.subr.bf16.mxu0 %v11769_v10  ;;  %v11832_v10 = vld [vmem:[%s16281_s1 + $0x1d5c] ss:$28 sps:$4 sm:$0xff]  }
 0x230   :  { %7556 = vmatpush1.bf16.msra.mxu1 %v11764_v11  ;;  %v11835_v11 = vld [vmem:[%s16281_s1 + $0x324] ss:$28 sps:$4 sm:$0xff]  }
 0x231   :  { %7663 = vmatpush1.bf16.msra.mxu0 %v11767_v27  ;;  %7557 = vmatprep.subr.bf16.mxu1 %v11772_v12  ;;  %v11830_v27 = vld [vmem:[%s16281_s1 + $0x1d58] ss:$28 sps:$4 sm:$0xff]   ;;  %v11833_v12 = vld [vmem:[%s16281_s1 + $0x320] ss:$28 sps:$4 sm:$0xff]  }
 0x232   :  { %7664 = vmatprep.subr.bf16.mxu0 %v11775_v13  ;;  %v11838_v13 = vld [vmem:[%s16281_s1 + $0x1d94] ss:$28 sps:$4 sm:$0xff]  }
 0x234   :  { %7558 = vmatpush1.bf16.msra.mxu1 %v11770_v17  ;;  %v11841_v17 = vld [vmem:[%s16281_s1 + $0x35c] ss:$28 sps:$4 sm:$0xff]  }
 0x235   :  { %7665 = vmatpush1.bf16.msra.mxu0 %v11773_v18  ;;  %7559 = vmatprep.subr.bf16.mxu1 %v11778_v56  ;;  %v11836_v18 = vld [vmem:[%s16281_s1 + $0x1d90] ss:$28 sps:$4 sm:$0xff]   ;;  %v11839_v56 = vld [vmem:[%s16281_s1 + $0x358] ss:$28 sps:$4 sm:$0xff]  }
 0x236   :  { %7666 = vmatprep.subr.bf16.mxu0 %v11781_v23  ;;  %v11844_v23 = vld [vmem:[%s16281_s1 + $0x1dcc] ss:$28 sps:$4 sm:$0xff]  }
 0x238   :  { %7560 = vmatpush1.bf16.msra.mxu1 %v11776_v24  ;;  %v11847_v24 = vld [vmem:[%s16281_s1 + $0x394] ss:$28 sps:$4 sm:$0xff]  }
 0x239   :  { %7667 = vmatpush1.bf16.msra.mxu0 %v11779_v25  ;;  %7561 = vmatprep.subr.bf16.mxu1 %v11784_v28  ;;  %v11842_v25 = vld [vmem:[%s16281_s1 + $0x1dc8] ss:$28 sps:$4 sm:$0xff]   ;;  %v11845_v28 = vld [vmem:[%s16281_s1 + $0x390] ss:$28 sps:$4 sm:$0xff]  }
 0x23a   :  { %7668 = vmatprep.subr.bf16.mxu0 %v11787_v29  ;;  %v11850_v29 = vld [vmem:[%s16281_s1 + $0x1e04] ss:$28 sps:$4 sm:$0xff]  }
 0x23c   :  { %7562 = vmatpush1.bf16.msra.mxu1 %v11782_v19  ;;  %v11853_v19 = vld [vmem:[%s16281_s1 + $0x3cc] ss:$28 sps:$4 sm:$0xff]  }
 0x23d   :  { %7669 = vmatpush1.bf16.msra.mxu0 %v11785_v31  ;;  %7563 = vmatprep.subr.bf16.mxu1 %v11790_v32  ;;  %v11848_v31 = vld [vmem:[%s16281_s1 + $0x1e00] ss:$28 sps:$4 sm:$0xff]   ;;  %v11851_v32 = vld [vmem:[%s16281_s1 + $0x3c8] ss:$28 sps:$4 sm:$0xff]  }
 0x23e   :  { %7670 = vmatprep.subr.bf16.mxu0 %v11793_v33  ;;  %v11856_v33 = vld [vmem:[%s16281_s1 + $0x1e3c] ss:$28 sps:$4 sm:$0xff]  }
 0x240   :  { %7564 = vmatpush1.bf16.msra.mxu1 %v11788_v35  ;;  %v11859_v35 = vld [vmem:[%s16281_s1 + $0x404] ss:$28 sps:$4 sm:$0xff]  }
 0x241   :  { %7671 = vmatpush1.bf16.msra.mxu0 %v11791_v36  ;;  %7574 = vmatprep.subr.bf16.mxu1 %v11796_v37  ;;  %v11854_v36 = vld [vmem:[%s16281_s1 + $0x1e38] ss:$28 sps:$4 sm:$0xff]   ;;  %v11857_v37 = vld [vmem:[%s16281_s1 + $0x400] ss:$28 sps:$4 sm:$0xff]  }
 0x242   :  { %7672 = vmatprep.subr.bf16.mxu0 %v11799_v40  ;;  %v11862_v40 = vld [vmem:[%s16281_s1 + $0x1e74] ss:$28 sps:$4 sm:$0xff]  }
 0x243   :  { %7566 = vmatmul.mubr.bf16.vlgmr.msra.gmra.mrb[4].mxu1 %v14071_v42 }
 0x244   :  { %7575 = vmatpush1.bf16.msra.mxu1 %v11794_v41  ;;  %7606 = vmatprep.mubr.bf16.mxu1 %v14087_v48  ;;  %v11865_v41 = vld [vmem:[%s16281_s1 + $0x43c] ss:$28 sps:$4 sm:$0xff]  }
 0x245   :  { %7673 = vmatpush1.bf16.msra.mxu0 %v11797_v44  ;;  %7576 = vmatprep.subr.bf16.mxu1 %v11802_v45  ;;  %v11860_v44 = vld [vmem:[%s16281_s1 + $0x1e70] ss:$28 sps:$4 sm:$0xff]   ;;  %v11863_v45 = vld [vmem:[%s16281_s1 + $0x438] ss:$28 sps:$4 sm:$0xff]  }
 0x246   :  { %7674 = vmatprep.subr.bf16.mxu0 %v11805_v46  ;;  %v11868_v46 = vld [vmem:[%s16281_s1 + $0x1eac] ss:$28 sps:$4 sm:$0xff]  }
 0x248   :  { %7577 = vmatpush1.bf16.msra.mxu1 %v11800_v14  ;;  %v11871_v14 = vld [vmem:[%s16281_s1 + $0x474] ss:$28 sps:$4 sm:$0xff]  }
 0x249   :  { %7675 = vmatpush1.bf16.msra.mxu0 %v11803_v49  ;;  %7578 = vmatprep.subr.bf16.mxu1 %v11808_v50  ;;  %v11866_v49 = vld [vmem:[%s16281_s1 + $0x1ea8] ss:$28 sps:$4 sm:$0xff]   ;;  %v11869_v50 = vld [vmem:[%s16281_s1 + $0x470] ss:$28 sps:$4 sm:$0xff]  }
 0x24a   :  { %7676 = vmatprep.subr.bf16.mxu0 %v11811_v53  ;;  %v11874_v53 = vld [vmem:[%s16281_s1 + $0x1ee4] ss:$28 sps:$4 sm:$0xff]  }
 0x24c   :  { %7579 = vmatpush1.bf16.msra.mxu1 %v11806_v54  ;;  %v11877_v54 = vld [vmem:[%s16281_s1 + $0x4ac] ss:$28 sps:$4 sm:$0xff]  }
 0x24d   :  { %7677 = vmatpush1.bf16.msra.mxu0 %v11809_v57  ;;  %7580 = vmatprep.subr.bf16.mxu1 %v11814_v59  ;;  %v11872_v57 = vld [vmem:[%s16281_s1 + $0x1ee0] ss:$28 sps:$4 sm:$0xff]   ;;  %v11875_v59 = vld [vmem:[%s16281_s1 + $0x4a8] ss:$28 sps:$4 sm:$0xff]  }
 0x24e   :  { %7678 = vmatprep.subr.bf16.mxu0 %v11817_v60  ;;  %v11880_v60 = vld [vmem:[%s16281_s1 + $0x1f1c] ss:$28 sps:$4 sm:$0xff]  }
 0x250   :  { %7581 = vmatpush1.bf16.msra.mxu1 %v11812_v61  ;;  %v11883_v61 = vld [vmem:[%s16281_s1 + $0x4e4] ss:$28 sps:$4 sm:$0xff]  }
 0x251   :  { %7679 = vmatpush1.bf16.msra.mxu0 %v11815_v62  ;;  %7582 = vmatprep.subr.bf16.mxu1 %v11820_v39  ;;  %v11878_v62 = vld [vmem:[%s16281_s1 + $0x1f18] ss:$28 sps:$4 sm:$0xff]   ;;  %v11881_v39 = vld [vmem:[%s16281_s1 + $0x4e0] ss:$28 sps:$4 sm:$0xff]  }
 0x252   :  { %7680 = vmatprep.subr.bf16.mxu0 %v11823_v0  ;;  %v11886_v0 = vld [vmem:[%s16281_s1 + $0x1f54] ss:$28 sps:$4 sm:$0xff]  }
 0x254   :  { %7583 = vmatpush1.bf16.msra.mxu1 %v11818_v1  ;;  %v11889_v1 = vld [vmem:[%s16281_s1 + $0x51c] ss:$28 sps:$4 sm:$0xff]  }
 0x255   :  { %7681 = vmatpush1.bf16.msra.mxu0 %v11821_v2  ;;  %7584 = vmatprep.subr.bf16.mxu1 %v11826_v3  ;;  %v11884_v2 = vld [vmem:[%s16281_s1 + $0x1f50] ss:$28 sps:$4 sm:$0xff]   ;;  %v11887_v3 = vld [vmem:[%s16281_s1 + $0x518] ss:$28 sps:$4 sm:$0xff]  }
 0x256   :  { %7682 = vmatprep.subr.bf16.mxu0 %v11829_v4  ;;  %v11892_v4 = vld [vmem:[%s16281_s1 + $0x1f8c] ss:$28 sps:$4 sm:$0xff]  }
 0x258   :  { %7585 = vmatpush1.bf16.msra.mxu1 %v11824_v5  ;;  %v11895_v5 = vld [vmem:[%s16281_s1 + $0x554] ss:$28 sps:$4 sm:$0xff]  }
 0x259   :  { %7683 = vmatpush1.bf16.msra.mxu0 %v11827_v9  ;;  %7586 = vmatprep.subr.bf16.mxu1 %v11832_v10  ;;  %v11890_v9 = vld [vmem:[%s16281_s1 + $0x1f88] ss:$28 sps:$4 sm:$0xff]   ;;  %v11893_v10 = vld [vmem:[%s16281_s1 + $0x550] ss:$28 sps:$4 sm:$0xff]  }
 0x25a   :  { %7684 = vmatprep.subr.bf16.mxu0 %v11835_v11  ;;  %v11898_v11 = vld [vmem:[%s16281_s1 + $0x1fc4] ss:$28 sps:$4 sm:$0xff]  }
 0x25c   :  { %7587 = vmatpush1.bf16.msra.mxu1 %v11830_v27  ;;  %v11901_v27 = vld [vmem:[%s16281_s1 + $0x58c] ss:$28 sps:$4 sm:$0xff]  }
 0x25d   :  { %7685 = vmatpush1.bf16.msra.mxu0 %v11833_v12  ;;  %7588 = vmatprep.subr.bf16.mxu1 %v11838_v13  ;;  %v11896_v12 = vld [vmem:[%s16281_s1 + $0x1fc0] ss:$28 sps:$4 sm:$0xff]   ;;  %v11899_v13 = vld [vmem:[%s16281_s1 + $0x588] ss:$28 sps:$4 sm:$0xff]  }
 0x25e   :  { %7686 = vmatprep.subr.bf16.mxu0 %v11841_v17  ;;  %v11904_v17 = vld [vmem:[%s16281_s1 + $0x1ffc] ss:$28 sps:$4 sm:$0xff]  }
 0x260   :  { %7589 = vmatpush1.bf16.msra.mxu1 %v11836_v18  ;;  %v11907_v18 = vld [vmem:[%s16281_s1 + $0x5c4] ss:$28 sps:$4 sm:$0xff]  }
 0x261   :  { %7687 = vmatpush1.bf16.msra.mxu0 %v11839_v56  ;;  %7590 = vmatprep.subr.bf16.mxu1 %v11844_v23  ;;  %v11902_v56 = vld [vmem:[%s16281_s1 + $0x1ff8] ss:$28 sps:$4 sm:$0xff]   ;;  %v11905_v23 = vld [vmem:[%s16281_s1 + $0x5c0] ss:$28 sps:$4 sm:$0xff]  }
 0x262   :  { %7697 = vmatprep.subr.bf16.mxu0 %v11847_v24  ;;  %v11910_v24 = vld [vmem:[%s16281_s1 + $0x2034] ss:$28 sps:$4 sm:$0xff]  }
 0x264   :  { %7689 = vmatmul.mubr.bf16.vlgmr.msra.gmra.mrb[4].mxu0 %v12806_v6  ;;  %7591 = vmatpush1.bf16.msra.mxu1 %v11842_v25  ;;  %v11913_v25 = vld [vmem:[%s16281_s1 + $0x5fc] ss:$28 sps:$4 sm:$0xff]  }
 0x265   :  { %7698 = vmatpush1.bf16.msra.mxu0 %v11845_v28  ;;  %7592 = vmatprep.subr.bf16.mxu1 %v11850_v29  ;;  %v11908_v28 = vld [vmem:[%s16281_s1 + $0x2030] ss:$28 sps:$4 sm:$0xff]   ;;  %v11911_v29 = vld [vmem:[%s16281_s1 + $0x5f8] ss:$28 sps:$4 sm:$0xff]  }
 0x266   :  { %7699 = vmatprep.subr.bf16.mxu0 %v11853_v19  ;;  %7729 = vmatprep.mubr.bf16.mxu0 %v12748_v51  ;;  %v11916_v19 = vld [vmem:[%s16281_s1 + $0x206c] ss:$28 sps:$4 sm:$0xff]  }
 0x268   :  { %7593 = vmatpush1.bf16.msra.mxu1 %v11848_v31  ;;  %v11919_v31 = vld [vmem:[%s16281_s1 + $0x634] ss:$28 sps:$4 sm:$0xff]  }
 0x269   :  { %7700 = vmatpush1.bf16.msra.mxu0 %v11851_v32  ;;  %7594 = vmatprep.subr.bf16.mxu1 %v11856_v33  ;;  %v11914_v32 = vld [vmem:[%s16281_s1 + $0x2068] ss:$28 sps:$4 sm:$0xff]   ;;  %v11917_v33 = vld [vmem:[%s16281_s1 + $0x630] ss:$28 sps:$4 sm:$0xff]  }
 0x26a   :  { %7701 = vmatprep.subr.bf16.mxu0 %v11859_v35  ;;  %v11922_v35 = vld [vmem:[%s16281_s1 + $0x20a4] ss:$28 sps:$4 sm:$0xff]  }
 0x26c   :  { %7595 = vmatpush1.bf16.msra.mxu1 %v11854_v36  ;;  %v11925_v36 = vld [vmem:[%s16281_s1 + $0x66c] ss:$28 sps:$4 sm:$0xff]  }
 0x26d   :  { %7702 = vmatpush1.bf16.msra.mxu0 %v11857_v37  ;;  %7596 = vmatprep.subr.bf16.mxu1 %v11862_v40  ;;  %v11920_v37 = vld [vmem:[%s16281_s1 + $0x20a0] ss:$28 sps:$4 sm:$0xff]   ;;  %v11923_v40 = vld [vmem:[%s16281_s1 + $0x668] ss:$28 sps:$4 sm:$0xff]  }
 0x26e   :  { %7703 = vmatprep.subr.bf16.mxu0 %v11865_v41  ;;  %v11928_v41 = vld [vmem:[%s16281_s1 + $0x20dc] ss:$28 sps:$4 sm:$0xff]  }
 0x270   :  { %7597 = vmatpush1.bf16.msra.mxu1 %v11860_v44  ;;  %v11931_v44 = vld [vmem:[%s16281_s1 + $0x6a4] ss:$28 sps:$4 sm:$0xff]  }
 0x271   :  { %7704 = vmatpush1.bf16.msra.mxu0 %v11863_v45  ;;  %7598 = vmatprep.subr.bf16.mxu1 %v11868_v46  ;;  %v11926_v45 = vld [vmem:[%s16281_s1 + $0x20d8] ss:$28 sps:$4 sm:$0xff]   ;;  %v11929_v46 = vld [vmem:[%s16281_s1 + $0x6a0] ss:$28 sps:$4 sm:$0xff]  }
 0x272   :  { %7705 = vmatprep.subr.bf16.mxu0 %v11871_v14  ;;  %v11934_v14 = vld [vmem:[%s16281_s1 + $0x2114] ss:$28 sps:$4 sm:$0xff]  }
 0x274   :  { %7599 = vmatpush1.bf16.msra.mxu1 %v11866_v49  ;;  %v11937_v49 = vld [vmem:[%s16281_s1 + $0x6dc] ss:$28 sps:$4 sm:$0xff]  }
 0x275   :  { %7706 = vmatpush1.bf16.msra.mxu0 %v11869_v50  ;;  %7600 = vmatprep.subr.bf16.mxu1 %v11874_v53  ;;  %v11932_v50 = vld [vmem:[%s16281_s1 + $0x2110] ss:$28 sps:$4 sm:$0xff]   ;;  %v11935_v53 = vld [vmem:[%s16281_s1 + $0x6d8] ss:$28 sps:$4 sm:$0xff]  }
 0x276   :  { %7707 = vmatprep.subr.bf16.mxu0 %v11877_v54  ;;  %v11940_v54 = vld [vmem:[%s16281_s1 + $0x714] ss:$28 sps:$4 sm:$0xff]  }
 0x278   :  { %7601 = vmatpush1.bf16.msra.mxu1 %v11872_v57  ;;  %v11941_v57 = vld [vmem:[%s16281_s1 + $0x1d8] ss:$28 sps:$4 sm:$0xff]  }
 0x279   :  { %7708 = vmatpush1.bf16.msra.mxu0 %v11875_v59  ;;  %7602 = vmatprep.subr.bf16.mxu1 %v11880_v60  ;;  %v11938_v59 = vld [vmem:[%s16281_s1 + $0x710] ss:$28 sps:$4 sm:$0xff]   ;;  %v11942_v60 = vld [vmem:[%s16281_s1 + $0x18] ss:$28 sps:$4 sm:$0xff]  }
 0x27a   :  { %7709 = vmatprep.subr.bf16.mxu0 %v11883_v61  ;;  %v11945_v61 = vld [vmem:[%s16281_s1 + $0x74c] ss:$28 sps:$4 sm:$0xff]  }
 0x27c   :  { %7603 = vmatpush1.bf16.msra.mxu1 %v11878_v62  ;;  %v11946_v62 = vld [vmem:[%s16281_s1 + $0x210] ss:$28 sps:$4 sm:$0xff]  }
 0x27d   :  { %7710 = vmatpush1.bf16.msra.mxu0 %v11881_v39  ;;  %7604 = vmatprep.subr.bf16.mxu1 %v11886_v0  ;;  %v11943_v39 = vld [vmem:[%s16281_s1 + $0x748] ss:$28 sps:$4 sm:$0xff]  }
 0x27e   :  { %7711 = vmatprep.subr.bf16.mxu0 %v11889_v1  ;;  %v12515_v0 = vld [vmem:[%s16280_s0 + $0x48] ss:$0 sps:$4 sm:$0xff]   ;;  %v11947_v1 = vld [vmem:[%s16281_s1 + $0x50] ss:$28 sps:$4 sm:$0xff]  }
 0x280   :  { %7605 = vmatpush1.bf16.msra.mxu1 %v11884_v2  ;;  %v11950_v2 = vld [vmem:[%s16281_s1 + $0x784] ss:$28 sps:$4 sm:$0xff]  }
 0x281   :  { %7712 = vmatpush1.bf16.msra.mxu0 %v11887_v3  ;;  %7615 = vmatprep.subr.bf16.mxu1 %v11892_v4  ;;  %v11951_v3 = vld [vmem:[%s16281_s1 + $0x248] ss:$28 sps:$4 sm:$0xff]   ;;  %v11948_v4 = vld [vmem:[%s16281_s1 + $0x780] ss:$28 sps:$4 sm:$0xff]  }
 0x282   :  { %7713 = vmatprep.subr.bf16.mxu0 %v11895_v5  ;;  %v11952_v5 = vld [vmem:[%s16281_s1 + $0x88] ss:$28 sps:$4 sm:$0xff]  }
 0x283   :  { %7607 = vmatmul.mubr.bf16.vlgmr.msra.gmra.mrb[4].mxu1 %v14275_v8 }
 0x284   :  { %7616 = vmatpush1.bf16.msra.mxu1 %v11890_v9  ;;  %7647 = vmatprep.mubr.bf16.mxu1 %v12542_v21  ;;  %v11955_v9 = vld [vmem:[%s16281_s1 + $0x7bc] ss:$28 sps:$4 sm:$0xff]  }
 0x285   :  { %7714 = vmatpush1.bf16.msra.mxu0 %v11893_v10  ;;  %7617 = vmatprep.subr.bf16.mxu1 %v11898_v11  ;;  %v11956_v10 = vld [vmem:[%s16281_s1 + $0x280] ss:$28 sps:$4 sm:$0xff]  }
 0x286   :  { %7715 = vmatprep.subr.bf16.mxu0 %v11901_v27  ;;  %v11957_v11 = vld [vmem:[%s16281_s1 + $0xc0] ss:$28 sps:$4 sm:$0xff]   ;;  %v11960_v27 = vld [vmem:[%s16281_s1 + $0x7f4] ss:$28 sps:$4 sm:$0xff]  }
 0x288   :  { %7618 = vmatpush1.bf16.msra.mxu1 %v11896_v12  ;;  %v11961_v12 = vld [vmem:[%s16281_s1 + $0x2b8] ss:$28 sps:$4 sm:$0xff]  }
 0x289   :  { %7716 = vmatpush1.bf16.msra.mxu0 %v11899_v13  ;;  %7619 = vmatprep.subr.bf16.mxu1 %v11904_v17  ;;  %v11958_v13 = vld [vmem:[%s16281_s1 + $0x7f0] ss:$28 sps:$4 sm:$0xff]   ;;  %v11962_v17 = vld [vmem:[%s16281_s1 + $0xf8] ss:$28 sps:$4 sm:$0xff]  }
 0x28a   :  { %7717 = vmatprep.subr.bf16.mxu0 %v11907_v18  ;;  %v11965_v18 = vld [vmem:[%s16281_s1 + $0x82c] ss:$28 sps:$4 sm:$0xff]  }
 0x28c   :  { %7620 = vmatpush1.bf16.msra.mxu1 %v11902_v56  ;;  %v11966_v56 = vld [vmem:[%s16281_s1 + $0x2f0] ss:$28 sps:$4 sm:$0xff]  }
 0x28d   :  { %7718 = vmatpush1.bf16.msra.mxu0 %v11905_v23  ;;  %7621 = vmatprep.subr.bf16.mxu1 %v11910_v24  ;;  %v11963_v23 = vld [vmem:[%s16281_s1 + $0x828] ss:$28 sps:$4 sm:$0xff]   ;;  %v11967_v24 = vld [vmem:[%s16281_s1 + $0x130] ss:$28 sps:$4 sm:$0xff]  }
 0x28e   :  { %7719 = vmatprep.subr.bf16.mxu0 %v11913_v25  ;;  %v11970_v25 = vld [vmem:[%s16281_s1 + $0x864] ss:$28 sps:$4 sm:$0xff]  }
 0x290   :  { %7622 = vmatpush1.bf16.msra.mxu1 %v11908_v28  ;;  %v11971_v28 = vld [vmem:[%s16281_s1 + $0x328] ss:$28 sps:$4 sm:$0xff]  }
 0x291   :  { %7720 = vmatpush1.bf16.msra.mxu0 %v11911_v29  ;;  %7623 = vmatprep.subr.bf16.mxu1 %v11916_v19  ;;  %v11968_v29 = vld [vmem:[%s16281_s1 + $0x860] ss:$28 sps:$4 sm:$0xff]   ;;  %v11972_v19 = vld [vmem:[%s16281_s1 + $0x168] ss:$28 sps:$4 sm:$0xff]  }
 0x292   :  { %7721 = vmatprep.subr.bf16.mxu0 %v11919_v31  ;;  %v11975_v31 = vld [vmem:[%s16281_s1 + $0x89c] ss:$28 sps:$4 sm:$0xff]  }
 0x294   :  { %7624 = vmatpush1.bf16.msra.mxu1 %v11914_v32  ;;  %v11976_v32 = vld [vmem:[%s16281_s1 + $0x360] ss:$28 sps:$4 sm:$0xff]  }
 0x295   :  { %7722 = vmatpush1.bf16.msra.mxu0 %v11917_v33  ;;  %7625 = vmatprep.subr.bf16.mxu1 %v11922_v35  ;;  %v11973_v33 = vld [vmem:[%s16281_s1 + $0x898] ss:$28 sps:$4 sm:$0xff]   ;;  %v11977_v35 = vld [vmem:[%s16281_s1 + $0x1a0] ss:$28 sps:$4 sm:$0xff]  }
 0x296   :  { %7723 = vmatprep.subr.bf16.mxu0 %v11925_v36  ;;  %v11980_v36 = vld [vmem:[%s16281_s1 + $0x8d4] ss:$28 sps:$4 sm:$0xff]  }
 0x298   :  { %7626 = vmatpush1.bf16.msra.mxu1 %v11920_v37  ;;  %v11981_v37 = vld [vmem:[%s16281_s1 + $0x558] ss:$28 sps:$4 sm:$0xff]  }
 0x299   :  { %7724 = vmatpush1.bf16.msra.mxu0 %v11923_v40  ;;  %7627 = vmatprep.subr.bf16.mxu1 %v11928_v41  ;;  %v11978_v40 = vld [vmem:[%s16281_s1 + $0x8d0] ss:$28 sps:$4 sm:$0xff]   ;;  %v11982_v41 = vld [vmem:[%s16281_s1 + $0x398] ss:$28 sps:$4 sm:$0xff]  }
 0x29a   :  { %7725 = vmatprep.subr.bf16.mxu0 %v11931_v44  ;;  %v11985_v44 = vld [vmem:[%s16281_s1 + $0x90c] ss:$28 sps:$4 sm:$0xff]  }
 0x29c   :  { %7628 = vmatpush1.bf16.msra.mxu1 %v11926_v45  ;;  %v11986_v45 = vld [vmem:[%s16281_s1 + $0x590] ss:$28 sps:$4 sm:$0xff]  }
 0x29d   :  { %7726 = vmatpush1.bf16.msra.mxu0 %v11929_v46  ;;  %7629 = vmatprep.subr.bf16.mxu1 %v11934_v14  ;;  %v11983_v46 = vld [vmem:[%s16281_s1 + $0x908] ss:$28 sps:$4 sm:$0xff]   ;;  %v11987_v14 = vld [vmem:[%s16281_s1 + $0x3d0] ss:$28 sps:$4 sm:$0xff]  }
 0x29e   :  { %7727 = vmatprep.subr.bf16.mxu0 %v11937_v49  ;;  %v11990_v49 = vld [vmem:[%s16281_s1 + $0x944] ss:$28 sps:$4 sm:$0xff]  }
 0x2a0   :  { %7630 = vmatpush1.bf16.msra.mxu1 %v11932_v50  ;;  %v11991_v50 = vld [vmem:[%s16281_s1 + $0x5c8] ss:$28 sps:$4 sm:$0xff]  }
 0x2a1   :  { %7728 = vmatpush1.bf16.msra.mxu0 %v11935_v53  ;;  %10436 = vmatprep.subr.bf16.mxu1 %v11941_v57  ;;  %v11992_v53 = vld [vmem:[%s16281_s1 + $0x408] ss:$28 sps:$4 sm:$0xff]   ;;  %v11996_v57 = vld [vmem:[%s16281_s1 + $0x600] ss:$28 sps:$4 sm:$0xff]  }
 0x2a2   :  { %7738 = vmatprep.subr.bf16.mxu0 %v11940_v54  ;;  %v11995_v54 = vld [vmem:[%s16281_s1 + $0x97c] ss:$28 sps:$4 sm:$0xff]  }
 0x2a3   :  { %7648 = vmatmul.mubr.bf16.vlgmr.msra.gmra.mrb[4].mxu1 %v12515_v0  ;;  %v12005_v0 = vld [vmem:[%s16281_s1 + $0x9ec] ss:$28 sps:$4 sm:$0xff]  }
 0x2a4   :  { %7730 = vmatmul.mubr.bf16.vlgmr.msra.gmra.mrb[4].mxu0 %v12808_v7  ;;  %10437 = vmatpush3.bf16.msra.mxu1 %v11942_v60  ;;  %v12000_v60 = vld [vmem:[%s16281_s1 + $0x9b4] ss:$28 sps:$4 sm:$0xff]  }
 0x2a5   :  { %7739 = vmatpush1.bf16.msra.mxu0 %v11938_v59  ;;  %10438 = vmatprep.subr.bf16.mxu1 %v11946_v62  ;;  %v11997_v59 = vld [vmem:[%s16281_s1 + $0x440] ss:$28 sps:$4 sm:$0xff]   ;;  %v11998_v62 = vld [vmem:[%s16281_s1 + $0x9b0] ss:$28 sps:$4 sm:$0xff]  }
 0x2a6   :  { %7740 = vmatprep.subr.bf16.mxu0 %v11945_v61  ;;  %8098 = vmatprep.mubr.bf16.mxu1 %v12737_v47  ;;  %v11953_v47 = vld [vmem:[%s16281_s1 + $0x7b8] ss:$28 sps:$4 sm:$0xff]  }
 0x2a7   :  { %7770 = vmatprep.mubr.bf16.mxu0 %v12895_v34  ;;  %v12001_v61 = vld [vmem:[%s16281_s1 + $0x638] ss:$28 sps:$4 sm:$0xff]  }
 0x2a8   :  { %10439 = vmatpush3.bf16.msra.mxu1 %v11947_v1  ;;  %v12006_v1 = vld [vmem:[%s16281_s1 + $0x670] ss:$28 sps:$4 sm:$0xff]  }
 0x2a9   :  { %7741 = vmatpush1.bf16.msra.mxu0 %v11943_v39  ;;  %10440 = vmatprep.subr.bf16.mxu1 %v11951_v3  ;;  %v12002_v39 = vld [vmem:[%s16281_s1 + $0x478] ss:$28 sps:$4 sm:$0xff]   ;;  %v12007_v3 = vld [vmem:[%s16281_s1 + $0x4b0] ss:$28 sps:$4 sm:$0xff]  }
 0x2aa   :  { %7742 = vmatprep.subr.bf16.mxu0 %v11950_v2  ;;  %v12003_v2 = vld [vmem:[%s16281_s1 + $0x9e8] ss:$28 sps:$4 sm:$0xff]  }
 0x2ac   :  { %10441 = vmatpush3.bf16.msra.mxu1 %v11952_v5  ;;  %v12011_v5 = vld [vmem:[%s16281_s1 + $0x6a8] ss:$28 sps:$4 sm:$0xff]  }
 0x2ad   :  { %7743 = vmatpush1.bf16.msra.mxu0 %v11948_v4  ;;  %10442 = vmatprep.subr.bf16.mxu1 %v11956_v10  ;;  %v12010_v4 = vld [vmem:[%s16281_s1 + $0xa24] ss:$28 sps:$4 sm:$0xff]  }
 0x2ae   :  { %7744 = vmatprep.subr.bf16.mxu0 %v11955_v9  ;;  %v12008_v9 = vld [vmem:[%s16281_s1 + $0xa20] ss:$28 sps:$4 sm:$0xff]   ;;  %v12012_v10 = vld [vmem:[%s16281_s1 + $0x4e8] ss:$28 sps:$4 sm:$0xff]  }
 0x2b0   :  { %10443 = vmatpush3.bf16.msra.mxu1 %v11957_v11  ;;  %v12016_v11 = vld [vmem:[%s16281_s1 + $0x6e0] ss:$28 sps:$4 sm:$0xff]  }
 0x2b1   :  { %7745 = vmatpush1.bf16.msra.mxu0 %v11953_v47  ;;  %10444 = vmatprep.subr.bf16.mxu1 %v11961_v12  ;;  %v12015_v47 = vld [vmem:[%s16281_s1 + $0xa5c] ss:$28 sps:$4 sm:$0xff]  }
 0x2b2   :  { %7746 = vmatprep.subr.bf16.mxu0 %v11960_v27  ;;  %v12013_v27 = vld [vmem:[%s16281_s1 + $0xa58] ss:$28 sps:$4 sm:$0xff]   ;;  %v12017_v12 = vld [vmem:[%s16281_s1 + $0x520] ss:$28 sps:$4 sm:$0xff]  }
 0x2b4   :  { %10445 = vmatpush3.bf16.msra.mxu1 %v11962_v17  ;;  %v12021_v17 = vld [vmem:[%s16281_s1 + $0x8d8] ss:$28 sps:$4 sm:$0xff]  }
 0x2b5   :  { %7747 = vmatpush1.bf16.msra.mxu0 %v11958_v13  ;;  %10446 = vmatprep.subr.bf16.mxu1 %v11966_v56  ;;  %v12020_v13 = vld [vmem:[%s16281_s1 + $0xa94] ss:$28 sps:$4 sm:$0xff]  }
 0x2b6   :  { %7748 = vmatprep.subr.bf16.mxu0 %v11965_v18  ;;  %v12018_v18 = vld [vmem:[%s16281_s1 + $0xa90] ss:$28 sps:$4 sm:$0xff]   ;;  %v12022_v56 = vld [vmem:[%s16281_s1 + $0x718] ss:$28 sps:$4 sm:$0xff]  }
 0x2b8   :  { %10447 = vmatpush3.bf16.msra.mxu1 %v11967_v24  ;;  %v12026_v24 = vld [vmem:[%s16281_s1 + $0x910] ss:$28 sps:$4 sm:$0xff]  }
 0x2b9   :  { %7749 = vmatpush1.bf16.msra.mxu0 %v11963_v23  ;;  %10448 = vmatprep.subr.bf16.mxu1 %v11971_v28  ;;  %v12025_v23 = vld [vmem:[%s16281_s1 + $0xacc] ss:$28 sps:$4 sm:$0xff]  }
 0x2ba   :  { %7750 = vmatprep.subr.bf16.mxu0 %v11970_v25  ;;  %v12023_v25 = vld [vmem:[%s16281_s1 + $0xac8] ss:$28 sps:$4 sm:$0xff]   ;;  %v12027_v28 = vld [vmem:[%s16281_s1 + $0x750] ss:$28 sps:$4 sm:$0xff]  }
 0x2bc   :  { %10449 = vmatpush3.bf16.msra.mxu1 %v11972_v19  ;;  %v1262_v19 = vlaneseq }
 0x2bd   :  { %7751 = vmatpush1.bf16.msra.mxu0 %v11968_v29  ;;  %10450 = vmatprep.subr.bf16.mxu1 %v11976_v32  ;;  %v12030_v29 = vld [vmem:[%s16281_s1 + $0xb04] ss:$28 sps:$4 sm:$0xff]  }
 0x2be   :  { %7752 = vmatprep.subr.bf16.mxu0 %v11975_v31  ;;  %v12031_v31 = vld [vmem:[%s16281_s1 + $0x948] ss:$28 sps:$4 sm:$0xff]  }
 0x2bf   :  { %v12032_v32 = vld [vmem:[%s16281_s1 + $0x788] ss:$28 sps:$4 sm:$0xff]  }
 0x2c0   :  { %10451 = vmatpush3.bf16.msra.mxu1 %v11977_v35 }
 0x2c1   :  { %7753 = vmatpush1.bf16.msra.mxu0 %v11973_v33  ;;  %10458 = vmatprep.subr.bf16.mxu1 %v11981_v37 }
 0x2c2   :  { %7754 = vmatprep.subr.bf16.mxu0 %v11980_v36 }
 0x2c3   :  { %8099 = vmatmul.mubr.bf16.vlgmr.msra.gmra.mrb[8].mxu1 %v12806_v6  ;;  %v11988_v6 = vld [vmem:[%s16281_s1 + $0x940] ss:$28 sps:$4 sm:$0xff]  }
 0x2c4   :  { %10459 = vmatpush3.bf16.msra.mxu1 %v11982_v41  ;;  %8138 = vmatprep.mubr.bf16.mxu1 %v12748_v51  ;;  %v11993_v51 = vld [vmem:[%s16281_s1 + $0x978] ss:$28 sps:$4 sm:$0xff]  }
 0x2c5   :  { %7755 = vmatpush1.bf16.msra.mxu0 %v11978_v40  ;;  %10460 = vmatprep.subr.bf16.mxu1 %v11986_v45 }
 0x2c6   :  { %7756 = vmatprep.subr.bf16.mxu0 %v11985_v44 }
 0x2c8   :  { %10461 = vmatpush3.bf16.msra.mxu1 %v11987_v14 }
 0x2c9   :  { %7757 = vmatpush1.bf16.msra.mxu0 %v11983_v46  ;;  %10462 = vmatprep.subr.bf16.mxu1 %v11991_v50 }
 0x2ca   :  { %7758 = vmatprep.subr.bf16.mxu0 %v11990_v49 }
 0x2cc   :  { %10463 = vmatpush3.bf16.msra.mxu1 %v11992_v53 }
 0x2cd   :  { %7759 = vmatpush1.bf16.msra.mxu0 %v11988_v6  ;;  %10464 = vmatprep.subr.bf16.mxu1 %v11996_v57 }
 0x2ce   :  { %7760 = vmatprep.subr.bf16.mxu0 %v11995_v54 }
 0x2d0   :  { %10465 = vmatpush3.bf16.msra.mxu1 %v11997_v59 }
 0x2d1   :  { %7761 = vmatpush1.bf16.msra.mxu0 %v11993_v51  ;;  %10466 = vmatprep.subr.bf16.mxu1 %v12001_v61 }
 0x2d2   :  { %7762 = vmatprep.subr.bf16.mxu0 %v12000_v60 }
 0x2d4   :  { %10467 = vmatpush3.bf16.msra.mxu1 %v12002_v39 }
 0x2d5   :  { %7763 = vmatpush1.bf16.msra.mxu0 %v11998_v62  ;;  %10468 = vmatprep.subr.bf16.mxu1 %v12006_v1 }
 0x2d6   :  { %7764 = vmatprep.subr.bf16.mxu0 %v12005_v0 }
 0x2d8   :  { %10469 = vmatpush3.bf16.msra.mxu1 %v12007_v3 }
 0x2d9   :  { %7765 = vmatpush1.bf16.msra.mxu0 %v12003_v2  ;;  %10470 = vmatprep.subr.bf16.mxu1 %v12011_v5 }
 0x2da   :  { %7766 = vmatprep.subr.bf16.mxu0 %v12010_v4 }
 0x2dc   :  { %10471 = vmatpush3.bf16.msra.mxu1 %v12012_v10 }
 0x2dd   :  { %7767 = vmatpush1.bf16.msra.mxu0 %v12008_v9  ;;  %10472 = vmatprep.subr.bf16.mxu1 %v12016_v11 }
 0x2de   :  { %7768 = vmatprep.subr.bf16.mxu0 %v12015_v47 }
 0x2e0   :  { %10473 = vmatpush3.bf16.msra.mxu1 %v12017_v12 }
 0x2e1   :  { %7769 = vmatpush1.bf16.msra.mxu0 %v12013_v27  ;;  %10480 = vmatprep.subr.bf16.mxu1 %v12021_v17 }
 0x2e2   :  { %7779 = vmatprep.subr.bf16.mxu0 %v12020_v13 }
 0x2e3   :  { %8139 = vmatmul.mubr.bf16.vlgmr.msra.gmra.mrb[12].mxu1 %v12808_v7  ;;  %v12028_v7 = vld [vmem:[%s16281_s1 + $0xb00] ss:$28 sps:$4 sm:$0xff]  }
 0x2e4   :  { %7771 = vmatmul.mubr.bf16.vlgmr.msra.gmra.mrb[4].mxu0 %v13023_v16  ;;  %10481 = vmatpush3.bf16.msra.mxu1 %v12022_v56 }
 0x2e5   :  { %7780 = vmatpush1.bf16.msra.mxu0 %v12018_v18  ;;  %10482 = vmatprep.subr.bf16.mxu1 %v12026_v24 }
 0x2e6   :  { %7781 = vmatprep.subr.bf16.mxu0 %v12025_v23  ;;  %8178 = vmatprep.mubr.bf16.mxu1 %v12895_v34 }
 0x2e7   :  { %7811 = vmatprep.mubr.bf16.mxu0 %v13038_v20 }
 0x2e8   :  { %10483 = vmatpush3.bf16.msra.mxu1 %v12027_v28 }
 0x2e9   :  { %7782 = vmatpush1.bf16.msra.mxu0 %v12023_v25 }
 0x2ea   :  { %14 = vsyncpa [#allocation3], 0  ;;  %v15005_v33 = vshrl.u32 %v1262_v19, 7  ;;  %7783 = vmatprep.subr.bf16.mxu0 %v12030_v29  ;;  %10484 = vmatprep.subr.bf16.mxu1 %v12031_v31  ;;  %v12035_v34 = vld [vmem:[%s16281_s1 + $0xb3c] ss:$28 sps:$4 sm:$0xff]   ;;  %vm12544_vm0 = vmmov 0  }
 0x2eb   :  { %v12036_v35 = vld [vmem:[%s16281_s1 + $0x980] ss:$28 sps:$4 sm:$0xff]   ;;  %v12033_v36 = vld [vmem:[%s16281_s1 + $0xb38] ss:$28 sps:$4 sm:$0xff]   ;;  %v12038_v14 = vld [vmem:[%s16281_s1 + $0xb70] ss:$28 sps:$4 sm:$0xff]  }
 0x2ec   :  { %10485 = vmatpush3.bf16.msra.mxu1 %v12032_v32  ;;  %v12037_v37 = vld [vmem:[%s16281_s1 + $0x7c0] ss:$28 sps:$4 sm:$0xff]   ;;  %v1264_v40 = vsub.s32 0, %v15005_v33  ;;  %v12040_v41 = vld [vmem:[%s16281_s1 + $0xb74] ss:$28 sps:$4 sm:$0xff]   ;;  %v1268_v46 = vsub.s32 1, %v15005_v33 }
 0x2ed   :  { %7784 = vmatpush1.bf16.msra.mxu0 %v12028_v7  ;;  %10486 = vmatprep.subr.bf16.mxu1 %v12036_v35  ;;  %v12041_v44 = vld [vmem:[%s16281_s1 + $0x9b8] ss:$28 sps:$4 sm:$0xff]   ;;  %v15029_v45 = vld [vmem:[%s16282_s2] sm:$0x7f]  ;;  %v12045_v6 = vld [vmem:[%s16281_s1 + $0xbac] ss:$28 sps:$4 sm:$0xff]  }
 0x2ee   :  { %7785 = vmatprep.subr.bf16.mxu0 %v12035_v34  ;;  %v12042_v49 = vld [vmem:[%s16281_s1 + $0x7f8] ss:$28 sps:$4 sm:$0xff]   ;;  %v1265_v50 = vrot.slane %v15029_v45, %v1264_v40  ;;  %v12046_v53 = vld [vmem:[%s16281_s1 + $0x9f0] ss:$28 sps:$4 sm:$0xff]   ;;  %v1269_v54 = vrot.slane %v15029_v45, %v1268_v46  ;;  %v12043_v57 = vld [vmem:[%s16281_s1 + $0xba8] ss:$28 sps:$4 sm:$0xff]  }
 0x2ef   :  { %v12047_v51 = vld [vmem:[%s16281_s1 + $0x830] ss:$28 sps:$4 sm:$0xff]   ;;  %v12050_v60 = vld [vmem:[%s16281_s1 + $0xbe4] ss:$28 sps:$4 sm:$0xff]   ;;  %v12053_v10 = vld [vmem:[%s16281_s1 + $0xc18] ss:$28 sps:$4 sm:$0xff]  }
 0x2f0   :  { %10487 = vmatpush3.bf16.msra.mxu1 %v12037_v37  ;;  %v6871_v59 = vadd.f32 %v13636_v52, %v1265_v50  ;;  %v12051_v61 = vld [vmem:[%s16281_s1 + $0xa28] ss:$28 sps:$4 sm:$0xff]   ;;  %v6873_v62 = vadd.f32 %v13644_v55, %v1269_v54  ;;  %v12048_v52 = vld [vmem:[%s16281_s1 + $0xbe0] ss:$28 sps:$4 sm:$0xff]   ;;  %v12060_v11 = vld [vmem:[%s16281_s1 + $0xc54] ss:$28 sps:$4 sm:$0xff]  }
 0x2f1   :  { %7786 = vmatpush1.bf16.msra.mxu0 %v12033_v36  ;;  %10488 = vmatprep.subr.bf16.mxu1 %v12041_v44  ;;  %v12052_v4 = vld [vmem:[%s16281_s1 + $0x868] ss:$28 sps:$4 sm:$0xff]   ;;  %v12055_v55 = vld [vmem:[%s16281_s1 + $0xc1c] ss:$28 sps:$4 sm:$0xff]   ;;  %v12058_v12 = vld [vmem:[%s16281_s1 + $0xc50] ss:$28 sps:$4 sm:$0xff]  }
 0x2f2   :  { %7787 = vmatprep.subr.bf16.mxu0 %v12040_v41  ;;  %v12056_v9 = vld [vmem:[%s16281_s1 + $0xa60] ss:$28 sps:$4 sm:$0xff]   ;;  %v12061_v27 = vld [vmem:[%s16281_s1 + $0xc58] ss:$28 sps:$4 sm:$0xff]   ;;  %v12065_v17 = vld [vmem:[%s16281_s1 + $0xc8c] ss:$28 sps:$4 sm:$0xff]  }
 0x2f3   :  { %v12057_v47 = vld [vmem:[%s16281_s1 + $0x8a0] ss:$28 sps:$4 sm:$0xff]   ;;  %v12062_v13 = vld [vmem:[%s16281_s1 + $0xa98] ss:$28 sps:$4 sm:$0xff]   ;;  %v12066_v18 = vld [vmem:[%s16281_s1 + $0xc90] ss:$28 sps:$4 sm:$0xff]  }
 0x2f4   :  { %10489 = vmatpush3.bf16.msra.mxu1 %v12042_v49  ;;  %v12063_v56 = vld [vmem:[%s16281_s1 + $0xc88] ss:$28 sps:$4 sm:$0xff]   ;;  %v12067_v23 = vld [vmem:[%s16281_s1 + $0xad0] ss:$28 sps:$4 sm:$0xff]   ;;  %v12068_v25 = vld [vmem:[%s16281_s1 + $0xcc0] ss:$28 sps:$4 sm:$0xff]  }
 0x2f5   :  { %7788 = vmatpush1.bf16.msra.mxu0 %v12038_v14  ;;  %10490 = vmatprep.subr.bf16.mxu1 %v12046_v53  ;;  %v12070_v24 = vld [vmem:[%s16281_s1 + $0xcc4] ss:$28 sps:$4 sm:$0xff]   ;;  %v12075_v29 = vld [vmem:[%s16281_s1 + $0xcfc] ss:$28 sps:$4 sm:$0xff]   ;;  %v12080_v7 = vld [vmem:[%s16281_s1 + $0xd34] ss:$28 sps:$4 sm:$0xff]  }
 0x2f6   :  { %7789 = vmatprep.subr.bf16.mxu0 %v12045_v6  ;;  %v12072_v28 = vld [vmem:[%s16281_s1 + $0xb08] ss:$28 sps:$4 sm:$0xff]   ;;  %v12073_v19 = vld [vmem:[%s16281_s1 + $0xcf8] ss:$28 sps:$4 sm:$0xff]   ;;  %v12077_v31 = vld [vmem:[%s16281_s1 + $0xb40] ss:$28 sps:$4 sm:$0xff]  }
 0x2f7   :  { %v7239_v39 = vpop.f32.mrb[0].mxu0  ;;  %v12081_v32 = vld [vmem:[%s16281_s1 + $0xd38] ss:$28 sps:$4 sm:$0xff]   ;;  %v12078_v34 = vld [vmem:[%s16281_s1 + $0xd30] ss:$28 sps:$4 sm:$0xff]   ;;  %vm8879_vm1 = vcmask 130048  }
 0x2f8   :  { %v15060_v0 = vadd.f32 %v7239_v39, %v6871_v59  ;;  %v7241_v1 = vpop.f32.mrb[1].mxu0  ;;  %10491 = vmatpush3.bf16.msra.mxu1 %v12047_v51  ;;  %v12082_v35 = vld [vmem:[%s16281_s1 + $0xb78] ss:$28 sps:$4 sm:$0xff]   ;;  %v12085_v36 = vld [vmem:[%s16281_s1 + $0xd6c] ss:$28 sps:$4 sm:$0xff]   ;;  %s12545_s23 = smov [#allocation2]  }
 0x2f9   :  { %v15062_v2 = vadd.f32 %v7241_v1, %v6873_v62  ;;  %v7243_v3 = vpop.f32.mrb[2].mxu0  ;;  %7790 = vmatpush1.bf16.msra.mxu0 %v12043_v57  ;;  %10492 = vmatprep.subr.bf16.mxu1 %v12051_v61  ;;  %v12086_v37 = vld [vmem:[%s16281_s1 + $0xd70] ss:$28 sps:$4 sm:$0xff]   ;;  %v12083_v40 = vld [vmem:[%s16281_s1 + $0xd68] ss:$28 sps:$4 sm:$0xff]   ;;  %s9276_s24 = sshll.u32 %s12545_s23, 4  ;;  %s9277_s24 = int_to_ptr.vmem [resolvable:$true] %s9276_s24 }
 0x2fa   :  { %v7244_v5 = vpop.f32.mrb[3].mxu0  ;;  %7791 = vmatprep.subr.bf16.mxu0 %v12050_v60  ;;  %v12087_v41 = vld [vmem:[%s16281_s1 + $0xbb0] ss:$28 sps:$4 sm:$0xff]   ;;  %v12090_v44 = vld [vmem:[%s16281_s1 + $0xda4] ss:$28 sps:$4 sm:$0xff]   ;;  %p12523_p1 = scmp.lt.s32.totalorder %s9277_s24, %s9277_s24 }
 0x2fb   :  { %v12091_v46 = vld [vmem:[%s16281_s1 + $0xda8] ss:$28 sps:$4 sm:$0xff]   ;;  %v12088_v14 = vld [vmem:[%s16281_s1 + $0xda0] ss:$28 sps:$4 sm:$0xff]   ;;  %v12093_v53 = vld [vmem:[%s16281_s1 + $0xdd8] ss:$28 sps:$4 sm:$0xff]  }
 0x2fc   :  { %10493 = vmatpush3.bf16.msra.mxu1 %v12052_v4  ;;  %v12092_v49 = vld [vmem:[%s16281_s1 + $0xbe8] ss:$28 sps:$4 sm:$0xff]   ;;  %v12095_v50 = vld [vmem:[%s16281_s1 + $0xddc] ss:$28 sps:$4 sm:$0xff]   ;;  %v12100_v57 = vld [vmem:[%s16281_s1 + $0xe14] ss:$28 sps:$4 sm:$0xff]  }
 0x2fd   :  { %7792 = vmatpush1.bf16.msra.mxu0 %v12048_v52  ;;  %10494 = vmatprep.subr.bf16.mxu1 %v12056_v9  ;;  %v12096_v6 = vld [vmem:[%s16281_s1 + $0xde0] ss:$28 sps:$4 sm:$0xff]   ;;  %v12101_v51 = vld [vmem:[%s16281_s1 + $0xfd8] ss:$28 sps:$4 sm:$0xff]   ;;  %v12098_v59 = vld [vmem:[%s16281_s1 + $0xe10] ss:$28 sps:$4 sm:$0xff]  }
 0x2fe   :  { %7793 = vmatprep.subr.bf16.mxu0 %v12055_v55  ;;  %v12097_v54 = vld [vmem:[%s16281_s1 + $0xc20] ss:$28 sps:$4 sm:$0xff]   ;;  %v12102_v60 = vld [vmem:[%s16281_s1 + $0xe18] ss:$28 sps:$4 sm:$0xff]   ;;  %v12105_v61 = vld [vmem:[%s16281_s1 + $0xe4c] ss:$28 sps:$4 sm:$0xff]  }
 0x2ff   :  { %v12106_v62 = vld [vmem:[%s16281_s1 + $0x1010] ss:$28 sps:$4 sm:$0xff]   ;;  %v12103_v39 = vld [vmem:[%s16281_s1 + $0xe48] ss:$28 sps:$4 sm:$0xff]   ;;  %v12108_v52 = vld [vmem:[%s16281_s1 + $0xe80] ss:$28 sps:$4 sm:$0xff]  }
 0x300   :  { %10495 = vmatpush3.bf16.msra.mxu1 %v12057_v47  ;;  %v12107_v1 = vld [vmem:[%s16281_s1 + $0xe50] ss:$28 sps:$4 sm:$0xff]   ;;  %v12110_v3 = vld [vmem:[%s16281_s1 + $0xe84] ss:$28 sps:$4 sm:$0xff]   ;;  %v12115_v5 = vld [vmem:[%s16281_s1 + $0xebc] ss:$28 sps:$4 sm:$0xff]  }
 0x301   :  { %7794 = vmatpush1.bf16.msra.mxu0 %v12053_v10  ;;  %10502 = vmatprep.subr.bf16.mxu1 %v12061_v27  ;;  %v12112_v4 = vld [vmem:[%s16281_s1 + $0xe88] ss:$28 sps:$4 sm:$0xff]   ;;  %v12113_v55 = vld [vmem:[%s16281_s1 + $0xeb8] ss:$28 sps:$4 sm:$0xff]   ;;  %v12117_v9 = vld [vmem:[%s16281_s1 + $0xec0] ss:$28 sps:$4 sm:$0xff]  }
 0x302   :  { %7795 = vmatprep.subr.bf16.mxu0 %v12060_v11  ;;  %v12120_v10 = vld [vmem:[%s16281_s1 + $0xef4] ss:$28 sps:$4 sm:$0xff]  }
 0x303   :  { %8179 = vmatmul.mubr.bf16.vlgmr.msra.gmra.mrb[16].mxu1 %v13023_v16  ;;  %v12071_v16 = vld [vmem:[%s16281_s1 + $0xcc8] ss:$28 sps:$4 sm:$0xff]   ;;  %v12121_v47 = vld [vmem:[%s16281_s1 + $0x10b8] ss:$28 sps:$4 sm:$0xff]   ;;  %v12118_v11 = vld [vmem:[%s16281_s1 + $0xef0] ss:$28 sps:$4 sm:$0xff]  }
 0x304   :  { %10503 = vmatpush3.bf16.msra.mxu1 %v12062_v13  ;;  %8218 = vmatprep.mubr.bf16.mxu1 %v13038_v20  ;;  %v12076_v20 = vld [vmem:[%s16281_s1 + $0xd00] ss:$28 sps:$4 sm:$0xff]   ;;  %v12122_v27 = vld [vmem:[%s16281_s1 + $0xef8] ss:$28 sps:$4 sm:$0xff]   ;;  %v12126_v13 = vld [vmem:[%s16281_s1 + $0x10f0] ss:$28 sps:$4 sm:$0xff]  }
 0x305   :  { %7796 = vmatpush1.bf16.msra.mxu0 %v12058_v12  ;;  %10504 = vmatprep.subr.bf16.mxu1 %v12066_v18  ;;  %v12125_v12 = vld [vmem:[%s16281_s1 + $0xf2c] ss:$28 sps:$4 sm:$0xff]  }
 0x306   :  { %7797 = vmatprep.subr.bf16.mxu0 %v12065_v17  ;;  %v12123_v17 = vld [vmem:[%s16281_s1 + $0xf28] ss:$28 sps:$4 sm:$0xff]   ;;  %v12127_v18 = vld [vmem:[%s16281_s1 + $0xf30] ss:$28 sps:$4 sm:$0xff]  }
 0x308   :  { %10505 = vmatpush3.bf16.msra.mxu1 %v12067_v23  ;;  %v12131_v23 = vld [vmem:[%s16281_s1 + $0x1128] ss:$28 sps:$4 sm:$0xff]  }
 0x309   :  { %7798 = vmatpush1.bf16.msra.mxu0 %v12063_v56  ;;  %10506 = vmatprep.subr.bf16.mxu1 %v12071_v16  ;;  %v12130_v56 = vld [vmem:[%s16281_s1 + $0xf64] ss:$28 sps:$4 sm:$0xff]  }
 0x30a   :  { %7799 = vmatprep.subr.bf16.mxu0 %v12070_v24  ;;  %v12128_v24 = vld [vmem:[%s16281_s1 + $0xf60] ss:$28 sps:$4 sm:$0xff]   ;;  %v12132_v16 = vld [vmem:[%s16281_s1 + $0xf68] ss:$28 sps:$4 sm:$0xff]  }
 0x30c   :  { %10507 = vmatpush3.bf16.msra.mxu1 %v12072_v28  ;;  %v12136_v28 = vld [vmem:[%s16281_s1 + $0x1160] ss:$28 sps:$4 sm:$0xff]  }
 0x30d   :  { %7800 = vmatpush1.bf16.msra.mxu0 %v12068_v25  ;;  %10508 = vmatprep.subr.bf16.mxu1 %v12076_v20  ;;  %v12135_v25 = vld [vmem:[%s16281_s1 + $0xf9c] ss:$28 sps:$4 sm:$0xff]  }
 0x30e   :  { %7801 = vmatprep.subr.bf16.mxu0 %v12075_v29  ;;  %v12133_v29 = vld [vmem:[%s16281_s1 + $0xf98] ss:$28 sps:$4 sm:$0xff]   ;;  %v12137_v20 = vld [vmem:[%s16281_s1 + $0xfa0] ss:$28 sps:$4 sm:$0xff]  }
 0x310   :  { %10509 = vmatpush3.bf16.msra.mxu1 %v12077_v31  ;;  %v12141_v31 = vld [vmem:[%s16281_s1 + $0x1358] ss:$28 sps:$4 sm:$0xff]  }
 0x311   :  { %7802 = vmatpush1.bf16.msra.mxu0 %v12073_v19  ;;  %10510 = vmatprep.subr.bf16.mxu1 %v12081_v32  ;;  %v12140_v19 = vld [vmem:[%s16281_s1 + $0xfd4] ss:$28 sps:$4 sm:$0xff]  }
 0x312   :  { %7803 = vmatprep.subr.bf16.mxu0 %v12080_v7  ;;  %v12138_v7 = vld [vmem:[%s16281_s1 + $0xfd0] ss:$28 sps:$4 sm:$0xff]   ;;  %v12142_v32 = vld [vmem:[%s16281_s1 + $0x1198] ss:$28 sps:$4 sm:$0xff]  }
 0x314   :  { %10511 = vmatpush3.bf16.msra.mxu1 %v12082_v35  ;;  %v12146_v35 = vld [vmem:[%s16281_s1 + $0x1390] ss:$28 sps:$4 sm:$0xff]  }
 0x315   :  { %7804 = vmatpush1.bf16.msra.mxu0 %v12078_v34  ;;  %10512 = vmatprep.subr.bf16.mxu1 %v12086_v37  ;;  %v12145_v34 = vld [vmem:[%s16281_s1 + $0x100c] ss:$28 sps:$4 sm:$0xff]  }
 0x316   :  { %7805 = vmatprep.subr.bf16.mxu0 %v12085_v36  ;;  %v12143_v36 = vld [vmem:[%s16281_s1 + $0x1008] ss:$28 sps:$4 sm:$0xff]   ;;  %v12147_v37 = vld [vmem:[%s16281_s1 + $0x11d0] ss:$28 sps:$4 sm:$0xff]  }
 0x318   :  { %10513 = vmatpush3.bf16.msra.mxu1 %v12087_v41  ;;  %v12151_v41 = vld [vmem:[%s16281_s1 + $0x13c8] ss:$28 sps:$4 sm:$0xff]  }
 0x319   :  { %7806 = vmatpush1.bf16.msra.mxu0 %v12083_v40  ;;  %10514 = vmatprep.subr.bf16.mxu1 %v12091_v46  ;;  %v12150_v40 = vld [vmem:[%s16281_s1 + $0x1044] ss:$28 sps:$4 sm:$0xff]  }
 0x31a   :  { %7807 = vmatprep.subr.bf16.mxu0 %v12090_v44  ;;  %v12148_v44 = vld [vmem:[%s16281_s1 + $0x1040] ss:$28 sps:$4 sm:$0xff]   ;;  %v12152_v46 = vld [vmem:[%s16281_s1 + $0x1208] ss:$28 sps:$4 sm:$0xff]  }
 0x31c   :  { %10515 = vmatpush3.bf16.msra.mxu1 %v12092_v49  ;;  %v12156_v49 = vld [vmem:[%s16281_s1 + $0x1400] ss:$28 sps:$4 sm:$0xff]  }
 0x31d   :  { %7808 = vmatpush1.bf16.msra.mxu0 %v12088_v14  ;;  %10516 = vmatprep.subr.bf16.mxu1 %v12096_v6  ;;  %v12155_v14 = vld [vmem:[%s16281_s1 + $0x107c] ss:$28 sps:$4 sm:$0xff]  }
 0x31e   :  { %7809 = vmatprep.subr.bf16.mxu0 %v12095_v50  ;;  %v12153_v50 = vld [vmem:[%s16281_s1 + $0x1078] ss:$28 sps:$4 sm:$0xff]   ;;  %v12157_v6 = vld [vmem:[%s16281_s1 + $0x1240] ss:$28 sps:$4 sm:$0xff]  }
 0x320   :  { %10517 = vmatpush3.bf16.msra.mxu1 %v12097_v54  ;;  %v12161_v54 = vld [vmem:[%s16281_s1 + $0x1438] ss:$28 sps:$4 sm:$0xff]  }
 0x321   :  { %7810 = vmatpush1.bf16.msra.mxu0 %v12093_v53  ;;  %10524 = vmatprep.subr.bf16.mxu1 %v12101_v51  ;;  %v12160_v53 = vld [vmem:[%s16281_s1 + $0x10b4] ss:$28 sps:$4 sm:$0xff]  }
 0x322   :  { %7820 = vmatprep.subr.bf16.mxu0 %v12100_v57  ;;  %v12158_v57 = vld [vmem:[%s16281_s1 + $0x10b0] ss:$28 sps:$4 sm:$0xff]   ;;  %v12162_v51 = vld [vmem:[%s16281_s1 + $0x1278] ss:$28 sps:$4 sm:$0xff]  }
 0x323   :  { %8219 = vmatmul.mubr.bf16.vlgmr.msra.gmra.mrb[20].mxu1 %v13229_v26 }
 0x324   :  { %7812 = vmatmul.mubr.bf16.vlgmr.msra.gmra.mrb[4].mxu0 %v13229_v26  ;;  %10525 = vmatpush3.bf16.msra.mxu1 %v12102_v60  ;;  %v12111_v26 = vld [vmem:[%s16281_s1 + $0x1048] ss:$28 sps:$4 sm:$0xff]   ;;  %v12166_v60 = vld [vmem:[%s16281_s1 + $0x1470] ss:$28 sps:$4 sm:$0xff]  }
 0x325   :  { %7821 = vmatpush1.bf16.msra.mxu0 %v12098_v59  ;;  %10526 = vmatprep.subr.bf16.mxu1 %v12106_v62  ;;  %v12165_v59 = vld [vmem:[%s16281_s1 + $0x10ec] ss:$28 sps:$4 sm:$0xff]  }
 0x326   :  { %7822 = vmatprep.subr.bf16.mxu0 %v12105_v61  ;;  %8258 = vmatprep.mubr.bf16.mxu1 %v13247_v30  ;;  %v12163_v61 = vld [vmem:[%s16281_s1 + $0x10e8] ss:$28 sps:$4 sm:$0xff]   ;;  %v12167_v62 = vld [vmem:[%s16281_s1 + $0x12b0] ss:$28 sps:$4 sm:$0xff]  }
 0x327   :  { %7852 = vmatprep.mubr.bf16.mxu0 %v13247_v30  ;;  %v12116_v30 = vld [vmem:[%s16281_s1 + $0x1080] ss:$28 sps:$4 sm:$0xff]  }
 0x328   :  { %10527 = vmatpush3.bf16.msra.mxu1 %v12107_v1  ;;  %v12171_v1 = vld [vmem:[%s16281_s1 + $0x14a8] ss:$28 sps:$4 sm:$0xff]  }
 0x329   :  { %7823 = vmatpush1.bf16.msra.mxu0 %v12103_v39  ;;  %10528 = vmatprep.subr.bf16.mxu1 %v12111_v26  ;;  %v12170_v39 = vld [vmem:[%s16281_s1 + $0x1124] ss:$28 sps:$4 sm:$0xff]  }
 0x32a   :  { %7824 = vmatprep.subr.bf16.mxu0 %v12110_v3  ;;  %v12168_v3 = vld [vmem:[%s16281_s1 + $0x1120] ss:$28 sps:$4 sm:$0xff]   ;;  %v12172_v26 = vld [vmem:[%s16281_s1 + $0x12e8] ss:$28 sps:$4 sm:$0xff]  }
 0x32c   :  { %10529 = vmatpush3.bf16.msra.mxu1 %v12112_v4  ;;  %v12176_v4 = vld [vmem:[%s16281_s1 + $0x14e0] ss:$28 sps:$4 sm:$0xff]  }
 0x32d   :  { %7825 = vmatpush1.bf16.msra.mxu0 %v12108_v52  ;;  %10530 = vmatprep.subr.bf16.mxu1 %v12116_v30  ;;  %v12175_v52 = vld [vmem:[%s16281_s1 + $0x115c] ss:$28 sps:$4 sm:$0xff]  }
 0x32e   :  { %7826 = vmatprep.subr.bf16.mxu0 %v12115_v5  ;;  %v12173_v5 = vld [vmem:[%s16281_s1 + $0x1158] ss:$28 sps:$4 sm:$0xff]   ;;  %v12177_v30 = vld [vmem:[%s16281_s1 + $0x1320] ss:$28 sps:$4 sm:$0xff]  }
 0x330   :  { %10531 = vmatpush3.bf16.msra.mxu1 %v12117_v9  ;;  %v12181_v9 = vld [vmem:[%s16281_s1 + $0x16d8] ss:$28 sps:$4 sm:$0xff]  }
 0x331   :  { %7827 = vmatpush1.bf16.msra.mxu0 %v12113_v55  ;;  %10532 = vmatprep.subr.bf16.mxu1 %v12121_v47  ;;  %v12180_v55 = vld [vmem:[%s16281_s1 + $0x1194] ss:$28 sps:$4 sm:$0xff]  }
 0x332   :  { %7828 = vmatprep.subr.bf16.mxu0 %v12120_v10  ;;  %v12178_v10 = vld [vmem:[%s16281_s1 + $0x1190] ss:$28 sps:$4 sm:$0xff]   ;;  %v12182_v47 = vld [vmem:[%s16281_s1 + $0x1518] ss:$28 sps:$4 sm:$0xff]  }
 0x334   :  { %10533 = vmatpush3.bf16.msra.mxu1 %v12122_v27  ;;  %v12186_v27 = vld [vmem:[%s16281_s1 + $0x1710] ss:$28 sps:$4 sm:$0xff]  }
 0x335   :  { %7829 = vmatpush1.bf16.msra.mxu0 %v12118_v11  ;;  %10534 = vmatprep.subr.bf16.mxu1 %v12126_v13  ;;  %v12185_v11 = vld [vmem:[%s16281_s1 + $0x11cc] ss:$28 sps:$4 sm:$0xff]  }
 0x336   :  { %7830 = vmatprep.subr.bf16.mxu0 %v12125_v12  ;;  %v12183_v12 = vld [vmem:[%s16281_s1 + $0x11c8] ss:$28 sps:$4 sm:$0xff]   ;;  %v12187_v13 = vld [vmem:[%s16281_s1 + $0x1550] ss:$28 sps:$4 sm:$0xff]  }
 0x338   :  { %10535 = vmatpush3.bf16.msra.mxu1 %v12127_v18  ;;  %v12188_v18 = vld [vmem:[%s16281_s1 + $0x1200] ss:$28 sps:$4 sm:$0xff]  }
 0x339   :  { %7831 = vmatpush1.bf16.msra.mxu0 %v12123_v17  ;;  %10536 = vmatprep.subr.bf16.mxu1 %v12131_v23  ;;  %v12190_v17 = vld [vmem:[%s16281_s1 + $0x1204] ss:$28 sps:$4 sm:$0xff]   ;;  %v12195_v23 = vld [vmem:[%s16281_s1 + $0x123c] ss:$28 sps:$4 sm:$0xff]  }
 0x33a   :  { %7832 = vmatprep.subr.bf16.mxu0 %v12130_v56  ;;  %v12192_v56 = vld [vmem:[%s16281_s1 + $0x1588] ss:$28 sps:$4 sm:$0xff]  }
 0x33c   :  { %10537 = vmatpush3.bf16.msra.mxu1 %v12132_v16  ;;  %v12197_v16 = vld [vmem:[%s16281_s1 + $0x15c0] ss:$28 sps:$4 sm:$0xff]  }
 0x33d   :  { %7833 = vmatpush1.bf16.msra.mxu0 %v12128_v24  ;;  %10538 = vmatprep.subr.bf16.mxu1 %v12136_v28  ;;  %v12193_v24 = vld [vmem:[%s16281_s1 + $0x1238] ss:$28 sps:$4 sm:$0xff]  }
 0x33e   :  { %7834 = vmatprep.subr.bf16.mxu0 %v12135_v25  ;;  %v12200_v25 = vld [vmem:[%s16281_s1 + $0x1274] ss:$28 sps:$4 sm:$0xff]  }
 0x33f   :  { %v12201_v28 = vld [vmem:[%s16281_s1 + $0x17b8] ss:$28 sps:$4 sm:$0xff]  }
 0x340   :  { %10539 = vmatpush3.bf16.msra.mxu1 %v12137_v20  ;;  %v12202_v20 = vld [vmem:[%s16281_s1 + $0x15f8] ss:$28 sps:$4 sm:$0xff]  }
 0x341   :  { %7835 = vmatpush1.bf16.msra.mxu0 %v12133_v29  ;;  %10546 = vmatprep.subr.bf16.mxu1 %v12141_v31  ;;  %v12198_v29 = vld [vmem:[%s16281_s1 + $0x1270] ss:$28 sps:$4 sm:$0xff]  }
 0x342   :  { %7836 = vmatprep.subr.bf16.mxu0 %v12140_v19  ;;  %v12205_v19 = vld [vmem:[%s16281_s1 + $0x12ac] ss:$28 sps:$4 sm:$0xff]  }
 0x343   :  { %8259 = vmatmul.mubr.bf16.vlgmr.msra.gmra.mrb[24].mxu1 %v13435_v38  ;;  %v12206_v31 = vld [vmem:[%s16281_s1 + $0x17f0] ss:$28 sps:$4 sm:$0xff]  }
 0x344   :  { %10547 = vmatpush3.bf16.msra.mxu1 %v12142_v32  ;;  %8298 = vmatprep.mubr.bf16.mxu1 %v13456_v43  ;;  %v12207_v32 = vld [vmem:[%s16281_s1 + $0x1630] ss:$28 sps:$4 sm:$0xff]  }
 0x345   :  { %7837 = vmatpush1.bf16.msra.mxu0 %v12138_v7  ;;  %10548 = vmatprep.subr.bf16.mxu1 %v12146_v35  ;;  %v12203_v7 = vld [vmem:[%s16281_s1 + $0x12a8] ss:$28 sps:$4 sm:$0xff]  }
 0x346   :  { %7838 = vmatprep.subr.bf16.mxu0 %v12145_v34  ;;  %v12210_v34 = vld [vmem:[%s16281_s1 + $0x12e4] ss:$28 sps:$4 sm:$0xff]  }
 0x347   :  { %v12211_v35 = vld [vmem:[%s16281_s1 + $0x1828] ss:$28 sps:$4 sm:$0xff]  }
 0x348   :  { %10549 = vmatpush3.bf16.msra.mxu1 %v12147_v37 }
 0x349   :  { %7839 = vmatpush1.bf16.msra.mxu0 %v12143_v36  ;;  %10550 = vmatprep.subr.bf16.mxu1 %v12151_v41  ;;  %v12208_v41 = vld [vmem:[%s16281_s1 + $0x12e0] ss:$28 sps:$4 sm:$0xff]  }
 0x34a   :  { %7840 = vmatprep.subr.bf16.mxu0 %v12150_v40 }
 0x34c   :  { %10551 = vmatpush3.bf16.msra.mxu1 %v12152_v46 }
 0x34d   :  { %7841 = vmatpush1.bf16.msra.mxu0 %v12148_v44  ;;  %10552 = vmatprep.subr.bf16.mxu1 %v12156_v49  ;;  %v12212_v44 = vld [vmem:[%s16281_s1 + $0x1668] ss:$28 sps:$4 sm:$0xff]   ;;  %v12216_v49 = vld [vmem:[%s16281_s1 + $0x1860] ss:$28 sps:$4 sm:$0xff]  }
 0x34e   :  { %7842 = vmatprep.subr.bf16.mxu0 %v12155_v14  ;;  %v12215_v14 = vld [vmem:[%s16281_s1 + $0x131c] ss:$28 sps:$4 sm:$0xff]  }
 0x350   :  { %10553 = vmatpush3.bf16.msra.mxu1 %v12157_v6  ;;  %v12217_v6 = vld [vmem:[%s16281_s1 + $0x16a0] ss:$28 sps:$4 sm:$0xff]  }
 0x351   :  { %7843 = vmatpush1.bf16.msra.mxu0 %v12153_v50  ;;  %10554 = vmatprep.subr.bf16.mxu1 %v12161_v54  ;;  %v12213_v50 = vld [vmem:[%s16281_s1 + $0x1318] ss:$28 sps:$4 sm:$0xff]  }
 0x352   :  { %7844 = vmatprep.subr.bf16.mxu0 %v12160_v53  ;;  %v12220_v53 = vld [vmem:[%s16281_s1 + $0x1354] ss:$28 sps:$4 sm:$0xff]  }
 0x353   :  { %v12221_v54 = vld [vmem:[%s16281_s1 + $0x1a58] ss:$28 sps:$4 sm:$0xff]  }
 0x354   :  { %10555 = vmatpush3.bf16.msra.mxu1 %v12162_v51  ;;  %v12222_v51 = vld [vmem:[%s16281_s1 + $0x1898] ss:$28 sps:$4 sm:$0xff]  }
 0x355   :  { %7845 = vmatpush1.bf16.msra.mxu0 %v12158_v57  ;;  %10556 = vmatprep.subr.bf16.mxu1 %v12166_v60  ;;  %v12218_v57 = vld [vmem:[%s16281_s1 + $0x1350] ss:$28 sps:$4 sm:$0xff]  }
 0x356   :  { %7846 = vmatprep.subr.bf16.mxu0 %v12165_v59  ;;  %v12225_v59 = vld [vmem:[%s16281_s1 + $0x138c] ss:$28 sps:$4 sm:$0xff]  }
 0x357   :  { %v12226_v60 = vld [vmem:[%s16281_s1 + $0x1a90] ss:$28 sps:$4 sm:$0xff]  }
 0x358   :  { %10557 = vmatpush3.bf16.msra.mxu1 %v12167_v62  ;;  %v12227_v62 = vld [vmem:[%s16281_s1 + $0x18d0] ss:$28 sps:$4 sm:$0xff]  }
 0x359   :  { %7847 = vmatpush1.bf16.msra.mxu0 %v12163_v61  ;;  %10558 = vmatprep.subr.bf16.mxu1 %v12171_v1  ;;  %v12223_v61 = vld [vmem:[%s16281_s1 + $0x1388] ss:$28 sps:$4 sm:$0xff]  }
 0x35a   :  { %7848 = vmatprep.subr.bf16.mxu0 %v12170_v39  ;;  %v12230_v39 = vld [vmem:[%s16281_s1 + $0x13c4] ss:$28 sps:$4 sm:$0xff]  }
 0x35b   :  { %v12231_v1 = vld [vmem:[%s16281_s1 + $0x1ac8] ss:$28 sps:$4 sm:$0xff]  }
 0x35c   :  { %10559 = vmatpush3.bf16.msra.mxu1 %v12172_v26  ;;  %v12232_v26 = vld [vmem:[%s16281_s1 + $0x1908] ss:$28 sps:$4 sm:$0xff]  }
 0x35d   :  { %7849 = vmatpush1.bf16.msra.mxu0 %v12168_v3  ;;  %10560 = vmatprep.subr.bf16.mxu1 %v12176_v4  ;;  %v12228_v3 = vld [vmem:[%s16281_s1 + $0x13c0] ss:$28 sps:$4 sm:$0xff]  }
 0x35e   :  { %7850 = vmatprep.subr.bf16.mxu0 %v12175_v52  ;;  %v12235_v52 = vld [vmem:[%s16281_s1 + $0x13fc] ss:$28 sps:$4 sm:$0xff]  }
 0x35f   :  { %v12236_v4 = vld [vmem:[%s16281_s1 + $0x1b00] ss:$28 sps:$4 sm:$0xff]  }
 0x360   :  { %10561 = vmatpush3.bf16.msra.mxu1 %v12177_v30  ;;  %v12237_v30 = vld [vmem:[%s16281_s1 + $0x1940] ss:$28 sps:$4 sm:$0xff]  }
 0x361   :  { %7851 = vmatpush1.bf16.msra.mxu0 %v12173_v5  ;;  %10568 = vmatprep.subr.bf16.mxu1 %v12181_v9  ;;  %v12233_v5 = vld [vmem:[%s16281_s1 + $0x13f8] ss:$28 sps:$4 sm:$0xff]  }
 0x362   :  { %7861 = vmatprep.subr.bf16.mxu0 %v12180_v55  ;;  %v12240_v55 = vld [vmem:[%s16281_s1 + $0x1434] ss:$28 sps:$4 sm:$0xff]  }
 0x363   :  { %8299 = vmatmul.mubr.bf16.vlgmr.msra.gmra.mrb[28].mxu1 %v13653_v58  ;;  %v12241_v9 = vld [vmem:[%s16281_s1 + $0x1b38] ss:$28 sps:$4 sm:$0xff]  }
 0x364   :  { %7853 = vmatmul.mubr.bf16.vlgmr.msra.gmra.mrb[4].mxu0 %v13435_v38  ;;  %10569 = vmatpush3.bf16.msra.mxu1 %v12182_v47  ;;  %v12191_v38 = vld [vmem:[%s16281_s1 + $0x1748] ss:$28 sps:$4 sm:$0xff]   ;;  %v12242_v47 = vld [vmem:[%s16281_s1 + $0x1978] ss:$28 sps:$4 sm:$0xff]  }
 0x365   :  { %7862 = vmatpush1.bf16.msra.mxu0 %v12178_v10  ;;  %10570 = vmatprep.subr.bf16.mxu1 %v12186_v27  ;;  %v12238_v10 = vld [vmem:[%s16281_s1 + $0x1430] ss:$28 sps:$4 sm:$0xff]  }
 0x366   :  { %7863 = vmatprep.subr.bf16.mxu0 %v12185_v11  ;;  %8338 = vmatprep.mubr.bf16.mxu1 %v13669_v63  ;;  %v12245_v11 = vld [vmem:[%s16281_s1 + $0x146c] ss:$28 sps:$4 sm:$0xff]  }
 0x367   :  { %7893 = vmatprep.mubr.bf16.mxu0 %v13456_v43  ;;  %v12196_v43 = vld [vmem:[%s16281_s1 + $0x1780] ss:$28 sps:$4 sm:$0xff]   ;;  %v12246_v27 = vld [vmem:[%s16281_s1 + $0x1b70] ss:$28 sps:$4 sm:$0xff]  }
 0x368   :  { %10571 = vmatpush3.bf16.msra.mxu1 %v12187_v13  ;;  %v12247_v13 = vld [vmem:[%s16281_s1 + $0x19b0] ss:$28 sps:$4 sm:$0xff]  }
 0x369   :  { %7864 = vmatpush1.bf16.msra.mxu0 %v12183_v12  ;;  %10572 = vmatprep.subr.bf16.mxu1 %v12191_v38  ;;  %v12243_v12 = vld [vmem:[%s16281_s1 + $0x1468] ss:$28 sps:$4 sm:$0xff]  }
 0x36a   :  { %7865 = vmatprep.subr.bf16.mxu0 %v12190_v17  ;;  %v12250_v17 = vld [vmem:[%s16281_s1 + $0x14a4] ss:$28 sps:$4 sm:$0xff]  }
 0x36b   :  { %v12251_v38 = vld [vmem:[%s16281_s1 + $0x1ba8] ss:$28 sps:$4 sm:$0xff]  }
 0x36c   :  { %10573 = vmatpush3.bf16.msra.mxu1 %v12192_v56  ;;  %v12252_v56 = vld [vmem:[%s16281_s1 + $0x19e8] ss:$28 sps:$4 sm:$0xff]  }
 0x36d   :  { %7866 = vmatpush1.bf16.msra.mxu0 %v12188_v18  ;;  %10574 = vmatprep.subr.bf16.mxu1 %v12196_v43  ;;  %v12248_v18 = vld [vmem:[%s16281_s1 + $0x14a0] ss:$28 sps:$4 sm:$0xff]  }
 0x36e   :  { %7867 = vmatprep.subr.bf16.mxu0 %v12195_v23  ;;  %v12255_v23 = vld [vmem:[%s16281_s1 + $0x14dc] ss:$28 sps:$4 sm:$0xff]  }
 0x36f   :  { %v12256_v43 = vld [vmem:[%s16281_s1 + $0x1be0] ss:$28 sps:$4 sm:$0xff]  }
 0x370   :  { %10575 = vmatpush3.bf16.msra.mxu1 %v12197_v16  ;;  %v12257_v16 = vld [vmem:[%s16281_s1 + $0x1a20] ss:$28 sps:$4 sm:$0xff]  }
 0x371   :  { %7868 = vmatpush1.bf16.msra.mxu0 %v12193_v24  ;;  %10576 = vmatprep.subr.bf16.mxu1 %v12201_v28  ;;  %v12253_v24 = vld [vmem:[%s16281_s1 + $0x14d8] ss:$28 sps:$4 sm:$0xff]  }
 0x372   :  { %7869 = vmatprep.subr.bf16.mxu0 %v12200_v25  ;;  %v12260_v25 = vld [vmem:[%s16281_s1 + $0x1514] ss:$28 sps:$4 sm:$0xff]  }
 0x373   :  { %v12261_v28 = vld [vmem:[%s16281_s1 + $0x1dd8] ss:$28 sps:$4 sm:$0xff]  }
 0x374   :  { %10577 = vmatpush3.bf16.msra.mxu1 %v12202_v20  ;;  %v12262_v20 = vld [vmem:[%s16281_s1 + $0x1c18] ss:$28 sps:$4 sm:$0xff]  }
 0x375   :  { %7870 = vmatpush1.bf16.msra.mxu0 %v12198_v29  ;;  %10578 = vmatprep.subr.bf16.mxu1 %v12206_v31  ;;  %v12258_v29 = vld [vmem:[%s16281_s1 + $0x1510] ss:$28 sps:$4 sm:$0xff]  }
 0x376   :  { %7871 = vmatprep.subr.bf16.mxu0 %v12205_v19  ;;  %v15460_v36 = vpop.f32.mrb[4].mxu1  ;;  %v12265_v19 = vld [vmem:[%s16281_s1 + $0x154c] ss:$28 sps:$4 sm:$0xff]  }
 0x377   :  { %v15462_v37 = vpop.f32.mrb[5].mxu1  ;;  %v12266_v31 = vld [vmem:[%s16281_s1 + $0x1e10] ss:$28 sps:$4 sm:$0xff]  }
 0x378   :  { %v7653_v40 = vpop.f32.mrb[6].mxu1  ;;  %10579 = vmatpush3.bf16.msra.mxu1 %v12207_v32  ;;  %v12267_v32 = vld [vmem:[%s16281_s1 + $0x1c50] ss:$28 sps:$4 sm:$0xff]  }
 0x379   :  { %7872 = vmatpush1.bf16.msra.mxu0 %v12203_v7  ;;  %v7654_v46 = vpop.f32.mrb[7].mxu1  ;;  %10580 = vmatprep.subr.bf16.mxu1 %v12211_v35  ;;  %v12263_v7 = vld [vmem:[%s16281_s1 + $0x1548] ss:$28 sps:$4 sm:$0xff]   ;;  %v12268_v35 = vld [vmem:[%s16281_s1 + $0x1580] ss:$28 sps:$4 sm:$0xff]  }
 0x37a   :  { %7873 = vmatprep.subr.bf16.mxu0 %v12210_v34  ;;  %v12270_v34 = vld [vmem:[%s16281_s1 + $0x1584] ss:$28 sps:$4 sm:$0xff]  }
 0x37b   :  { %v12272_v40 = vld [vmem:[%s16281_s1 + $0x1c88] ss:$28 sps:$4 sm:$0xff]   ;;  %v12277_v46 = vld [vmem:[%s16281_s1 + $0x1cc0] ss:$28 sps:$4 sm:$0xff]  }
 0x37c   :  { %10581 = vmatpush3.bf16.msra.mxu1 %v12212_v44  ;;  %v12273_v44 = vld [vmem:[%s16281_s1 + $0x15b8] ss:$28 sps:$4 sm:$0xff]  }
 0x37d   :  { %7874 = vmatpush1.bf16.msra.mxu0 %v12208_v41  ;;  %10582 = vmatprep.subr.bf16.mxu1 %v12216_v49  ;;  %v12275_v41 = vld [vmem:[%s16281_s1 + $0x15bc] ss:$28 sps:$4 sm:$0xff]  }
 0x37e   :  { %7875 = vmatprep.subr.bf16.mxu0 %v12215_v14  ;;  %v12280_v14 = vld [vmem:[%s16281_s1 + $0x15f4] ss:$28 sps:$4 sm:$0xff]  }
 0x37f   :  { %v12281_v49 = vld [vmem:[%s16281_s1 + $0x1eb8] ss:$28 sps:$4 sm:$0xff]  }
 0x380   :  { %10583 = vmatpush3.bf16.msra.mxu1 %v12217_v6  ;;  %v12282_v6 = vld [vmem:[%s16281_s1 + $0x1cf8] ss:$28 sps:$4 sm:$0xff]  }
 0x381   :  { %7876 = vmatpush1.bf16.msra.mxu0 %v12213_v50  ;;  %10590 = vmatprep.subr.bf16.mxu1 %v12221_v54  ;;  %v12278_v50 = vld [vmem:[%s16281_s1 + $0x15f0] ss:$28 sps:$4 sm:$0xff]  }
 0x382   :  { %7877 = vmatprep.subr.bf16.mxu0 %v12220_v53  ;;  %v12285_v53 = vld [vmem:[%s16281_s1 + $0x162c] ss:$28 sps:$4 sm:$0xff]  }
 0x383   :  { %8339 = vmatmul.mubr.bf16.vlgmr.msra.gmra.mrb[32].mxu1 %v13862_v15  ;;  %v12286_v54 = vld [vmem:[%s16281_s1 + $0x1ef0] ss:$28 sps:$4 sm:$0xff]  }
 0x384   :  { %10591 = vmatpush3.bf16.msra.mxu1 %v12222_v51  ;;  %8378 = vmatprep.mubr.bf16.mxu1 %v13878_v22  ;;  %v12287_v51 = vld [vmem:[%s16281_s1 + $0x1d30] ss:$28 sps:$4 sm:$0xff]  }
 0x385   :  { %7878 = vmatpush1.bf16.msra.mxu0 %v12218_v57  ;;  %10592 = vmatprep.subr.bf16.mxu1 %v12226_v60  ;;  %v12283_v57 = vld [vmem:[%s16281_s1 + $0x1628] ss:$28 sps:$4 sm:$0xff]  }
 0x386   :  { %7879 = vmatprep.subr.bf16.mxu0 %v12225_v59  ;;  %v12290_v60 = vld [vmem:[%s16281_s1 + $0x1664] ss:$28 sps:$4 sm:$0xff]  }
 0x388   :  { %10593 = vmatpush3.bf16.msra.mxu1 %v12227_v62  ;;  %v1288_v62 = vsub.s32 6, %v15005_v33 }
 0x389   :  { %7880 = vmatpush1.bf16.msra.mxu0 %v12223_v61  ;;  %10594 = vmatprep.subr.bf16.mxu1 %v12231_v1  ;;  %v12291_v61 = vld [vmem:[%s16281_s1 + $0x1f28] ss:$28 sps:$4 sm:$0xff]  }
 0x38a   :  { %7881 = vmatprep.subr.bf16.mxu0 %v12230_v39 }
 0x38c   :  { %10595 = vmatpush3.bf16.msra.mxu1 %v12232_v26  ;;  %v1289_v26 = vrot.slane %v15029_v45, %v1288_v62  ;;  %v12296_v45 = vld [vmem:[%s16281_s1 + $0x1f60] ss:$28 sps:$4 sm:$0xff]   ;;  %v12330_v62 = vld [vmem:[%s16281_s1 + $0x1890] ss:$28 sps:$4 sm:$0xff]  }
 0x38d   :  { %7882 = vmatpush1.bf16.msra.mxu0 %v12228_v3  ;;  %10596 = vmatprep.subr.bf16.mxu1 %v12236_v4  ;;  %v12288_v4 = vld [vmem:[%s16281_s1 + $0x1660] ss:$28 sps:$4 sm:$0xff]  }
 0x38e   :  { %7883 = vmatprep.subr.bf16.mxu0 %v12235_v52 }
 0x390   :  { %10597 = vmatpush3.bf16.msra.mxu1 %v12237_v30 }
 0x391   :  { %7884 = vmatpush1.bf16.msra.mxu0 %v12233_v5  ;;  %10598 = vmatprep.subr.bf16.mxu1 %v12241_v9  ;;  %v12292_v5 = vld [vmem:[%s16281_s1 + $0x1d68] ss:$28 sps:$4 sm:$0xff]  }
 0x392   :  { %7885 = vmatprep.subr.bf16.mxu0 %v12240_v55  ;;  %v12295_v55 = vld [vmem:[%s16281_s1 + $0x169c] ss:$28 sps:$4 sm:$0xff]  }
 0x394   :  { %10599 = vmatpush3.bf16.msra.mxu1 %v12242_v47 }
 0x395   :  { %7886 = vmatpush1.bf16.msra.mxu0 %v12238_v10  ;;  %10600 = vmatprep.subr.bf16.mxu1 %v12246_v27 }
 0x396   :  { %7887 = vmatprep.subr.bf16.mxu0 %v12245_v11  ;;  %v10452_v59 = vpop.f32.mrb[8].mxu1 }
 0x397   :  { %v10453_v39 = vpop.f32.mrb[9].mxu1 }
 0x398   :  { %10601 = vmatpush3.bf16.msra.mxu1 %v12247_v13  ;;  %v10454_v1 = vadd.f32 %v10453_v39, %v10452_v59  ;;  %v10455_v3 = vpop.f32.mrb[10].mxu1  ;;  %v12297_v13 = vld [vmem:[%s16281_s1 + $0x1da0] ss:$28 sps:$4 sm:$0xff]   ;;  %v12332_v59 = vld [vmem:[%s16281_s1 + $0x1894] ss:$28 sps:$4 sm:$0xff]  }
 0x399   :  { %7888 = vmatpush1.bf16.msra.mxu0 %v12243_v12  ;;  %10602 = vmatprep.subr.bf16.mxu1 %v12251_v38  ;;  %v10456_v52 = vpop.f32.mrb[11].mxu1  ;;  %v12293_v12 = vld [vmem:[%s16281_s1 + $0x1698] ss:$28 sps:$4 sm:$0xff]   ;;  %v12334_v39 = vld [vmem:[%s16283_s3] sm:$0xff]  }
 0x39a   :  { %7889 = vmatprep.subr.bf16.mxu0 %v12250_v17  ;;  %v8101_v9 = vadd.f32 %v10454_v1, %v1289_v26  ;;  %v12300_v38 = vld [vmem:[%s16281_s1 + $0x16d4] ss:$28 sps:$4 sm:$0xff]   ;;  %v12337_v1 = vld [vmem:[%s16281_s1 + $0x18cc] ss:$28 sps:$4 sm:$0xff]  }
 0x39b   :  { %v15789_v26 = vld [vmem:[%s16280_s0 + $0x48] ss:$0 sps:$4 sm:$0xff]  }
 0x39c   :  { %10603 = vmatpush3.bf16.msra.mxu1 %v12252_v56  ;;  %v12301_v56 = vld [vmem:[%s16281_s1 + $0x1f98] ss:$28 sps:$4 sm:$0xff]   ;;  %v12335_v52 = vld [vmem:[%s16281_s1 + $0x18c8] ss:$28 sps:$4 sm:$0xff]  }
 0x39d   :  { %7890 = vmatpush1.bf16.msra.mxu0 %v12248_v18  ;;  %10604 = vmatprep.subr.bf16.mxu1 %v12256_v43  ;;  %v12298_v18 = vld [vmem:[%s16281_s1 + $0x16d0] ss:$28 sps:$4 sm:$0xff]  }
 0x39e   :  { %7891 = vmatprep.subr.bf16.mxu0 %v12255_v23  ;;  %v12543_v23 = vmov 0.0   ;;  %v12304_v43 = vld [vmem:[%s16281_s1 + $0x170c] ss:$28 sps:$4 sm:$0xff]  }
 0x3a0   :  { %10605 = vmatpush3.bf16.msra.mxu1 %v12257_v16  ;;  %v12305_v16 = vld [vmem:[%s16281_s1 + $0x1fd0] ss:$28 sps:$4 sm:$0xff]  }
 0x3a1   :  { %7892 = vmatpush1.bf16.msra.mxu0 %v12253_v24  ;;  %10612 = vmatprep.subr.bf16.mxu1 %v12261_v28  ;;  %v12302_v24 = vld [vmem:[%s16281_s1 + $0x1708] ss:$28 sps:$4 sm:$0xff]   ;;  %v12306_v28 = vld [vmem:[%s16281_s1 + $0x1740] ss:$28 sps:$4 sm:$0xff]  }
 0x3a2   :  { %7902 = vmatprep.subr.bf16.mxu0 %v12260_v25  ;;  %v12308_v25 = vld [vmem:[%s16281_s1 + $0x1744] ss:$28 sps:$4 sm:$0xff]  }
 0x3a3   :  { %8379 = vmatmul.mubr.bf16.vlgmr.msra.gmra.mrb[36].mxu1 %v14071_v42 }
 0x3a4   :  { %7894 = vmatmul.mubr.bf16.vlgmr.msra.gmra.mrb[4].mxu0 %v13653_v58  ;;  %10613 = vmatpush3.bf16.msra.mxu1 %v12262_v20  ;;  %v12271_v58 = vld [vmem:[%s16281_s1 + $0x1e48] ss:$28 sps:$4 sm:$0xff]   ;;  %v12312_v20 = vld [vmem:[%s16281_s1 + $0x177c] ss:$28 sps:$4 sm:$0xff]  }
 0x3a5   :  { %7903 = vmatpush1.bf16.msra.mxu0 %v12258_v29  ;;  %10614 = vmatprep.subr.bf16.mxu1 %v12266_v31  ;;  %v12309_v29 = vld [vmem:[%s16281_s1 + $0x2008] ss:$28 sps:$4 sm:$0xff]   ;;  %v12313_v31 = vld [vmem:[%s16281_s1 + $0x2040] ss:$28 sps:$4 sm:$0xff]  }
 0x3a6   :  { %7904 = vmatprep.subr.bf16.mxu0 %v12265_v19  ;;  %8418 = vmatprep.mubr.bf16.mxu1 %v14087_v48  ;;  %v12310_v19 = vld [vmem:[%s16281_s1 + $0x1778] ss:$28 sps:$4 sm:$0xff]  }
 0x3a7   :  { %7934 = vmatprep.mubr.bf16.mxu0 %v13669_v63  ;;  %v12276_v63 = vld [vmem:[%s16281_s1 + $0x1e80] ss:$28 sps:$4 sm:$0xff]  }
 0x3a8   :  { %10615 = vmatpush3.bf16.msra.mxu1 %v12267_v32  ;;  %v12314_v32 = vld [vmem:[%s16281_s1 + $0x17b0] ss:$28 sps:$4 sm:$0xff]  }
 0x3a9   :  { %7905 = vmatpush1.bf16.msra.mxu0 %v12263_v7  ;;  %10616 = vmatprep.subr.bf16.mxu1 %v12271_v58  ;;  %v12316_v7 = vld [vmem:[%s16281_s1 + $0x17b4] ss:$28 sps:$4 sm:$0xff]   ;;  %v12320_v58 = vld [vmem:[%s16281_s1 + $0x17ec] ss:$28 sps:$4 sm:$0xff]  }
 0x3aa   :  { %7906 = vmatprep.subr.bf16.mxu0 %v12270_v34  ;;  %v12317_v34 = vld [vmem:[%s16281_s1 + $0x2078] ss:$28 sps:$4 sm:$0xff]  }
 0x3ac   :  { %10617 = vmatpush3.bf16.msra.mxu1 %v12272_v40  ;;  %v12321_v40 = vld [vmem:[%s16281_s1 + $0x20b0] ss:$28 sps:$4 sm:$0xff]  }
 0x3ad   :  { %7907 = vmatpush1.bf16.msra.mxu0 %v12268_v35  ;;  %10618 = vmatprep.subr.bf16.mxu1 %v12276_v63  ;;  %v12318_v35 = vld [vmem:[%s16281_s1 + $0x17e8] ss:$28 sps:$4 sm:$0xff]  }
 0x3ae   :  { %7908 = vmatprep.subr.bf16.mxu0 %v12275_v41  ;;  %v12324_v41 = vld [vmem:[%s16281_s1 + $0x1824] ss:$28 sps:$4 sm:$0xff]  }
 0x3b0   :  { %10619 = vmatpush3.bf16.msra.mxu1 %v12277_v46  ;;  %v12322_v46 = vld [vmem:[%s16281_s1 + $0x1820] ss:$28 sps:$4 sm:$0xff]  }
 0x3b1   :  { %7909 = vmatpush1.bf16.msra.mxu0 %v12273_v44  ;;  %10620 = vmatprep.subr.bf16.mxu1 %v12281_v49 }
 0x3b2   :  { %7910 = vmatprep.subr.bf16.mxu0 %v12280_v14  ;;  %v12325_v14 = vld [vmem:[%s16281_s1 + $0x20e8] ss:$28 sps:$4 sm:$0xff]  }
 0x3b4   :  { %10621 = vmatpush3.bf16.msra.mxu1 %v12282_v6  ;;  %v12328_v6 = vld [vmem:[%s16281_s1 + $0x185c] ss:$28 sps:$4 sm:$0xff]  }
 0x3b5   :  { %7911 = vmatpush1.bf16.msra.mxu0 %v12278_v50  ;;  %10622 = vmatprep.subr.bf16.mxu1 %v12286_v54 }
 0x3b6   :  { %7912 = vmatprep.subr.bf16.mxu0 %v12285_v53  ;;  %v10474_v30 = vpop.f32.mrb[12].mxu1 }
 0x3b7   :  { %v10475_v10 = vpop.f32.mrb[13].mxu1 }
 0x3b8   :  { %10623 = vmatpush3.bf16.msra.mxu1 %v12287_v51  ;;  %v10476_v47 = vadd.f32 %v10475_v10, %v10474_v30  ;;  %v10477_v11 = vpop.f32.mrb[14].mxu1  ;;  %v12329_v51 = vld [vmem:[%s16281_s1 + $0x2120] ss:$28 sps:$4 sm:$0xff]  }
 0x3b9   :  { %7913 = vmatpush1.bf16.msra.mxu0 %v12283_v57  ;;  %10624 = vmatprep.subr.bf16.mxu1 %v12291_v61  ;;  %v10478_v27 = vpop.f32.mrb[15].mxu1  ;;  %v12326_v57 = vld [vmem:[%s16281_s1 + $0x1858] ss:$28 sps:$4 sm:$0xff]   ;;  %v8467_v61 = vmax.f32 %v15062_v2, 0.0  ;;  %v12338_v2 = vld [vmem:[%s16283_s3 + $0x48] sm:$0xff]   ;;  %v12353_v11 = vld [vmem:[%s16283_s3 + $0x60] sm:$0xff]  }
 0x3ba   :  { %7914 = vmatprep.subr.bf16.mxu0 %v12290_v60  ;;  %v8141_v17 = vadd.f32 %v10476_v47, %v8101_v9  ;;  %v12333_v60 = vld [vmem:[%s16283_s3 + $0x40] sm:$0xff]   ;;  %v12345_v9 = vld [vmem:[%s16281_s1 + $0x1938] ss:$28 sps:$4 sm:$0xff]   ;;  %v12350_v27 = vld [vmem:[%s16281_s1 + $0x1970] ss:$28 sps:$4 sm:$0xff]  }
 0x3bb   :  { %v8474_v3 = vpack.c.bf16 %v8467_v61, %v8467_v61  ;;  %v12340_v30 = vld [vmem:[%s16281_s1 + $0x1900] ss:$28 sps:$4 sm:$0xff]   ;;  %v12352_v47 = vld [vmem:[%s16281_s1 + $0x1974] ss:$28 sps:$4 sm:$0xff]  }
 0x3bc   :  { %10625 = vmatpush3.bf16.msra.mxu1 %v12292_v5  ;;  %v12342_v5 = vld [vmem:[%s16281_s1 + $0x1904] ss:$28 sps:$4 sm:$0xff]   ;;  %v12349_v10 = vld [vmem:[%s16283_s3 + $0x18] sm:$0xff]  }
 0x3bd   :  { %7915 = vmatpush1.bf16.msra.mxu0 %v12288_v4  ;;  %10626 = vmatprep.subr.bf16.mxu1 %v12296_v45  ;;  %v12339_v4 = vld [vmem:[%s16283_s3 + $0x8] sm:$0xff]   ;;  %v12347_v45 = vld [vmem:[%s16281_s1 + $0x193c] ss:$28 sps:$4 sm:$0xff]  }
 0x3be   :  { %7916 = vmatprep.subr.bf16.mxu0 %v12295_v55  ;;  %v12344_v55 = vld [vmem:[%s16283_s3 + $0x10] sm:$0xff]   ;;  %v12380_v61 = vld [vmem:[%s16281_s1 + $0x1ac0] ss:$28 sps:$4 sm:$0xff]  }
 0x3c0   :  { %10627 = vmatpush3.bf16.msra.mxu1 %v12297_v13  ;;  %v12357_v13 = vld [vmem:[%s16281_s1 + $0x19ac] ss:$28 sps:$4 sm:$0xff]  }
 0x3c1   :  { %7917 = vmatpush1.bf16.msra.mxu0 %v12293_v12  ;;  %10729 = vmatprep.subr.bf16.mxu1 %v12543_v23  ;;  %v12354_v12 = vld [vmem:[%s16283_s3 + $0x20] sm:$0xff]  }
 0x3c2   :  { %7918 = vmatprep.subr.bf16.mxu0 %v12300_v38  ;;  %v1276_v38 = vsub.s32 3, %v15005_v33 }
 0x3c3   :  { %8419 = vmatmul.mubr.bf16.vlgmr.msra.gmra.mrb[40].mxu1 %v14275_v8 }
 0x3c4   :  { %10730 = vmatpush3.bf16.msra.mxu1 %v12301_v56  ;;  %10745 = vmatprep.mubr.msk.bf16.mxu1 %vm12544_vm0, %v12543_v23  ;;  %v12359_v56 = vld [vmem:[%s16283_s3 + $0x28] sm:$0xff]  }
 0x3c5   :  { %7919 = vmatpush1.bf16.msra.mxu0 %v12298_v18  ;;  %10731 = vmatprep.subr.bf16.mxu1 %v12543_v23  ;;  %v12355_v18 = vld [vmem:[%s16281_s1 + $0x19a8] ss:$28 sps:$4 sm:$0xff]  }
 0x3c6   :  { %7920 = vmatprep.subr.bf16.mxu0 %v12304_v43  ;;  %v12362_v43 = vld [vmem:[%s16281_s1 + $0x19e4] ss:$28 sps:$4 sm:$0xff]  }
 0x3c8   :  { %10732 = vmatpush3.bf16.msra.mxu1 %v12305_v16 }
 0x3c9   :  { %7921 = vmatpush1.bf16.msra.mxu0 %v12302_v24  ;;  %10733 = vmatprep.subr.bf16.mxu1 %v12543_v23  ;;  %v12363_v24 = vld [vmem:[%s16283_s3 + $0x70] sm:$0xff]  }
 0x3ca   :  { %7922 = vmatprep.subr.bf16.mxu0 %v12308_v25  ;;  %v15858_v25 = vld [vmem:[%s16282_s2] sm:$0x7f] }
 0x3cc   :  { %10734 = vmatpush3.bf16.msra.mxu1 %v12309_v29 }
 0x3cd   :  { %7923 = vmatpush1.bf16.msra.mxu0 %v12306_v28  ;;  %10735 = vmatprep.subr.bf16.mxu1 %v12543_v23  ;;  %v1277_v28 = vrot.slane %v15858_v25, %v1276_v38 }
 0x3ce   :  { %7924 = vmatprep.subr.bf16.mxu0 %v12312_v20  ;;  %v12360_v20 = vld [vmem:[%s16281_s1 + $0x19e0] ss:$28 sps:$4 sm:$0xff]  }
 0x3d0   :  { %10736 = vmatpush3.bf16.msra.mxu1 %v12313_v31 }
 0x3d1   :  { %7925 = vmatpush1.bf16.msra.mxu0 %v12310_v19  ;;  %10737 = vmatprep.subr.bf16.mxu1 %v12543_v23  ;;  %v12364_v19 = vld [vmem:[%s16283_s3 + $0x30] sm:$0xff]  }
 0x3d2   :  { %7926 = vmatprep.subr.bf16.mxu0 %v12316_v7 }
 0x3d4   :  { %10738 = vmatpush3.bf16.msra.mxu1 %v12317_v34  ;;  %v12368_v34 = vld [vmem:[%s16283_s3 + $0x78] sm:$0xff]  }
 0x3d5   :  { %7927 = vmatpush1.bf16.msra.mxu0 %v12314_v32  ;;  %10739 = vmatprep.subr.bf16.mxu1 %v12543_v23  ;;  %v12367_v32 = vld [vmem:[%s16281_s1 + $0x1a1c] ss:$28 sps:$4 sm:$0xff]  }
 0x3d6   :  { %7928 = vmatprep.subr.bf16.mxu0 %v12320_v58  ;;  %v10496_v63 = vpop.f32.mrb[16].mxu1 }
 0x3d7   :  { %v10497_v44 = vpop.f32.mrb[17].mxu1 }
 0x3d8   :  { %10740 = vmatpush3.bf16.msra.mxu1 %v12321_v40  ;;  %v10498_v49 = vadd.f32 %v10497_v44, %v10496_v63  ;;  %v10499_v50 = vpop.f32.mrb[18].mxu1  ;;  %v10800_v40 = vadd.f32 %v15462_v37, %v1277_v28  ;;  %v12369_v63 = vld [vmem:[%s16283_s3 + $0x38] sm:$0xff]   ;;  %v8466_v44 = vmax.f32 %v15060_v0, 0.0  ;;  %v12373_v37 = vld [vmem:[%s16283_s3 + $0xc0] sm:$0xff]  }
 0x3d9   :  { %7929 = vmatpush1.bf16.msra.mxu0 %v12318_v35  ;;  %10741 = vmatprep.subr.bf16.mxu1 %v12543_v23  ;;  %v10500_v53 = vpop.f32.mrb[19].mxu1  ;;  %v12374_v0 = vld [vmem:[%s16283_s3 + $0x80] sm:$0xff]  }
 0x3da   :  { %7930 = vmatprep.subr.bf16.mxu0 %v12324_v41  ;;  %v15758_v54 = vadd.f32 %v10498_v49, %v8141_v17  ;;  %v12358_v17 = vld [vmem:[%s16283_s3 + $0x68] sm:$0xff]   ;;  %v12365_v41 = vld [vmem:[%s16281_s1 + $0x1a18] ss:$28 sps:$4 sm:$0xff]   ;;  %v8473_v50 = vpack.c.bf16 %v8466_v44, %v8466_v44 }
 0x3db   :  { %v12370_v49 = vld [vmem:[%s16281_s1 + $0x1a50] ss:$28 sps:$4 sm:$0xff]   ;;  %v12425_v44 = vld [vmem:[%s16281_s1 + $0x1d28] ss:$28 sps:$4 sm:$0xff]  }
 0x3dc   :  { %10742 = vmatpush3.bf16.msra.mxu1 %v12325_v14  ;;  %v8469_v14 = vmax.f32 %v10800_v40, 0.0  ;;  %v12378_v53 = vld [vmem:[%s16283_s3 + $0xc8] sm:$0xff]   ;;  %v12424_v40 = vld [vmem:[%s16281_s1 + $0x1cf4] ss:$28 sps:$4 sm:$0xff]  }
 0x3dd   :  { %7931 = vmatpush1.bf16.msra.mxu0 %v12322_v46  ;;  %10743 = vmatprep.subr.bf16.mxu1 %v12543_v23  ;;  %v12372_v46 = vld [vmem:[%s16281_s1 + $0x1a54] ss:$28 sps:$4 sm:$0xff]  }
 0x3de   :  { %7932 = vmatprep.subr.bf16.mxu0 %v12328_v6  ;;  %v12377_v6 = vld [vmem:[%s16281_s1 + $0x1a8c] ss:$28 sps:$4 sm:$0xff]  }
 0x3e0   :  { %10744 = vmatpush3.bf16.msra.mxu1 %v12329_v51  ;;  %v12379_v51 = vld [vmem:[%s16283_s3 + $0x88] sm:$0xff]  }
 0x3e1   :  { %7933 = vmatpush1.bf16.msra.mxu0 %v12326_v57  ;;  %10643 = vmatprep.subr.bf16.mxu1 %v12333_v60  ;;  %v12375_v57 = vld [vmem:[%s16281_s1 + $0x1a88] ss:$28 sps:$4 sm:$0xff]   ;;  %v12383_v60 = vld [vmem:[%s16283_s3 + $0xd0] sm:$0xff]  }
 0x3e2   :  { %7943 = vmatprep.subr.bf16.mxu0 %v12332_v59  ;;  %v12382_v59 = vld [vmem:[%s16281_s1 + $0x1ac4] ss:$28 sps:$4 sm:$0xff]  }
 0x3e3   :  { %10746 = vmatmul.mubr.bf16.vlgmr.msra.gmra.mrb[44].mxu1 %v15789_v26 }
 0x3e4   :  { %7935 = vmatmul.mubr.bf16.vlgmr.msra.gmra.mrb[4].mxu0 %v13862_v15  ;;  %10644 = vmatpush3.bf16.msra.mxu1 %v12334_v39  ;;  %v12343_v15 = vld [vmem:[%s16283_s3 + $0x50] sm:$0xff]   ;;  %v12387_v39 = vld [vmem:[%s16281_s1 + $0x1afc] ss:$28 sps:$4 sm:$0xff]  }
 0x3e5   :  { %7944 = vmatpush1.bf16.msra.mxu0 %v12330_v62  ;;  %8915 = vmatprep.mubr.bf16.mxu1 %v8474_v3  ;;  %v12384_v62 = vld [vmem:[%s16283_s3 + $0x90] sm:$0xff]   ;;  %v12389_v3 = vld [vmem:[%s16283_s3 + $0x98] sm:$0xff]  }
 0x3e6   :  { %7945 = vmatprep.subr.bf16.mxu0 %v12337_v1  ;;  %10645 = vmatprep.subr.bf16.mxu1 %v12338_v2  ;;  %v12388_v1 = vld [vmem:[%s16283_s3 + $0xd8] sm:$0xff]  }
 0x3e7   :  { %7975 = vmatprep.mubr.bf16.mxu0 %v13878_v22  ;;  %v12348_v22 = vld [vmem:[%s16283_s3 + $0x58] sm:$0xff]  }
 0x3e8   :  { %10646 = vmatpush3.bf16.msra.mxu1 %v12339_v4  ;;  %v12385_v2 = vld [vmem:[%s16281_s1 + $0x1af8] ss:$28 sps:$4 sm:$0xff]   ;;  %v12393_v4 = vld [vmem:[%s16283_s3 + $0xe0] sm:$0xff]  }
 0x3e9   :  { %7946 = vmatpush1.bf16.msra.mxu0 %v12335_v52  ;;  %10647 = vmatprep.subr.bf16.mxu1 %v12343_v15  ;;  %v12392_v52 = vld [vmem:[%s16281_s1 + $0x1b34] ss:$28 sps:$4 sm:$0xff]   ;;  %v12394_v15 = vld [vmem:[%s16283_s3 + $0xa0] sm:$0xff]  }
 0x3ea   :  { %7947 = vmatprep.subr.bf16.mxu0 %v12342_v5  ;;  %v12390_v5 = vld [vmem:[%s16281_s1 + $0x1b30] ss:$28 sps:$4 sm:$0xff]  }
 0x3ec   :  { %10648 = vmatpush3.bf16.msra.mxu1 %v12344_v55  ;;  %v12397_v55 = vld [vmem:[%s16281_s1 + $0x1b6c] ss:$28 sps:$4 sm:$0xff]  }
 0x3ed   :  { %7948 = vmatpush1.bf16.msra.mxu0 %v12340_v30  ;;  %10649 = vmatprep.subr.bf16.mxu1 %v12348_v22  ;;  %v1272_v30 = vsub.s32 2, %v15005_v33  ;;  %v12395_v22 = vld [vmem:[%s16281_s1 + $0x1b68] ss:$28 sps:$4 sm:$0xff]  }
 0x3ee   :  { %7949 = vmatprep.subr.bf16.mxu0 %v12347_v45  ;;  %v12398_v45 = vld [vmem:[%s16283_s3 + $0xe8] sm:$0xff]  }
 0x3f0   :  { %10650 = vmatpush3.bf16.msra.mxu1 %v12349_v10  ;;  %v1273_v10 = vrot.slane %v15858_v25, %v1272_v30 }
 0x3f1   :  { %7950 = vmatpush1.bf16.msra.mxu0 %v12345_v9  ;;  %10651 = vmatprep.subr.bf16.mxu1 %v12353_v11  ;;  %v12399_v9 = vld [vmem:[%s16283_s3 + $0xa8] sm:$0xff]   ;;  %v12403_v11 = vld [vmem:[%s16283_s3 + $0xf0] sm:$0xff]  }
 0x3f2   :  { %7951 = vmatprep.subr.bf16.mxu0 %v12352_v47  ;;  %v12402_v47 = vld [vmem:[%s16281_s1 + $0x1ba4] ss:$28 sps:$4 sm:$0xff]  }
 0x3f4   :  { %10652 = vmatpush3.bf16.msra.mxu1 %v12354_v12 }
 0x3f5   :  { %7952 = vmatpush1.bf16.msra.mxu0 %v12350_v27  ;;  %10653 = vmatprep.subr.bf16.mxu1 %v12358_v17  ;;  %v12404_v17 = vld [vmem:[%s16283_s3 + $0xb0] sm:$0xff]  }
 0x3f6   :  { %7953 = vmatprep.subr.bf16.mxu0 %v12357_v13  ;;  %v10518_v16 = vpop.f32.mrb[20].mxu1  ;;  %v12400_v13 = vld [vmem:[%s16281_s1 + $0x1ba0] ss:$28 sps:$4 sm:$0xff]  }
 0x3f7   :  { %v10519_v29 = vpop.f32.mrb[21].mxu1 }
 0x3f8   :  { %10654 = vmatpush3.bf16.msra.mxu1 %v12359_v56  ;;  %v10520_v31 = vadd.f32 %v10519_v29, %v10518_v16  ;;  %v10521_v7 = vpop.f32.mrb[22].mxu1  ;;  %v10799_v56 = vadd.f32 %v15460_v36, %v1273_v10  ;;  %v12405_v29 = vld [vmem:[%s16281_s1 + $0x1bd8] ss:$28 sps:$4 sm:$0xff]  }
 0x3f9   :  { %7954 = vmatpush1.bf16.msra.mxu0 %v12355_v18  ;;  %10655 = vmatprep.subr.bf16.mxu1 %v12363_v24  ;;  %v10522_v58 = vpop.f32.mrb[23].mxu1  ;;  %v12408_v24 = vld [vmem:[%s16283_s3 + $0xf8] sm:$0xff]  }
 0x3fa   :  { %7955 = vmatprep.subr.bf16.mxu0 %v12362_v43  ;;  %v15874_v35 = vadd.f32 %v10520_v31, %v15758_v54  ;;  %v8476_v54 = vpack.c.bf16 %v8469_v14, %v8469_v14  ;;  %v12407_v43 = vld [vmem:[%s16281_s1 + $0x1bdc] ss:$28 sps:$4 sm:$0xff]   ;;  %v12410_v31 = vld [vmem:[%s16281_s1 + $0x1c10] ss:$28 sps:$4 sm:$0xff]   ;;  %v12418_v58 = vld [vmem:[%s16281_s1 + $0x1c84] ss:$28 sps:$4 sm:$0xff]  }
 0x3fb   :  { %v12409_v36 = vld [vmem:[%s16283_s3 + $0xb8] sm:$0xff]  }
 0x3fc   :  { %10656 = vmatpush3.bf16.msra.mxu1 %v12364_v19  ;;  %v12412_v19 = vld [vmem:[%s16281_s1 + $0x1c14] ss:$28 sps:$4 sm:$0xff]   ;;  %v12457_v10 = vld [vmem:[%s16281_s1 + $0x1f5c] ss:$28 sps:$4 sm:$0xff]  }
 0x3fd   :  { %7956 = vmatpush1.bf16.msra.mxu0 %v12360_v20  ;;  %10657 = vmatprep.subr.bf16.mxu1 %v12368_v34  ;;  %v8468_v20 = vmax.f32 %v10799_v56, 0.0  ;;  %v12413_v34 = vld [vmem:[%s16281_s1 + $0x1c48] ss:$28 sps:$4 sm:$0xff]   ;;  %v12464_v56 = vld [vmem:[%s16281_s1 + $0x2000] ss:$28 sps:$4 sm:$0xff]  }
 0x3fe   :  { %7957 = vmatprep.subr.bf16.mxu0 %v12367_v32  ;;  %v12415_v32 = vld [vmem:[%s16281_s1 + $0x1c4c] ss:$28 sps:$4 sm:$0xff]  }
 0x3ff   :  { %v8475_v7 = vpack.c.bf16 %v8468_v20, %v8468_v20 }
 0x400   :  { %10658 = vmatpush3.bf16.msra.mxu1 %v12369_v63  ;;  %v12427_v63 = vld [vmem:[%s16281_s1 + $0x1d2c] ss:$28 sps:$4 sm:$0xff]  }
 0x401   :  { %7958 = vmatpush1.bf16.msra.mxu0 %v12365_v41  ;;  %10665 = vmatprep.subr.bf16.mxu1 %v12373_v37  ;;  %v12422_v41 = vld [vmem:[%s16281_s1 + $0x1cf0] ss:$28 sps:$4 sm:$0xff]  }
 0x402   :  { %7959 = vmatprep.subr.bf16.mxu0 %v12372_v46  ;;  %v12430_v46 = vld [vmem:[%s16281_s1 + $0x1d64] ss:$28 sps:$4 sm:$0xff]  }
 0x403   :  { %8916 = vmatmul.mubr.bf16.vlgmr.msra.gmra.mrb[48].mxu1 %v8473_v50 }
 0x404   :  { %10666 = vmatpush3.bf16.msra.mxu1 %v12374_v0  ;;  %8955 = vmatprep.mubr.bf16.mxu1 %v8476_v54 }
 0x405   :  { %7960 = vmatpush1.bf16.msra.mxu0 %v12370_v49  ;;  %10667 = vmatprep.subr.bf16.mxu1 %v12378_v53  ;;  %v12428_v49 = vld [vmem:[%s16281_s1 + $0x1d60] ss:$28 sps:$4 sm:$0xff]  }
 0x406   :  { %7961 = vmatprep.subr.bf16.mxu0 %v12377_v6  ;;  %v12433_v6 = vld [vmem:[%s16281_s1 + $0x1d9c] ss:$28 sps:$4 sm:$0xff]  }
 0x408   :  { %10668 = vmatpush3.bf16.msra.mxu1 %v12379_v51  ;;  %v12436_v51 = vld [vmem:[%s16281_s1 + $0x1dd4] ss:$28 sps:$4 sm:$0xff]  }
 0x409   :  { %7962 = vmatpush1.bf16.msra.mxu0 %v12375_v57  ;;  %10669 = vmatprep.subr.bf16.mxu1 %v12383_v60  ;;  %v12431_v57 = vld [vmem:[%s16281_s1 + $0x1d98] ss:$28 sps:$4 sm:$0xff]   ;;  %v12439_v60 = vld [vmem:[%s16281_s1 + $0x1e0c] ss:$28 sps:$4 sm:$0xff]  }
 0x40a   :  { %7963 = vmatprep.subr.bf16.mxu0 %v12382_v59  ;;  %v12434_v59 = vld [vmem:[%s16281_s1 + $0x1dd0] ss:$28 sps:$4 sm:$0xff]  }
 0x40c   :  { %10670 = vmatpush3.bf16.msra.mxu1 %v12384_v62  ;;  %v12442_v62 = vld [vmem:[%s16281_s1 + $0x1e44] ss:$28 sps:$4 sm:$0xff]  }
 0x40d   :  { %7964 = vmatpush1.bf16.msra.mxu0 %v12380_v61  ;;  %10671 = vmatprep.subr.bf16.mxu1 %v12388_v1  ;;  %v12437_v61 = vld [vmem:[%s16281_s1 + $0x1e08] ss:$28 sps:$4 sm:$0xff]   ;;  %v12445_v1 = vld [vmem:[%s16281_s1 + $0x1e7c] ss:$28 sps:$4 sm:$0xff]  }
 0x40e   :  { %7965 = vmatprep.subr.bf16.mxu0 %v12387_v39  ;;  %v12440_v39 = vld [vmem:[%s16281_s1 + $0x1e40] ss:$28 sps:$4 sm:$0xff]  }
 0x410   :  { %10672 = vmatpush3.bf16.msra.mxu1 %v12389_v3  ;;  %v12448_v3 = vld [vmem:[%s16281_s1 + $0x1eb4] ss:$28 sps:$4 sm:$0xff]  }
 0x411   :  { %7966 = vmatpush1.bf16.msra.mxu0 %v12385_v2  ;;  %10673 = vmatprep.subr.bf16.mxu1 %v12393_v4  ;;  %v12443_v2 = vld [vmem:[%s16281_s1 + $0x1e78] ss:$28 sps:$4 sm:$0xff]   ;;  %v12451_v4 = vld [vmem:[%s16281_s1 + $0x1eec] ss:$28 sps:$4 sm:$0xff]  }
 0x412   :  { %7967 = vmatprep.subr.bf16.mxu0 %v12392_v52  ;;  %v12446_v52 = vld [vmem:[%s16281_s1 + $0x1eb0] ss:$28 sps:$4 sm:$0xff]  }
 0x414   :  { %10674 = vmatpush3.bf16.msra.mxu1 %v12394_v15  ;;  %v12454_v15 = vld [vmem:[%s16281_s1 + $0x1f24] ss:$28 sps:$4 sm:$0xff]  }
 0x415   :  { %7968 = vmatpush1.bf16.msra.mxu0 %v12390_v5  ;;  %10675 = vmatprep.subr.bf16.mxu1 %v12398_v45  ;;  %v12449_v5 = vld [vmem:[%s16281_s1 + $0x1ee8] ss:$28 sps:$4 sm:$0xff]  }
 0x416   :  { %7969 = vmatprep.subr.bf16.mxu0 %v12397_v55  ;;  %v10540_v27 = vpop.f32.mrb[24].mxu1 }
 0x417   :  { %v10541_v12 = vpop.f32.mrb[25].mxu1 }
 0x418   :  { %10676 = vmatpush3.bf16.msra.mxu1 %v12399_v9  ;;  %v10542_v38 = vadd.f32 %v10541_v12, %v10540_v27  ;;  %v10543_v18 = vpop.f32.mrb[26].mxu1  ;;  %v12455_v27 = vld [vmem:[%s16281_s1 + $0x1f58] ss:$28 sps:$4 sm:$0xff]  }
 0x419   :  { %7970 = vmatpush1.bf16.msra.mxu0 %v12395_v22  ;;  %10677 = vmatprep.subr.bf16.mxu1 %v12403_v11  ;;  %v10544_v16 = vpop.f32.mrb[27].mxu1  ;;  %v12452_v22 = vld [vmem:[%s16281_s1 + $0x1f20] ss:$28 sps:$4 sm:$0xff]   ;;  %v12460_v12 = vld [vmem:[%s16281_s1 + $0x1f94] ss:$28 sps:$4 sm:$0xff]  }
 0x41a   :  { %7971 = vmatprep.subr.bf16.mxu0 %v12402_v47  ;;  %v8261_v28 = vadd.f32 %v10542_v38, %v15874_v35  ;;  %v12416_v35 = vld [vmem:[%s16281_s1 + $0x1c80] ss:$28 sps:$4 sm:$0xff]   ;;  %v12461_v38 = vld [vmem:[%s16281_s1 + $0x1fc8] ss:$28 sps:$4 sm:$0xff]  }
 0x41b   :  { %v12466_v18 = vld [vmem:[%s16281_s1 + $0x2004] ss:$28 sps:$4 sm:$0xff]   ;;  %v12475_v16 = vld [vmem:[%s16281_s1 + $0x20ac] ss:$28 sps:$4 sm:$0xff]  }
 0x41c   :  { %10678 = vmatpush3.bf16.msra.mxu1 %v12404_v17  ;;  %v12463_v17 = vld [vmem:[%s16281_s1 + $0x1fcc] ss:$28 sps:$4 sm:$0xff]  }
 0x41d   :  { %7972 = vmatpush1.bf16.msra.mxu0 %v12400_v13  ;;  %10679 = vmatprep.subr.bf16.mxu1 %v12408_v24  ;;  %v12458_v13 = vld [vmem:[%s16281_s1 + $0x1f90] ss:$28 sps:$4 sm:$0xff]  }
 0x41e   :  { %7973 = vmatprep.subr.bf16.mxu0 %v12407_v43  ;;  %v12472_v43 = vld [vmem:[%s16281_s1 + $0x2074] ss:$28 sps:$4 sm:$0xff]  }
 0x41f   :  { %v12470_v24 = vld [vmem:[%s16281_s1 + $0x2070] ss:$28 sps:$4 sm:$0xff]  }
 0x420   :  { %10680 = vmatpush3.bf16.msra.mxu1 %v12409_v36 }
 0x421   :  { %7974 = vmatpush1.bf16.msra.mxu0 %v12405_v29  ;;  %v12478_v29 = vld [vmem:[%s16281_s1 + $0x20e4] ss:$28 sps:$4 sm:$0xff]  }
 0x422   :  { %7984 = vmatprep.subr.bf16.mxu0 %v12412_v19 }
 0x423   :  { %8956 = vmatmul.mubr.bf16.vlgmr.msra.gmra.mrb[52].mxu1 %v8475_v7 }
 0x424   :  { %7976 = vmatmul.mubr.bf16.vlgmr.msra.gmra.mrb[4].mxu0 %v14071_v42  ;;  %v12421_v42 = vld [vmem:[%s16281_s1 + $0x1cbc] ss:$28 sps:$4 sm:$0xff]  }
 0x425   :  { %7985 = vmatpush1.bf16.msra.mxu0 %v12410_v31  ;;  %8016 = vmatprep.mubr.bf16.mxu0 %v14087_v48  ;;  %v12419_v48 = vld [vmem:[%s16281_s1 + $0x1cb8] ss:$28 sps:$4 sm:$0xff]   ;;  %v12476_v31 = vld [vmem:[%s16281_s1 + $0x20e0] ss:$28 sps:$4 sm:$0xff]  }
 0x426   :  { %7986 = vmatprep.subr.bf16.mxu0 %v12415_v32  ;;  %v12481_v32 = vld [vmem:[%s16281_s1 + $0x211c] ss:$28 sps:$4 sm:$0xff]  }
 0x429   :  { %7987 = vmatpush1.bf16.msra.mxu0 %v12413_v34 }
 0x42a   :  { %7988 = vmatprep.subr.bf16.mxu0 %v12418_v58 }
 0x42d   :  { %7989 = vmatpush1.bf16.msra.mxu0 %v12416_v35  ;;  %v12482_v35 = vld [vmem:[%s16283_s3 + $0x140] sm:$0xff]  }
 0x42e   :  { %7990 = vmatprep.subr.bf16.mxu0 %v12421_v42  ;;  %v12483_v42 = vld [vmem:[%s16283_s3 + $0x100] sm:$0xff]   ;;  %10687 = vmatprep.subr.bf16.mxu1 %v12482_v35  ;;  %v12504_v35 = vld [vmem:[%s16285_s5 + $0x28] sm:$0xff]  }
 0x42f   :  { %10688 = vmatpush3.bf16.msra.mxu1 %v12483_v42  ;;  %v12505_v42 = vld [vmem:[%s16285_s5 + $0x30] sm:$0xff]  }
 0x431   :  { %7991 = vmatpush1.bf16.msra.mxu0 %v12419_v48  ;;  %v12484_v48 = vld [vmem:[%s16283_s3 + $0x148] sm:$0xff]  }
 0x432   :  { %7992 = vmatprep.subr.bf16.mxu0 %v12424_v40  ;;  %v12479_v40 = vld [vmem:[%s16281_s1 + $0x2118] ss:$28 sps:$4 sm:$0xff]   ;;  %10689 = vmatprep.subr.bf16.mxu1 %v12484_v48 }
 0x433   :  { %v12506_v48 = vld [vmem:[%s16285_s5 + $0x38] sm:$0xff]  }
 0x435   :  { %7993 = vmatpush1.bf16.msra.mxu0 %v12422_v41  ;;  %v12485_v41 = vld [vmem:[%s16283_s3 + $0x108] sm:$0xff]  }
 0x436   :  { %7994 = vmatprep.subr.bf16.mxu0 %v12427_v63  ;;  %v10562_v37 = vpop.f32.mrb[28].mxu1  ;;  %v12486_v63 = vld [vmem:[%s16283_s3 + $0x150] sm:$0xff]   ;;  %10690 = vmatpush3.bf16.msra.mxu1 %v12485_v41 }
 0x437   :  { %v10563_v14 = vpop.f32.mrb[29].mxu1  ;;  %10691 = vmatprep.subr.bf16.mxu1 %v12486_v63 }
 0x438   :  { %v10564_v0 = vadd.f32 %v10563_v14, %v10562_v37  ;;  %v10565_v50 = vpop.f32.mrb[30].mxu1  ;;  %v12489_v37 = vld [vmem:[%s16283_s3 + $0x118] sm:$0xff]   ;;  %v12490_v14 = vld [vmem:[%s16283_s3 + $0x160] sm:$0xff]  }
 0x439   :  { %7995 = vmatpush1.bf16.msra.mxu0 %v12425_v44  ;;  %v10566_v53 = vpop.f32.mrb[31].mxu1  ;;  %v12487_v44 = vld [vmem:[%s16283_s3 + $0x110] sm:$0xff]  }
 0x43a   :  { %7996 = vmatprep.subr.bf16.mxu0 %v12430_v46  ;;  %v8301_v54 = vadd.f32 %v10564_v0, %v8261_v28  ;;  %v12473_v28 = vld [vmem:[%s16281_s1 + $0x20a8] ss:$28 sps:$4 sm:$0xff]   ;;  %v12488_v46 = vld [vmem:[%s16283_s3 + $0x158] sm:$0xff]   ;;  %10692 = vmatpush3.bf16.msra.mxu1 %v12487_v44 }
 0x43b   :  { %10693 = vmatprep.subr.bf16.mxu1 %v12488_v46  ;;  %v12493_v0 = vld [vmem:[%s16283_s3 + $0x128] sm:$0xff]  }
 0x43d   :  { %7997 = vmatpush1.bf16.msra.mxu0 %v12428_v49  ;;  %v12491_v49 = vld [vmem:[%s16283_s3 + $0x120] sm:$0xff]  }
 0x43e   :  { %7998 = vmatprep.subr.bf16.mxu0 %v12433_v6  ;;  %10694 = vmatpush3.bf16.msra.mxu1 %v12489_v37 }
 0x43f   :  { %10695 = vmatprep.subr.bf16.mxu1 %v12490_v14 }
 0x441   :  { %7999 = vmatpush1.bf16.msra.mxu0 %v12431_v57 }
 0x442   :  { %8000 = vmatprep.subr.bf16.mxu0 %v12436_v51  ;;  %10696 = vmatpush3.bf16.msra.mxu1 %v12491_v49 }
 0x445   :  { %8001 = vmatpush1.bf16.msra.mxu0 %v12434_v59 }
 0x446   :  { %8002 = vmatprep.subr.bf16.mxu0 %v12439_v60 }
 0x449   :  { %8003 = vmatpush1.bf16.msra.mxu0 %v12437_v61 }
 0x44a   :  { %8004 = vmatprep.subr.bf16.mxu0 %v12442_v62 }
 0x44d   :  { %8005 = vmatpush1.bf16.msra.mxu0 %v12440_v39 }
 0x44e   :  { %8006 = vmatprep.subr.bf16.mxu0 %v12445_v1 }
 0x451   :  { %8007 = vmatpush1.bf16.msra.mxu0 %v12443_v2  ;;  %v12494_v2 = vld [vmem:[%s16283_s3 + $0x170] sm:$0xff]  }
 0x452   :  { %8008 = vmatprep.subr.bf16.mxu0 %v12448_v3 }
 0x455   :  { %8009 = vmatpush1.bf16.msra.mxu0 %v12446_v52  ;;  %v12495_v52 = vld [vmem:[%s16283_s3 + $0x130] sm:$0xff]  }
 0x456   :  { %8010 = vmatprep.subr.bf16.mxu0 %v12451_v4  ;;  %v10584_v30 = vpop.f32.mrb[32].mxu1 }
 0x457   :  { %v10585_v55 = vpop.f32.mrb[33].mxu1 }
 0x458   :  { %v10586_v45 = vadd.f32 %v10585_v55, %v10584_v30  ;;  %v10587_v9 = vpop.f32.mrb[34].mxu1  ;;  %v12496_v30 = vld [vmem:[%s16283_s3 + $0x178] sm:$0xff]  }
 0x459   :  { %8011 = vmatpush1.bf16.msra.mxu0 %v12449_v5  ;;  %v10588_v47 = vpop.f32.mrb[35].mxu1  ;;  %v12497_v55 = vld [vmem:[%s16283_s3 + $0x138] sm:$0xff]  }
 0x45a   :  { %8012 = vmatprep.subr.bf16.mxu0 %v12454_v15  ;;  %v8341_v11 = vadd.f32 %v10586_v45, %v8301_v54  ;;  %v10367_v45 = vld [vmem:[%s16284_s4] ss:$0 sm:$0xff] }
 0x45d   :  { %8013 = vmatpush1.bf16.msra.mxu0 %v12452_v22 }
 0x45e   :  { %8014 = vmatprep.subr.bf16.mxu0 %v12457_v10 }
 0x461   :  { %8015 = vmatpush1.bf16.msra.mxu0 %v12455_v27 }
 0x462   :  { %8025 = vmatprep.subr.bf16.mxu0 %v12460_v12 }
 0x464   :  { %8017 = vmatmul.mubr.bf16.vlgmr.msra.gmra.mrb[4].mxu0 %v14275_v8  ;;  %v12469_v8 = vld [vmem:[%s16281_s1 + $0x203c] ss:$28 sps:$4 sm:$0xff]  }
 0x465   :  { %8026 = vmatpush1.bf16.msra.mxu0 %v12458_v13  ;;  %8057 = vmatprep.mubr.bf16.mxu0 %v12542_v21  ;;  %v12467_v21 = vld [vmem:[%s16281_s1 + $0x2038] ss:$28 sps:$4 sm:$0xff]   ;;  %v1280_v13 = vsub.s32 4, %v15005_v33 }
 0x466   :  { %8027 = vmatprep.subr.bf16.mxu0 %v12463_v17  ;;  %v1284_v17 = vsub.s32 5, %v15005_v33 }
 0x469   :  { %8028 = vmatpush1.bf16.msra.mxu0 %v12461_v38  ;;  %v1281_v38 = vrot.slane %v15858_v25, %v1280_v13 }
 0x46a   :  { %8029 = vmatprep.subr.bf16.mxu0 %v12466_v18  ;;  %v1285_v18 = vrot.slane %v15858_v25, %v1284_v17  ;;  %v12499_v25 = vld [vmem:[%s16285_s5] sm:$0xff]  }
 0x46d   :  { %8030 = vmatpush1.bf16.msra.mxu0 %v12464_v56 }
 0x46e   :  { %8031 = vmatprep.subr.bf16.mxu0 %v12469_v8 }
 0x471   :  { %8032 = vmatpush1.bf16.msra.mxu0 %v12467_v21 }
 0x472   :  { %8033 = vmatprep.subr.bf16.mxu0 %v12472_v43 }
 0x475   :  { %8034 = vmatpush1.bf16.msra.mxu0 %v12470_v24 }
 0x476   :  { %8035 = vmatprep.subr.bf16.mxu0 %v12475_v16  ;;  %v10606_v36 = vpop.f32.mrb[36].mxu1 }
 0x477   :  { %v10607_v20 = vpop.f32.mrb[37].mxu1 }
 0x478   :  { %v10608_v19 = vadd.f32 %v10607_v20, %v10606_v36  ;;  %v10609_v7 = vpop.f32.mrb[38].mxu1  ;;  %v12498_v20 = vld [vmem:[%s16283_s3 + $0x180] sm:$0xff]  }
 0x479   :  { %8036 = vmatpush1.bf16.msra.mxu0 %v12473_v28  ;;  %v10610_v34 = vpop.f32.mrb[39].mxu1  ;;  %v12500_v7 = vld [vmem:[%s16285_s5 + $0x8] sm:$0xff]  }
 0x47a   :  { %8037 = vmatprep.subr.bf16.mxu0 %v12478_v29  ;;  %v8381_v58 = vadd.f32 %v10608_v19, %v8341_v11  ;;  %v12502_v34 = vld [vmem:[%s16285_s5 + $0x18] sm:$0xff]  }
 0x47d   :  { %8038 = vmatpush1.bf16.msra.mxu0 %v12476_v31 }
 0x47e   :  { %8039 = vmatprep.subr.bf16.mxu0 %v12481_v32  ;;  %v12501_v32 = vld [vmem:[%s16285_s5 + $0x10] sm:$0xff]  }
 0x481   :  { %8040 = vmatpush1.bf16.msra.mxu0 %v12479_v40 }
 0x484   :  { %8058 = vmatmul.mubr.bf16.vlgmr.msra.gmra.mrb[4].mxu0 %v15789_v26  ;;  %v12492_v26 = vld [vmem:[%s16283_s3 + $0x168] sm:$0xff]  }
 0x485   :  { %10697 = vmatprep.subr.bf16.mxu1 %v12492_v26 }
 0x486   :  { %10698 = vmatpush3.bf16.msra.mxu1 %v12493_v0 }
 0x487   :  { %10699 = vmatprep.subr.bf16.mxu1 %v12494_v2 }
 0x48a   :  { %10700 = vmatpush3.bf16.msra.mxu1 %v12495_v52 }
 0x48b   :  { %10701 = vmatprep.subr.bf16.mxu1 %v12496_v30 }
 0x48e   :  { %10702 = vmatpush3.bf16.msra.mxu1 %v12497_v55 }
 0x48f   :  { %10749 = vmatprep.subr.bf16.mxu1 %v12543_v23 }
 0x496   :  { %v10628_v50 = vpop.f32.mrb[40].mxu1 }
 0x497   :  { %v10629_v6 = vpop.f32.mrb[41].mxu1 }
 0x498   :  { %v10630_v53 = vadd.f32 %v10629_v6, %v10628_v50  ;;  %v10631_v54 = vpop.f32.mrb[42].mxu1 }
 0x499   :  { %v10632_v57 = vpop.f32.mrb[43].mxu1 }
 0x49a   :  { %v8421_v51 = vadd.f32 %v10630_v53, %v8381_v58  ;;  %v12503_v58 = vld [vmem:[%s16285_s5 + $0x20] sm:$0xff]   ;;  %v12508_v57 = vld [vmem:[%s16287_s7 + $0x8] sm:$0xff]  }
 0x49b   :  { %v12507_v53 = vld [vmem:[%s16287_s7] sm:$0xff]  }
 0x4b6   :  { %v8460_v59 = vpop.f32.mrb[44].mxu1 }
 0x4b7   :  { %v8461_v60 = vadd.f32 %v8460_v59, %v8421_v51  ;;  %v10747_v61 = vpop.f32.mrb[45].mxu1  ;;  %v12509_v51 = vld [vmem:[%s16287_s7 + $0x10] sm:$0xff]   ;;  %v12510_v59 = vld [vmem:[%s16287_s7 + $0x18] sm:$0xff]  }
 0x4b8   :  { %v8463_v62 = vpop.f32.mrb[46].mxu1  ;;  %v12512_v61 = vld [vmem:[%s16287_s7 + $0x28] sm:$0xff]  }
 0x4b9   :  { %v10748_v39 = vpop.f32.mrb[47].mxu1  ;;  %v8472_v33 = vmax.f32 %v8461_v60, 0.0  ;;  %v12511_v60 = vld [vmem:[%s16287_s7 + $0x20] sm:$0xff]   ;;  %v12513_v62 = vld [vmem:[%s16287_s7 + $0x30] sm:$0xff]  }
 0x4ba   :  { %v12514_v39 = vld [vmem:[%s16287_s7 + $0x38] sm:$0xff]  }
 0x4bb   :  { %v8479_v31 = vpack.c.bf16 %v8472_v33, %v8472_v33 }
 0x4d6   :  { %v10659_v1 = vpop.f32.mrb[48].mxu1 }
 0x4d7   :  { %v10660_v3 = vpop.f32.mrb[49].mxu1 }
 0x4d8   :  { %v10661_v4 = vadd.f32 %v10660_v3, %v10659_v1  ;;  %v10662_v5 = vpop.f32.mrb[50].mxu1  ;;  %v10418_v1 = vld [vmem:[%s16286_s6] ss:$0 sm:$0xff]  ;;  %s12518_s6 = scalar_lea.vmem %s9277_s24, 128 }
 0x4d9   :  { %v10663_v15 = vpop.f32.mrb[51].mxu1  ;;  %p12519_p0 = scmp.ne.s32.totalorder %s9277_s24, %s12518_s6  ;;  %p12524_p2 = scmp.lt.s32.totalorder %s12518_s6, %s12518_s6 }
 0x4da   :  { %v8918_v10 = vadd.f32 %v10661_v4, %v10367_v45 }
 0x4db   :  { %p12525_p3 = por %p12524_p2, %p12523_p1 }
 0x4dd   :  { %p12526_p4 = pnand %p12525_p3, %p12519_p0 }
 0x4f6   :  { %v10681_v22 = vpop.f32.mrb[52].mxu1 }
 0x4f7   :  { %v10682_v9 = vpop.f32.mrb[53].mxu1 }
 0x4f8   :  { %v10683_v47 = vadd.f32 %v10682_v9, %v10681_v22  ;;  %v10684_v11 = vpop.f32.mrb[54].mxu1 }
 0x4f9   :  { %v10685_v27 = vpop.f32.mrb[55].mxu1 }
 0x4fa   :  { %v8958_v12 = vadd.f32 %v10683_v47, %v8918_v10 }
 0x557   :  { %v8059_v56 = vpop.f32.mrb[4].mxu0 }
 0x558   :  { %v10801_v8 = vadd.f32 %v8059_v56, %v1281_v38  ;;  %v8061_v21 = vpop.f32.mrb[5].mxu0 }
 0x559   :  { %v10802_v43 = vadd.f32 %v8061_v21, %v1285_v18  ;;  %v8063_v24 = vpop.f32.mrb[6].mxu0 }
 0x55a   :  { %v8470_v16 = vmax.f32 %v10801_v8, 0.0  ;;  %v8064_v28 = vpop.f32.mrb[7].mxu0 }
 0x55b   :  { %v8471_v29 = vmax.f32 %v10802_v43, 0.0 }
 0x55c   :  { %v8477_v19 = vpack.c.bf16 %v8470_v16, %v8470_v16 }
 0x55d   :  { %v8478_v36 = vpack.c.bf16 %v8471_v29, %v8471_v29 }
 0x55f   :  { %8995 = vmatprep.mubr.bf16.mxu1 %v8478_v36 }
 0x560   :  { %8996 = vmatmul.mubr.bf16.vlgmr.msra.gmra.mrb[56].mxu1 %v8477_v19 }
 0x561   :  { %10750 = vmatpush3.bf16.msra.mxu1 %v12498_v20  ;;  %10751 = vmatprep.mubr.msk.bf16.mxu1 %vm12544_vm0, %v12543_v23 }
 0x562   :  { %10755 = vmatprep.subr.bf16.mxu1 %v12543_v23 }
 0x568   :  { %10752 = vmatmul.mubr.msk.bf16.vlgmr.msra.gmra.mrb[60].mxu1 %vm8879_vm1, %v8479_v31 }
 0x569   :  { %10756 = vmatpush3.bf16.msra.mxu1 %v12499_v25  ;;  %10771 = vmatprep.mubr.msk.bf16.mxu1 %vm12544_vm0, %v12543_v23 }
 0x56a   :  { %10757 = vmatprep.subr.bf16.mxu1 %v12543_v23 }
 0x56d   :  { %10758 = vmatpush3.bf16.msra.mxu1 %v12500_v7 }
 0x56e   :  { %10759 = vmatprep.subr.bf16.mxu1 %v12543_v23 }
 0x571   :  { %10760 = vmatpush3.bf16.msra.mxu1 %v12501_v32 }
 0x572   :  { %10761 = vmatprep.subr.bf16.mxu1 %v12543_v23 }
 0x575   :  { %10762 = vmatpush3.bf16.msra.mxu1 %v12502_v34 }
 0x576   :  { %10763 = vmatprep.subr.bf16.mxu1 %v12543_v23 }
 0x579   :  { %10764 = vmatpush3.bf16.msra.mxu1 %v12503_v58 }
 0x57a   :  { %10765 = vmatprep.subr.bf16.mxu1 %v12543_v23 }
 0x57d   :  { %10766 = vmatpush3.bf16.msra.mxu1 %v12504_v35 }
 0x57e   :  { %10767 = vmatprep.subr.bf16.mxu1 %v12543_v23 }
 0x581   :  { %10768 = vmatpush3.bf16.msra.mxu1 %v12505_v42 }
 0x582   :  { %10769 = vmatprep.subr.bf16.mxu1 %v12543_v23 }
 0x585   :  { %10770 = vmatpush3.bf16.msra.mxu1 %v12506_v48 }
 0x586   :  { %10775 = vmatprep.subr.bf16.mxu1 %v12543_v23 }
 0x633   :  { %v10703_v40 = vpop.f32.mrb[56].mxu1 }
 0x634   :  { %v10704_v41 = vpop.f32.mrb[57].mxu1 }
 0x635   :  { %v10705_v63 = vadd.f32 %v10704_v41, %v10703_v40  ;;  %v10706_v44 = vpop.f32.mrb[58].mxu1 }
 0x636   :  { %v10707_v46 = vpop.f32.mrb[59].mxu1 }
 0x637   :  { %v8998_v37 = vadd.f32 %v10705_v63, %v8958_v12 }
 0x63b   :  { %v9037_v14 = vpop.f32.mrb[60].mxu1 }
 0x63c   :  { %v9038_v49 = vadd.f32 %v9037_v14, %v8998_v37  ;;  %v10753_v26 = vpop.f32.mrb[61].mxu1 }
 0x63d   :  { %v9040_v0 = vpop.f32.mrb[62].mxu1 }
 0x63e   :  { %v9043_v50 = vmax.f32 %v9038_v49, 0.0  ;;  %v10754_v6 = vpop.f32.mrb[63].mxu1 }
 0x640   :  { %v9044_v54 = vpack.c.bf16 %v9043_v50, %v9043_v50 }
 0x642   :  { %10772 = vmatmul.mubr.bf16.vlgmr.msra.gmra.mrb[64].mxu1 %v9044_v54 }
 0x643   :  { %10776 = vmatpush3.bf16.msra.mxu1 %v12507_v53  ;;  %10791 = vmatprep.mubr.msk.bf16.mxu1 %vm12544_vm0, %v12543_v23 }
 0x644   :  { %10777 = vmatprep.subr.bf16.mxu1 %v12543_v23 }
 0x647   :  { %10778 = vmatpush3.bf16.msra.mxu1 %v12508_v57 }
 0x648   :  { %10779 = vmatprep.subr.bf16.mxu1 %v12543_v23 }
 0x64b   :  { %10780 = vmatpush3.bf16.msra.mxu1 %v12509_v51 }
 0x64c   :  { %10781 = vmatprep.subr.bf16.mxu1 %v12543_v23 }
 0x64f   :  { %10782 = vmatpush3.bf16.msra.mxu1 %v12510_v59 }
 0x650   :  { %10783 = vmatprep.subr.bf16.mxu1 %v12543_v23 }
 0x653   :  { %10784 = vmatpush3.bf16.msra.mxu1 %v12511_v60 }
 0x654   :  { %10785 = vmatprep.subr.bf16.mxu1 %v12543_v23 }
 0x657   :  { %10786 = vmatpush3.bf16.msra.mxu1 %v12512_v61 }
 0x658   :  { %10787 = vmatprep.subr.bf16.mxu1 %v12543_v23 }
 0x65b   :  { %10788 = vmatpush3.bf16.msra.mxu1 %v12513_v62 }
 0x65c   :  { %10789 = vmatprep.subr.bf16.mxu1 %v12543_v23  ;;  %v10427_v23 = vld [vmem:[%s16288_s8] ss:$0 sm:$0xff] }
 0x65f   :  { %10790 = vmatpush3.bf16.msra.mxu1 %v12514_v39 }
 0x715   :  { %v9150_v2 = vpop.f32.mrb[64].mxu1 }
 0x716   :  { %v9151_v3 = vadd.f32 %v10418_v1, %v9150_v2  ;;  %v10773_v52 = vpop.f32.mrb[65].mxu1 }
 0x717   :  { %v9153_v4 = vpop.f32.mrb[66].mxu1 }
 0x718   :  { %v9156_v5 = vmax.f32 %v9151_v3, 0.0  ;;  %v10774_v15 = vpop.f32.mrb[67].mxu1 }
 0x71a   :  { %v9157_v30 = vpack.c.bf16 %v9156_v5, %v9156_v5 }
 0x71c   :  { %10792 = vmatmul.mubr.bf16.vlgmr.msra.gmra.mrb[68].mxu1 %v9157_v30 }
 0x7ef   :  { %v9263_v55 = vpop.f32.mrb[68].mxu1 }
 0x7f0   :  { %v9264_v45 = vadd.f32 %v10427_v23, %v9263_v55  ;;  %v10793_v22 = vpop.f32.mrb[69].mxu1 }
 0x7f1   :  { %v9266_v9 = vpop.f32.mrb[70].mxu1 }
 0x7f2   :  { %9269 = vst [vmem:[#allocation2] sm:$0xff] %v9264_v45  ;;  %v10794_v10 = vpop.f32.mrb[71].mxu1 }
 0x7f3   :  { %12529 = shalt.err (!%p12526_p4)
}
 0x7f4   :  { %s12530_s8 = scalar_lea.hbm %s16289_s9, 128 }
 0x7f5   :  { %p12531_p5 = scmp.ne.s32.totalorder %s16289_s9, %s12530_s8  ;;  %p12534_p6 = scmp.lt.u32.totalorder %s12530_s8, %s16289_s9 }
 0x7f7   :  { %p12536_p7 = pnand %p12534_p6, %p12531_p5 }
 0x7f9   :  { %12539 = shalt.err (!%p12536_p7)
}
 0x7fa   :  { %9279 = dma.vmem_to_hbm [thread:$0]  %s9277_s24, 128, %s16289_s9, [#allocation3]  }
 0x7fb   :  { %12540 = dma.done.wait [#allocation3], 128  }
 0x7fc   :  { %12541 = vsyncadd [#allocation3], 4294967168 }
 0x7fd   :  { %9283 = vsyncpa [#allocation3], 1 }

</bundles_post_ra>
